<compile_context>
chip_gen: v7x
topology: tpu7x:2x2x1
jax: 0.10.0
libtpu: 0.0.40
codegen_flags: <defaults>
</compile_context>

<pallas_src>
import functools

import jax
import jax.numpy as jnp
from jax import lax
from jax.experimental import pallas as pl
from jax.experimental.pallas import tpu as pltpu

MATMUL_DTYPE = jnp.bfloat16   # MXU operand dtype; accumulation stays f32.
LANE = 128


def _round_up(n, m):
    return (n + m - 1) // m * m


def _full_spec(shape):
    shape = tuple(shape)
    nd = len(shape)
    return pl.BlockSpec(shape, lambda *_: (0,) * nd)


# -----------------------------------------------------------------------------
# Fused kernel: L-layer LSTM (time loop in-kernel) + 3 FC layers.
#   refs = (x_tm, h0, c0, [w_ih_l, w_hh_l, b_l] * L, w1, b1, w2, b2, w3, b3,  # in
#           out_tm, h_n, c_n,                                                 # out
#           gx_sc, y_sc)                                                      # scratch
# x_tm is time-major (T, B, Vp); out_tm is time-major (T, B, Vp).
# -----------------------------------------------------------------------------
def _char_rnn_kernel(n_layers, *refs):
    x_ref, h0_ref, c0_ref = refs[:3]
    lstm_refs = refs[3:3 + 3 * n_layers]
    (w1_ref, b1_ref, w2_ref, b2_ref, w3_ref, b3_ref) = refs[3 + 3 * n_layers:
                                                            9 + 3 * n_layers]
    out_ref, hN_ref, cN_ref = refs[9 + 3 * n_layers:12 + 3 * n_layers]
    gx_sc, y_sc = refs[12 + 3 * n_layers:]

    T, B, _ = x_ref.shape
    H = h0_ref.shape[-1]

    def mm(a, w):
        return jnp.dot(a.astype(w.dtype), w, preferred_element_type=jnp.float32)

    for layer in range(n_layers):
        w_ih = lstm_refs[3 * layer + 0][...]
        w_hh = lstm_refs[3 * layer + 1][...]   # weight-stationary across the t loop
        bias = lstm_refs[3 * layer + 2][...].astype(jnp.float32)
        In = w_ih.shape[0]

        if layer == 0:
            layer_in = x_ref[...].reshape(T * B, In)          # time-major flat
        else:
            layer_in = y_sc[...].reshape(T * B, In)           # already time-major

        # Hoisted input projection: one big M-dense MXU matmul per layer.
        gx = mm(layer_in, w_ih) + bias                        # (T*B, 4H) f32
        gx_sc[...] = gx.reshape(T, B, 4 * H)

        h0 = h0_ref[layer].astype(jnp.float32)                # (B, H)
        c0 = c0_ref[layer].astype(jnp.float32)

        def step(t, carry, w_hh=w_hh):
            h, c = carry
            # PyTorch gate order: i, f, g, o.
            g = gx_sc[t] + mm(h, w_hh)                        # (B, 4H) f32
            if_gates = jax.nn.sigmoid(g[:, :2 * H])           # merged i|f sigmoid
            i_g = if_gates[:, :H]
            f_g = if_gates[:, H:]
            g_g = jnp.tanh(g[:, 2 * H:3 * H])
            o_g = jax.nn.sigmoid(g[:, 3 * H:])
            c_new = f_g * c + i_g * g_g
            h_new = o_g * jnp.tanh(c_new)
            y_sc[t] = h_new                                   # dense (B, H) store
            return (h_new, c_new)

        h_fin, c_fin = lax.fori_loop(0, T, step, (h0, c0), unroll=(T <= 32))

        hN_ref[layer] = h_fin.astype(hN_ref.dtype)
        cN_ref[layer] = c_fin.astype(cN_ref.dtype)
        # Inter-layer dropout: identity at inference.

    # FC head on the time-major flat slab (row order fixed once in the wrapper).
    flat = y_sc[...].reshape(T * B, H)
    h1 = mm(flat, w1_ref[...]) + b1_ref[...].astype(jnp.float32)
    h2 = mm(h1, w2_ref[...]) + b2_ref[...].astype(jnp.float32)
    logits = mm(h2, w3_ref[...]) + b3_ref[...].astype(jnp.float32)
    out_ref[...] = logits.reshape(T, B, -1).astype(out_ref.dtype)


# -----------------------------------------------------------------------------
# Wrapper: layout fixes, weight casting / lane padding, the single pallas_call.
# -----------------------------------------------------------------------------
@jax.jit
def char_rnn_forward(x, hidden, params):
    """x: (B, T, V) batch-first one-hot floats; hidden: (h0, c0), each (L, B, H)."""
    h0, c0 = hidden
    B, T, V = x.shape
    L, _, H = h0.shape
    assert len(params["lstm"]) == L

    w1, b1, w2, b2, w3, b3 = params["fc"]
    H2 = w1.shape[1]
    H2p = _round_up(H2, LANE)
    Vp = _round_up(V, LANE)
    mdt = MATMUL_DTYPE

    # Time-major, lane-padded one-hot input: (T, B, Vp).
    x_tm = jnp.transpose(x, (1, 0, 2))
    x_tm = jnp.pad(x_tm, ((0, 0), (0, 0), (0, Vp - V)))

    inputs = [x_tm, h0, c0]
    for layer, (w_ih, w_hh, b) in enumerate(params["lstm"]):
        if layer == 0:
            # Zero-pad layer-0 W_ih rows to match the lane-padded one-hot input.
            w_ih = jnp.pad(w_ih, ((0, Vp - V), (0, 0)))
        inputs += [w_ih.astype(mdt), w_hh.astype(mdt), b]

    # Lane-pad the narrow FC dims (H2, V) to multiples of 128; zero padding is
    # sliced off below, so the math is unchanged.
    inputs += [
        jnp.pad(w1, ((0, 0), (0, H2p - H2))).astype(mdt),
        jnp.pad(b1, ((0, 0), (0, H2p - H2))),
        jnp.pad(w2, ((0, H2p - H2), (0, H2p - H2))).astype(mdt),
        jnp.pad(b2, ((0, 0), (0, H2p - H2))),
        jnp.pad(w3, ((0, H2p - H2), (0, Vp - V))).astype(mdt),
        jnp.pad(b3, ((0, 0), (0, Vp - V))),
    ]

    # Batch chunking: split B across grid steps (megacore / dual TC) when big.
    if B >= 16 and B % 16 == 0:
        bt = B // 2
    else:
        bt = B
    nb = B // bt

    out_shapes = (
        jax.ShapeDtypeStruct((T, B, Vp), x.dtype),   # time-major logits
        jax.ShapeDtypeStruct((L, B, H), h0.dtype),
        jax.ShapeDtypeStruct((L, B, H), c0.dtype),
    )

    in_specs = [
        pl.BlockSpec((T, bt, Vp), lambda b: (0, b, 0)),
        pl.BlockSpec((L, bt, H), lambda b: (0, b, 0)),
        pl.BlockSpec((L, bt, H), lambda b: (0, b, 0)),
    ] + [_full_spec(a.shape) for a in inputs[3:]]

    out_specs = (
        pl.BlockSpec((T, bt, Vp), lambda b: (0, b, 0)),
        pl.BlockSpec((L, bt, H), lambda b: (0, b, 0)),
        pl.BlockSpec((L, bt, H), lambda b: (0, b, 0)),
    )

    scratch_shapes = [
        pltpu.VMEM((T, bt, 4 * H), jnp.float32),   # hoisted gates, time-major
        pltpu.VMEM((T, bt, H), jnp.float32),       # hidden sequence, time-major
    ]

    # Conservative VMEM estimate; bump the scoped limit only when the default
    # (16 MiB v5e / 32 MiB v6e+) would be exceeded at large H / L.
    itemsize = lambda a: a.size * a.dtype.itemsize
    block_in = (T * bt * Vp * x.dtype.itemsize
                + 2 * L * bt * H * h0.dtype.itemsize
                + sum(itemsize(a) for a in inputs[3:]))
    block_out = T * bt * Vp * x.dtype.itemsize + 2 * L * bt * H * h0.dtype.itemsize
    scratch_bytes = (T * bt * 4 * H + T * bt * H) * 4
    est = 2 * (block_in + block_out) + scratch_bytes + (4 << 20)
    vmem_limit = None
    if est > (16 << 20):
        vmem_limit = min(int(est), 100 << 20)

    out_tm, h_n, c_n = pl.pallas_call(
        functools.partial(_char_rnn_kernel, L),
        out_shape=out_shapes,
        grid=(nb,),
        in_specs=in_specs,
        out_specs=out_specs,
        scratch_shapes=scratch_shapes,
        compiler_params=pltpu.CompilerParams(
            dimension_semantics=("parallel",),
            vmem_limit_bytes=vmem_limit,
        ),
    )(*inputs)

    # Back to batch-first flatten order (matches out.contiguous().view(-1, H)),
    # and slice off the lane padding.  Cheap XLA copy on the smallest tensor.
    out = jnp.transpose(out_tm, (1, 0, 2)).reshape(B * T, Vp)[:, :V]
    return out, (h_n, c_n)


# -----------------------------------------------------------------------------
# Pure-JAX f32 reference (for correctness check).
# -----------------------------------------------------------------------------
def char_rnn_reference(x, hidden, params):
    h0, c0 = hidden
    B, T, V = x.shape
    L, _, H = h0.shape
    layer_in = x
    hs, cs = [], []
    for l in range(L):
        w_ih, w_hh, b = params["lstm"][l]
        h, c = h0[l], c0[l]
        outs = []
        for t in range(T):
            g = layer_in[:, t, :] @ w_ih + h @ w_hh + b[0]
            i = jax.nn.sigmoid(g[:, :H])
            f = jax.nn.sigmoid(g[:, H:2 * H])
            gg = jnp.tanh(g[:, 2 * H:3 * H])
            o = jax.nn.sigmoid(g[:, 3 * H:])
            c = f * c + i * gg
            h = o * jnp.tanh(c)
            outs.append(h)
        layer_in = jnp.stack(outs, axis=1)
        hs.append(h)
        cs.append(c)
    w1, b1, w2, b2, w3, b3 = params["fc"]
    flat = layer_in.reshape(B * T, H)
    out = (flat @ w1 + b1) @ w2 + b2
    out = out @ w3 + b3
    return out, (jnp.stack(hs), jnp.stack(cs))


# -----------------------------------------------------------------------------
# Deterministic parameter init (PyTorch-style uniform(-1/sqrt(H), 1/sqrt(H)));
# LSTM weights pre-transposed to x @ W layout, b_ih + b_hh combined.
# -----------------------------------------------------------------------------
def init_params(key, vocab, n_hidden, n_layers):
    k = 1.0 / jnp.sqrt(n_hidden)
    params = {"lstm": [], "fc": None}
    for layer in range(n_layers):
        in_size = vocab if layer == 0 else n_hidden
        key, k1, k2, k3, k4 = jax.random.split(key, 5)
        w_ih = jax.random.uniform(k1, (in_size, 4 * n_hidden), jnp.float32, -k, k)
        w_hh = jax.random.uniform(k2, (n_hidden, 4 * n_hidden), jnp.float32, -k, k)
        b_ih = jax.random.uniform(k3, (4 * n_hidden,), jnp.float32, -k, k)
        b_hh = jax.random.uniform(k4, (4 * n_hidden,), jnp.float32, -k, k)
        params["lstm"].append((w_ih, w_hh, (b_ih + b_hh)[None, :]))

    h2 = n_hidden // 2
    key, k1, k2, k3, k4, k5, k6 = jax.random.split(key, 7)
    kf1 = 1.0 / jnp.sqrt(n_hidden)
    kf2 = 1.0 / jnp.sqrt(h2)
    w1 = jax.random.uniform(k1, (n_hidden, h2), jnp.float32, -kf1, kf1)
    b1 = jax.random.uniform(k2, (1, h2), jnp.float32, -kf1, kf1)
    w2 = jax.random.uniform(k3, (h2, h2), jnp.float32, -kf2, kf2)
    b2 = jax.random.uniform(k4, (1, h2), jnp.float32, -kf2, kf2)
    w3 = jax.random.uniform(k5, (h2, vocab), jnp.float32, -kf2, kf2)
    b3 = jax.random.uniform(k6, (1, vocab), jnp.float32, -kf2, kf2)
    params["fc"] = (w1, b1, w2, b2, w3, b3)
    return params


if __name__ == "__main__":
    # Small shapes consistent with the module: vocab=64 tokens, hidden=128, 2 layers.
    VOCAB, N_HIDDEN, N_LAYERS = 64, 128, 2
    B, T = 8, 8

    key = jax.random.PRNGKey(0)
    key, kp, kx = jax.random.split(key, 3)
    params = init_params(kp, VOCAB, N_HIDDEN, N_LAYERS)

    # One-hot character input, like the CharRNN training pipeline.
    ids = jax.random.randint(kx, (B, T), 0, VOCAB)
    x = jax.nn.one_hot(ids, VOCAB, dtype=jnp.float32)        # (B, T, V)

    # init_hidden(batch_size): zeros of shape (n_layers, B, n_hidden).
    hidden = (jnp.zeros((N_LAYERS, B, N_HIDDEN), jnp.float32),
              jnp.zeros((N_LAYERS, B, N_HIDDEN), jnp.float32))

    out, (h_n, c_n) = char_rnn_forward(x, hidden, params)
    jax.block_until_ready((out, h_n, c_n))

    assert out.shape == (B * T, VOCAB)
    assert h_n.shape == (N_LAYERS, B, N_HIDDEN)
    assert c_n.shape == (N_LAYERS, B, N_HIDDEN)
    assert bool(jnp.all(jnp.isfinite(out)))
    assert bool(jnp.all(jnp.isfinite(h_n))) and bool(jnp.all(jnp.isfinite(c_n)))

    # Correctness vs. pure-f32 reference (bf16 MXU operands -> loose tolerance).
    out_ref, (h_ref, c_ref) = char_rnn_reference(x, hidden, params)
    assert float(jnp.max(jnp.abs(out - out_ref))) < 5e-2
    assert float(jnp.max(jnp.abs(h_n - h_ref))) < 5e-2
    assert float(jnp.max(jnp.abs(c_n - c_ref))) < 5e-2

    print("KERNEL_OK")
</pallas_src>

<mosaic_0001>
module attributes {stable_mosaic.version = 11 : i64} {
  func.func @_char_rnn_kernel(%arg0: i32, %arg1: memref<8x8x128xf32, #tpu.memory_space<vmem>>, %arg2: memref<2x8x128xf32, #tpu.memory_space<vmem>>, %arg3: memref<2x8x128xf32, #tpu.memory_space<vmem>>, %arg4: memref<128x512xbf16, #tpu.memory_space<vmem>>, %arg5: memref<128x512xbf16, #tpu.memory_space<vmem>>, %arg6: memref<1x512xf32, #tpu.memory_space<vmem>>, %arg7: memref<128x512xbf16, #tpu.memory_space<vmem>>, %arg8: memref<128x512xbf16, #tpu.memory_space<vmem>>, %arg9: memref<1x512xf32, #tpu.memory_space<vmem>>, %arg10: memref<128x128xbf16, #tpu.memory_space<vmem>>, %arg11: memref<1x128xf32, #tpu.memory_space<vmem>>, %arg12: memref<128x128xbf16, #tpu.memory_space<vmem>>, %arg13: memref<1x128xf32, #tpu.memory_space<vmem>>, %arg14: memref<128x128xbf16, #tpu.memory_space<vmem>>, %arg15: memref<1x128xf32, #tpu.memory_space<vmem>>, %arg16: memref<8x8x128xf32, #tpu.memory_space<vmem>>, %arg17: memref<2x8x128xf32, #tpu.memory_space<vmem>>, %arg18: memref<2x8x128xf32, #tpu.memory_space<vmem>>, %arg19: memref<8x8x512xf32, #tpu.memory_space<vmem>>, %arg20: memref<8x8x128xf32, #tpu.memory_space<vmem>>) attributes {dimension_semantics = [#tpu.dimension_semantics<parallel>], iteration_bounds = array<i64: 1>, scalar_prefetch = 0 : i64, scratch_operands = 2 : i64, tpu.core_type = #tpu.core_type<tc>, window_params = [{transform_indices = @transform_0, window_bounds = array<i64: 8, 8, 128>}, {transform_indices = @transform_1, window_bounds = array<i64: 2, 8, 128>}, {transform_indices = @transform_2, window_bounds = array<i64: 2, 8, 128>}, {pipeline_mode = #tpu.pipeline_mode<synchronous>, transform_indices = @transform_3, window_bounds = array<i64: 128, 512>}, {pipeline_mode = #tpu.pipeline_mode<synchronous>, transform_indices = @transform_4, window_bounds = array<i64: 128, 512>}, {pipeline_mode = #tpu.pipeline_mode<synchronous>, transform_indices = @transform_5, window_bounds = array<i64: 1, 512>}, {pipeline_mode = #tpu.pipeline_mode<synchronous>, transform_indices = @transform_6, window_bounds = array<i64: 128, 512>}, {pipeline_mode = #tpu.pipeline_mode<synchronous>, transform_indices = @transform_7, window_bounds = array<i64: 128, 512>}, {pipeline_mode = #tpu.pipeline_mode<synchronous>, transform_indices = @transform_8, window_bounds = array<i64: 1, 512>}, {pipeline_mode = #tpu.pipeline_mode<synchronous>, transform_indices = @transform_9, window_bounds = array<i64: 128, 128>}, {pipeline_mode = #tpu.pipeline_mode<synchronous>, transform_indices = @transform_10, window_bounds = array<i64: 1, 128>}, {pipeline_mode = #tpu.pipeline_mode<synchronous>, transform_indices = @transform_11, window_bounds = array<i64: 128, 128>}, {pipeline_mode = #tpu.pipeline_mode<synchronous>, transform_indices = @transform_12, window_bounds = array<i64: 1, 128>}, {pipeline_mode = #tpu.pipeline_mode<synchronous>, transform_indices = @transform_13, window_bounds = array<i64: 128, 128>}, {pipeline_mode = #tpu.pipeline_mode<synchronous>, transform_indices = @transform_14, window_bounds = array<i64: 1, 128>}, {transform_indices = @transform_15, window_bounds = array<i64: 8, 8, 128>}, {transform_indices = @transform_16, window_bounds = array<i64: 2, 8, 128>}, {transform_indices = @transform_17, window_bounds = array<i64: 2, 8, 128>}]} {
    %c0 = arith.constant 0 : index
    %c0_0 = arith.constant 0 : index
    %0 = vector.load %arg4[%c0, %c0_0] : memref<128x512xbf16, #tpu.memory_space<vmem>>, vector<128x512xbf16>
    %c0_1 = arith.constant 0 : index
    %c0_2 = arith.constant 0 : index
    %1 = vector.load %arg5[%c0_1, %c0_2] : memref<128x512xbf16, #tpu.memory_space<vmem>>, vector<128x512xbf16>
    %c0_3 = arith.constant 0 : index
    %c0_4 = arith.constant 0 : index
    %2 = vector.load %arg6[%c0_3, %c0_4] : memref<1x512xf32, #tpu.memory_space<vmem>>, vector<1x512xf32>
    %c0_5 = arith.constant 0 : index
    %c0_6 = arith.constant 0 : index
    %c0_7 = arith.constant 0 : index
    %3 = vector.load %arg1[%c0_5, %c0_6, %c0_7] : memref<8x8x128xf32, #tpu.memory_space<vmem>>, vector<8x8x128xf32>
    %4 = vector.shape_cast %3 : vector<8x8x128xf32> to vector<64x128xf32>
    %5 = arith.truncf %4 : vector<64x128xf32> to vector<64x128xbf16>
    %cst = arith.constant dense<0.000000e+00> : vector<64x512xf32>
    %6 = tpu.matmul %5, %0, %cst {dimension_numbers = #tpu.dot_dimension_numbers<[1], [0], [0], [1], [0, 0, 1, 1], [], []>} : vector<64x128xbf16>, vector<128x512xbf16>, vector<64x512xf32> -> vector<64x512xf32>
    %7 = vector.broadcast %2 : vector<1x512xf32> to vector<64x512xf32>
    %8 = arith.addf %6, %7 : vector<64x512xf32>
    %9 = vector.shape_cast %8 : vector<64x512xf32> to vector<8x8x512xf32>
    %c0_8 = arith.constant 0 : index
    %c0_9 = arith.constant 0 : index
    %c0_10 = arith.constant 0 : index
    %10 = vector.load %arg19[%c0_8, %c0_9, %c0_10] : memref<8x8x512xf32, #tpu.memory_space<vmem>>, vector<8x8x512xf32>
    tpu.vector_store %arg19[%c0_8, %c0_9, %c0_10], %9 {strides = array<i32>} : memref<8x8x512xf32, #tpu.memory_space<vmem>>, vector<8x8x512xf32>,
    %c0_11 = arith.constant 0 : index
    %c0_12 = arith.constant 0 : index
    %c0_13 = arith.constant 0 : index
    %11 = vector.load %arg2[%c0_11, %c0_12, %c0_13] : memref<2x8x128xf32, #tpu.memory_space<vmem>>, vector<1x8x128xf32>
    %12 = vector.shape_cast %11 : vector<1x8x128xf32> to vector<8x128xf32>
    %c0_14 = arith.constant 0 : index
    %c0_15 = arith.constant 0 : index
    %c0_16 = arith.constant 0 : index
    %13 = vector.load %arg3[%c0_14, %c0_15, %c0_16] : memref<2x8x128xf32, #tpu.memory_space<vmem>>, vector<1x8x128xf32>
    %14 = vector.shape_cast %13 : vector<1x8x128xf32> to vector<8x128xf32>
    %c0_i32 = arith.constant 0 : i32
    %15 = arith.index_cast %c0_i32 : i32 to index
    %c0_17 = arith.constant 0 : index
    %c0_18 = arith.constant 0 : index
    %16 = vector.load %arg19[%15, %c0_17, %c0_18] : memref<8x8x512xf32, #tpu.memory_space<vmem>>, vector<1x8x512xf32>
    %17 = vector.shape_cast %16 : vector<1x8x512xf32> to vector<8x512xf32>
    %18 = arith.truncf %12 : vector<8x128xf32> to vector<8x128xbf16>
    %cst_19 = arith.constant dense<0.000000e+00> : vector<8x512xf32>
    %19 = tpu.matmul %18, %1, %cst_19 {dimension_numbers = #tpu.dot_dimension_numbers<[1], [0], [0], [1], [0, 0, 1, 1], [], []>} : vector<8x128xbf16>, vector<128x512xbf16>, vector<8x512xf32> -> vector<8x512xf32>
    %20 = arith.addf %17, %19 : vector<8x512xf32>
    %21 = vector.extract_strided_slice %20 {offsets = [0, 0], sizes = [8, 256], strides = [1, 1]} : vector<8x512xf32> to vector<8x256xf32>
    %22 = arith.negf %21 : vector<8x256xf32>
    %23 = math.exp %22 : vector<8x256xf32>
    %cst_20 = arith.constant 1.000000e+00 : f32
    %24 = vector.broadcast %cst_20 : f32 to vector<8x256xf32>
    %25 = arith.addf %24, %23 : vector<8x256xf32>
    %26 = arith.divf %24, %25 : vector<8x256xf32>
    %27 = vector.extract_strided_slice %26 {offsets = [0, 0], sizes = [8, 128], strides = [1, 1]} : vector<8x256xf32> to vector<8x128xf32>
    %28 = vector.extract_strided_slice %26 {offsets = [0, 128], sizes = [8, 128], strides = [1, 1]} : vector<8x256xf32> to vector<8x128xf32>
    %29 = vector.extract_strided_slice %20 {offsets = [0, 256], sizes = [8, 128], strides = [1, 1]} : vector<8x512xf32> to vector<8x128xf32>
    %30 = math.tanh %29 : vector<8x128xf32>
    %31 = vector.extract_strided_slice %20 {offsets = [0, 384], sizes = [8, 128], strides = [1, 1]} : vector<8x512xf32> to vector<8x128xf32>
    %32 = arith.negf %31 : vector<8x128xf32>
    %33 = math.exp %32 : vector<8x128xf32>
    %cst_21 = arith.constant 1.000000e+00 : f32
    %34 = vector.broadcast %cst_21 : f32 to vector<8x128xf32>
    %35 = arith.addf %34, %33 : vector<8x128xf32>
    %36 = arith.divf %34, %35 : vector<8x128xf32>
    %37 = arith.mulf %28, %14 : vector<8x128xf32>
    %38 = arith.mulf %27, %30 : vector<8x128xf32>
    %39 = arith.addf %37, %38 : vector<8x128xf32>
    %40 = math.tanh %39 : vector<8x128xf32>
    %41 = arith.mulf %36, %40 : vector<8x128xf32>
    %42 = arith.index_cast %c0_i32 : i32 to index
    %c0_22 = arith.constant 0 : index
    %c0_23 = arith.constant 0 : index
    %43 = vector.load %arg20[%42, %c0_22, %c0_23] : memref<8x8x128xf32, #tpu.memory_space<vmem>>, vector<1x8x128xf32>
    %44 = vector.shape_cast %43 : vector<1x8x128xf32> to vector<8x128xf32>
    %45 = vector.shape_cast %41 : vector<8x128xf32> to vector<1x8x128xf32>
    tpu.vector_store %arg20[%42, %c0_22, %c0_23], %45 {strides = array<i32>} : memref<8x8x128xf32, #tpu.memory_space<vmem>>, vector<1x8x128xf32>,
    %c1_i32 = arith.constant 1 : i32
    %46 = arith.index_cast %c1_i32 : i32 to index
    %c0_24 = arith.constant 0 : index
    %c0_25 = arith.constant 0 : index
    %47 = vector.load %arg19[%46, %c0_24, %c0_25] : memref<8x8x512xf32, #tpu.memory_space<vmem>>, vector<1x8x512xf32>
    %48 = vector.shape_cast %47 : vector<1x8x512xf32> to vector<8x512xf32>
    %49 = arith.truncf %41 : vector<8x128xf32> to vector<8x128xbf16>
    %cst_26 = arith.constant dense<0.000000e+00> : vector<8x512xf32>
    %50 = tpu.matmul %49, %1, %cst_26 {dimension_numbers = #tpu.dot_dimension_numbers<[1], [0], [0], [1], [0, 0, 1, 1], [], []>} : vector<8x128xbf16>, vector<128x512xbf16>, vector<8x512xf32> -> vector<8x512xf32>
    %51 = arith.addf %48, %50 : vector<8x512xf32>
    %52 = vector.extract_strided_slice %51 {offsets = [0, 0], sizes = [8, 256], strides = [1, 1]} : vector<8x512xf32> to vector<8x256xf32>
    %53 = arith.negf %52 : vector<8x256xf32>
    %54 = math.exp %53 : vector<8x256xf32>
    %cst_27 = arith.constant 1.000000e+00 : f32
    %55 = vector.broadcast %cst_27 : f32 to vector<8x256xf32>
    %56 = arith.addf %55, %54 : vector<8x256xf32>
    %57 = arith.divf %55, %56 : vector<8x256xf32>
    %58 = vector.extract_strided_slice %57 {offsets = [0, 0], sizes = [8, 128], strides = [1, 1]} : vector<8x256xf32> to vector<8x128xf32>
    %59 = vector.extract_strided_slice %57 {offsets = [0, 128], sizes = [8, 128], strides = [1, 1]} : vector<8x256xf32> to vector<8x128xf32>
    %60 = vector.extract_strided_slice %51 {offsets = [0, 256], sizes = [8, 128], strides = [1, 1]} : vector<8x512xf32> to vector<8x128xf32>
    %61 = math.tanh %60 : vector<8x128xf32>
    %62 = vector.extract_strided_slice %51 {offsets = [0, 384], sizes = [8, 128], strides = [1, 1]} : vector<8x512xf32> to vector<8x128xf32>
    %63 = arith.negf %62 : vector<8x128xf32>
    %64 = math.exp %63 : vector<8x128xf32>
    %cst_28 = arith.constant 1.000000e+00 : f32
    %65 = vector.broadcast %cst_28 : f32 to vector<8x128xf32>
    %66 = arith.addf %65, %64 : vector<8x128xf32>
    %67 = arith.divf %65, %66 : vector<8x128xf32>
    %68 = arith.mulf %59, %39 : vector<8x128xf32>
    %69 = arith.mulf %58, %61 : vector<8x128xf32>
    %70 = arith.addf %68, %69 : vector<8x128xf32>
    %71 = math.tanh %70 : vector<8x128xf32>
    %72 = arith.mulf %67, %71 : vector<8x128xf32>
    %73 = arith.index_cast %c1_i32 : i32 to index
    %c0_29 = arith.constant 0 : index
    %c0_30 = arith.constant 0 : index
    %74 = vector.load %arg20[%73, %c0_29, %c0_30] : memref<8x8x128xf32, #tpu.memory_space<vmem>>, vector<1x8x128xf32>
    %75 = vector.shape_cast %74 : vector<1x8x128xf32> to vector<8x128xf32>
    %76 = vector.shape_cast %72 : vector<8x128xf32> to vector<1x8x128xf32>
    tpu.vector_store %arg20[%73, %c0_29, %c0_30], %76 {strides = array<i32>} : memref<8x8x128xf32, #tpu.memory_space<vmem>>, vector<1x8x128xf32>,
    %c2_i32 = arith.constant 2 : i32
    %77 = arith.index_cast %c2_i32 : i32 to index
    %c0_31 = arith.constant 0 : index
    %c0_32 = arith.constant 0 : index
    %78 = vector.load %arg19[%77, %c0_31, %c0_32] : memref<8x8x512xf32, #tpu.memory_space<vmem>>, vector<1x8x512xf32>
    %79 = vector.shape_cast %78 : vector<1x8x512xf32> to vector<8x512xf32>
    %80 = arith.truncf %72 : vector<8x128xf32> to vector<8x128xbf16>
    %cst_33 = arith.constant dense<0.000000e+00> : vector<8x512xf32>
    %81 = tpu.matmul %80, %1, %cst_33 {dimension_numbers = #tpu.dot_dimension_numbers<[1], [0], [0], [1], [0, 0, 1, 1], [], []>} : vector<8x128xbf16>, vector<128x512xbf16>, vector<8x512xf32> -> vector<8x512xf32>
    %82 = arith.addf %79, %81 : vector<8x512xf32>
    %83 = vector.extract_strided_slice %82 {offsets = [0, 0], sizes = [8, 256], strides = [1, 1]} : vector<8x512xf32> to vector<8x256xf32>
    %84 = arith.negf %83 : vector<8x256xf32>
    %85 = math.exp %84 : vector<8x256xf32>
    %cst_34 = arith.constant 1.000000e+00 : f32
    %86 = vector.broadcast %cst_34 : f32 to vector<8x256xf32>
    %87 = arith.addf %86, %85 : vector<8x256xf32>
    %88 = arith.divf %86, %87 : vector<8x256xf32>
    %89 = vector.extract_strided_slice %88 {offsets = [0, 0], sizes = [8, 128], strides = [1, 1]} : vector<8x256xf32> to vector<8x128xf32>
    %90 = vector.extract_strided_slice %88 {offsets = [0, 128], sizes = [8, 128], strides = [1, 1]} : vector<8x256xf32> to vector<8x128xf32>
    %91 = vector.extract_strided_slice %82 {offsets = [0, 256], sizes = [8, 128], strides = [1, 1]} : vector<8x512xf32> to vector<8x128xf32>
    %92 = math.tanh %91 : vector<8x128xf32>
    %93 = vector.extract_strided_slice %82 {offsets = [0, 384], sizes = [8, 128], strides = [1, 1]} : vector<8x512xf32> to vector<8x128xf32>
    %94 = arith.negf %93 : vector<8x128xf32>
    %95 = math.exp %94 : vector<8x128xf32>
    %cst_35 = arith.constant 1.000000e+00 : f32
    %96 = vector.broadcast %cst_35 : f32 to vector<8x128xf32>
    %97 = arith.addf %96, %95 : vector<8x128xf32>
    %98 = arith.divf %96, %97 : vector<8x128xf32>
    %99 = arith.mulf %90, %70 : vector<8x128xf32>
    %100 = arith.mulf %89, %92 : vector<8x128xf32>
    %101 = arith.addf %99, %100 : vector<8x128xf32>
    %102 = math.tanh %101 : vector<8x128xf32>
    %103 = arith.mulf %98, %102 : vector<8x128xf32>
    %104 = arith.index_cast %c2_i32 : i32 to index
    %c0_36 = arith.constant 0 : index
    %c0_37 = arith.constant 0 : index
    %105 = vector.load %arg20[%104, %c0_36, %c0_37] : memref<8x8x128xf32, #tpu.memory_space<vmem>>, vector<1x8x128xf32>
    %106 = vector.shape_cast %105 : vector<1x8x128xf32> to vector<8x128xf32>
    %107 = vector.shape_cast %103 : vector<8x128xf32> to vector<1x8x128xf32>
    tpu.vector_store %arg20[%104, %c0_36, %c0_37], %107 {strides = array<i32>} : memref<8x8x128xf32, #tpu.memory_space<vmem>>, vector<1x8x128xf32>,
    %c3_i32 = arith.constant 3 : i32
    %108 = arith.index_cast %c3_i32 : i32 to index
    %c0_38 = arith.constant 0 : index
    %c0_39 = arith.constant 0 : index
    %109 = vector.load %arg19[%108, %c0_38, %c0_39] : memref<8x8x512xf32, #tpu.memory_space<vmem>>, vector<1x8x512xf32>
    %110 = vector.shape_cast %109 : vector<1x8x512xf32> to vector<8x512xf32>
    %111 = arith.truncf %103 : vector<8x128xf32> to vector<8x128xbf16>
    %cst_40 = arith.constant dense<0.000000e+00> : vector<8x512xf32>
    %112 = tpu.matmul %111, %1, %cst_40 {dimension_numbers = #tpu.dot_dimension_numbers<[1], [0], [0], [1], [0, 0, 1, 1], [], []>} : vector<8x128xbf16>, vector<128x512xbf16>, vector<8x512xf32> -> vector<8x512xf32>
    %113 = arith.addf %110, %112 : vector<8x512xf32>
    %114 = vector.extract_strided_slice %113 {offsets = [0, 0], sizes = [8, 256], strides = [1, 1]} : vector<8x512xf32> to vector<8x256xf32>
    %115 = arith.negf %114 : vector<8x256xf32>
    %116 = math.exp %115 : vector<8x256xf32>
    %cst_41 = arith.constant 1.000000e+00 : f32
    %117 = vector.broadcast %cst_41 : f32 to vector<8x256xf32>
    %118 = arith.addf %117, %116 : vector<8x256xf32>
    %119 = arith.divf %117, %118 : vector<8x256xf32>
    %120 = vector.extract_strided_slice %119 {offsets = [0, 0], sizes = [8, 128], strides = [1, 1]} : vector<8x256xf32> to vector<8x128xf32>
    %121 = vector.extract_strided_slice %119 {offsets = [0, 128], sizes = [8, 128], strides = [1, 1]} : vector<8x256xf32> to vector<8x128xf32>
    %122 = vector.extract_strided_slice %113 {offsets = [0, 256], sizes = [8, 128], strides = [1, 1]} : vector<8x512xf32> to vector<8x128xf32>
    %123 = math.tanh %122 : vector<8x128xf32>
    %124 = vector.extract_strided_slice %113 {offsets = [0, 384], sizes = [8, 128], strides = [1, 1]} : vector<8x512xf32> to vector<8x128xf32>
    %125 = arith.negf %124 : vector<8x128xf32>
    %126 = math.exp %125 : vector<8x128xf32>
    %cst_42 = arith.constant 1.000000e+00 : f32
    %127 = vector.broadcast %cst_42 : f32 to vector<8x128xf32>
    %128 = arith.addf %127, %126 : vector<8x128xf32>
    %129 = arith.divf %127, %128 : vector<8x128xf32>
    %130 = arith.mulf %121, %101 : vector<8x128xf32>
    %131 = arith.mulf %120, %123 : vector<8x128xf32>
    %132 = arith.addf %130, %131 : vector<8x128xf32>
    %133 = math.tanh %132 : vector<8x128xf32>
    %134 = arith.mulf %129, %133 : vector<8x128xf32>
    %135 = arith.index_cast %c3_i32 : i32 to index
    %c0_43 = arith.constant 0 : index
    %c0_44 = arith.constant 0 : index
    %136 = vector.load %arg20[%135, %c0_43, %c0_44] : memref<8x8x128xf32, #tpu.memory_space<vmem>>, vector<1x8x128xf32>
    %137 = vector.shape_cast %136 : vector<1x8x128xf32> to vector<8x128xf32>
    %138 = vector.shape_cast %134 : vector<8x128xf32> to vector<1x8x128xf32>
    tpu.vector_store %arg20[%135, %c0_43, %c0_44], %138 {strides = array<i32>} : memref<8x8x128xf32, #tpu.memory_space<vmem>>, vector<1x8x128xf32>,
    %c4_i32 = arith.constant 4 : i32
    %139 = arith.index_cast %c4_i32 : i32 to index
    %c0_45 = arith.constant 0 : index
    %c0_46 = arith.constant 0 : index
    %140 = vector.load %arg19[%139, %c0_45, %c0_46] : memref<8x8x512xf32, #tpu.memory_space<vmem>>, vector<1x8x512xf32>
    %141 = vector.shape_cast %140 : vector<1x8x512xf32> to vector<8x512xf32>
    %142 = arith.truncf %134 : vector<8x128xf32> to vector<8x128xbf16>
    %cst_47 = arith.constant dense<0.000000e+00> : vector<8x512xf32>
    %143 = tpu.matmul %142, %1, %cst_47 {dimension_numbers = #tpu.dot_dimension_numbers<[1], [0], [0], [1], [0, 0, 1, 1], [], []>} : vector<8x128xbf16>, vector<128x512xbf16>, vector<8x512xf32> -> vector<8x512xf32>
    %144 = arith.addf %141, %143 : vector<8x512xf32>
    %145 = vector.extract_strided_slice %144 {offsets = [0, 0], sizes = [8, 256], strides = [1, 1]} : vector<8x512xf32> to vector<8x256xf32>
    %146 = arith.negf %145 : vector<8x256xf32>
    %147 = math.exp %146 : vector<8x256xf32>
    %cst_48 = arith.constant 1.000000e+00 : f32
    %148 = vector.broadcast %cst_48 : f32 to vector<8x256xf32>
    %149 = arith.addf %148, %147 : vector<8x256xf32>
    %150 = arith.divf %148, %149 : vector<8x256xf32>
    %151 = vector.extract_strided_slice %150 {offsets = [0, 0], sizes = [8, 128], strides = [1, 1]} : vector<8x256xf32> to vector<8x128xf32>
    %152 = vector.extract_strided_slice %150 {offsets = [0, 128], sizes = [8, 128], strides = [1, 1]} : vector<8x256xf32> to vector<8x128xf32>
    %153 = vector.extract_strided_slice %144 {offsets = [0, 256], sizes = [8, 128], strides = [1, 1]} : vector<8x512xf32> to vector<8x128xf32>
    %154 = math.tanh %153 : vector<8x128xf32>
    %155 = vector.extract_strided_slice %144 {offsets = [0, 384], sizes = [8, 128], strides = [1, 1]} : vector<8x512xf32> to vector<8x128xf32>
    %156 = arith.negf %155 : vector<8x128xf32>
    %157 = math.exp %156 : vector<8x128xf32>
    %cst_49 = arith.constant 1.000000e+00 : f32
    %158 = vector.broadcast %cst_49 : f32 to vector<8x128xf32>
    %159 = arith.addf %158, %157 : vector<8x128xf32>
    %160 = arith.divf %158, %159 : vector<8x128xf32>
    %161 = arith.mulf %152, %132 : vector<8x128xf32>
    %162 = arith.mulf %151, %154 : vector<8x128xf32>
    %163 = arith.addf %161, %162 : vector<8x128xf32>
    %164 = math.tanh %163 : vector<8x128xf32>
    %165 = arith.mulf %160, %164 : vector<8x128xf32>
    %166 = arith.index_cast %c4_i32 : i32 to index
    %c0_50 = arith.constant 0 : index
    %c0_51 = arith.constant 0 : index
    %167 = vector.load %arg20[%166, %c0_50, %c0_51] : memref<8x8x128xf32, #tpu.memory_space<vmem>>, vector<1x8x128xf32>
    %168 = vector.shape_cast %167 : vector<1x8x128xf32> to vector<8x128xf32>
    %169 = vector.shape_cast %165 : vector<8x128xf32> to vector<1x8x128xf32>
    tpu.vector_store %arg20[%166, %c0_50, %c0_51], %169 {strides = array<i32>} : memref<8x8x128xf32, #tpu.memory_space<vmem>>, vector<1x8x128xf32>,
    %c5_i32 = arith.constant 5 : i32
    %170 = arith.index_cast %c5_i32 : i32 to index
    %c0_52 = arith.constant 0 : index
    %c0_53 = arith.constant 0 : index
    %171 = vector.load %arg19[%170, %c0_52, %c0_53] : memref<8x8x512xf32, #tpu.memory_space<vmem>>, vector<1x8x512xf32>
    %172 = vector.shape_cast %171 : vector<1x8x512xf32> to vector<8x512xf32>
    %173 = arith.truncf %165 : vector<8x128xf32> to vector<8x128xbf16>
    %cst_54 = arith.constant dense<0.000000e+00> : vector<8x512xf32>
    %174 = tpu.matmul %173, %1, %cst_54 {dimension_numbers = #tpu.dot_dimension_numbers<[1], [0], [0], [1], [0, 0, 1, 1], [], []>} : vector<8x128xbf16>, vector<128x512xbf16>, vector<8x512xf32> -> vector<8x512xf32>
    %175 = arith.addf %172, %174 : vector<8x512xf32>
    %176 = vector.extract_strided_slice %175 {offsets = [0, 0], sizes = [8, 256], strides = [1, 1]} : vector<8x512xf32> to vector<8x256xf32>
    %177 = arith.negf %176 : vector<8x256xf32>
    %178 = math.exp %177 : vector<8x256xf32>
    %cst_55 = arith.constant 1.000000e+00 : f32
    %179 = vector.broadcast %cst_55 : f32 to vector<8x256xf32>
    %180 = arith.addf %179, %178 : vector<8x256xf32>
    %181 = arith.divf %179, %180 : vector<8x256xf32>
    %182 = vector.extract_strided_slice %181 {offsets = [0, 0], sizes = [8, 128], strides = [1, 1]} : vector<8x256xf32> to vector<8x128xf32>
    %183 = vector.extract_strided_slice %181 {offsets = [0, 128], sizes = [8, 128], strides = [1, 1]} : vector<8x256xf32> to vector<8x128xf32>
    %184 = vector.extract_strided_slice %175 {offsets = [0, 256], sizes = [8, 128], strides = [1, 1]} : vector<8x512xf32> to vector<8x128xf32>
    %185 = math.tanh %184 : vector<8x128xf32>
    %186 = vector.extract_strided_slice %175 {offsets = [0, 384], sizes = [8, 128], strides = [1, 1]} : vector<8x512xf32> to vector<8x128xf32>
    %187 = arith.negf %186 : vector<8x128xf32>
    %188 = math.exp %187 : vector<8x128xf32>
    %cst_56 = arith.constant 1.000000e+00 : f32
    %189 = vector.broadcast %cst_56 : f32 to vector<8x128xf32>
    %190 = arith.addf %189, %188 : vector<8x128xf32>
    %191 = arith.divf %189, %190 : vector<8x128xf32>
    %192 = arith.mulf %183, %163 : vector<8x128xf32>
    %193 = arith.mulf %182, %185 : vector<8x128xf32>
    %194 = arith.addf %192, %193 : vector<8x128xf32>
    %195 = math.tanh %194 : vector<8x128xf32>
    %196 = arith.mulf %191, %195 : vector<8x128xf32>
    %197 = arith.index_cast %c5_i32 : i32 to index
    %c0_57 = arith.constant 0 : index
    %c0_58 = arith.constant 0 : index
    %198 = vector.load %arg20[%197, %c0_57, %c0_58] : memref<8x8x128xf32, #tpu.memory_space<vmem>>, vector<1x8x128xf32>
    %199 = vector.shape_cast %198 : vector<1x8x128xf32> to vector<8x128xf32>
    %200 = vector.shape_cast %196 : vector<8x128xf32> to vector<1x8x128xf32>
    tpu.vector_store %arg20[%197, %c0_57, %c0_58], %200 {strides = array<i32>} : memref<8x8x128xf32, #tpu.memory_space<vmem>>, vector<1x8x128xf32>,
    %c6_i32 = arith.constant 6 : i32
    %201 = arith.index_cast %c6_i32 : i32 to index
    %c0_59 = arith.constant 0 : index
    %c0_60 = arith.constant 0 : index
    %202 = vector.load %arg19[%201, %c0_59, %c0_60] : memref<8x8x512xf32, #tpu.memory_space<vmem>>, vector<1x8x512xf32>
    %203 = vector.shape_cast %202 : vector<1x8x512xf32> to vector<8x512xf32>
    %204 = arith.truncf %196 : vector<8x128xf32> to vector<8x128xbf16>
    %cst_61 = arith.constant dense<0.000000e+00> : vector<8x512xf32>
    %205 = tpu.matmul %204, %1, %cst_61 {dimension_numbers = #tpu.dot_dimension_numbers<[1], [0], [0], [1], [0, 0, 1, 1], [], []>} : vector<8x128xbf16>, vector<128x512xbf16>, vector<8x512xf32> -> vector<8x512xf32>
    %206 = arith.addf %203, %205 : vector<8x512xf32>
    %207 = vector.extract_strided_slice %206 {offsets = [0, 0], sizes = [8, 256], strides = [1, 1]} : vector<8x512xf32> to vector<8x256xf32>
    %208 = arith.negf %207 : vector<8x256xf32>
    %209 = math.exp %208 : vector<8x256xf32>
    %cst_62 = arith.constant 1.000000e+00 : f32
    %210 = vector.broadcast %cst_62 : f32 to vector<8x256xf32>
    %211 = arith.addf %210, %209 : vector<8x256xf32>
    %212 = arith.divf %210, %211 : vector<8x256xf32>
    %213 = vector.extract_strided_slice %212 {offsets = [0, 0], sizes = [8, 128], strides = [1, 1]} : vector<8x256xf32> to vector<8x128xf32>
    %214 = vector.extract_strided_slice %212 {offsets = [0, 128], sizes = [8, 128], strides = [1, 1]} : vector<8x256xf32> to vector<8x128xf32>
    %215 = vector.extract_strided_slice %206 {offsets = [0, 256], sizes = [8, 128], strides = [1, 1]} : vector<8x512xf32> to vector<8x128xf32>
    %216 = math.tanh %215 : vector<8x128xf32>
    %217 = vector.extract_strided_slice %206 {offsets = [0, 384], sizes = [8, 128], strides = [1, 1]} : vector<8x512xf32> to vector<8x128xf32>
    %218 = arith.negf %217 : vector<8x128xf32>
    %219 = math.exp %218 : vector<8x128xf32>
    %cst_63 = arith.constant 1.000000e+00 : f32
    %220 = vector.broadcast %cst_63 : f32 to vector<8x128xf32>
    %221 = arith.addf %220, %219 : vector<8x128xf32>
    %222 = arith.divf %220, %221 : vector<8x128xf32>
    %223 = arith.mulf %214, %194 : vector<8x128xf32>
    %224 = arith.mulf %213, %216 : vector<8x128xf32>
    %225 = arith.addf %223, %224 : vector<8x128xf32>
    %226 = math.tanh %225 : vector<8x128xf32>
    %227 = arith.mulf %222, %226 : vector<8x128xf32>
    %228 = arith.index_cast %c6_i32 : i32 to index
    %c0_64 = arith.constant 0 : index
    %c0_65 = arith.constant 0 : index
    %229 = vector.load %arg20[%228, %c0_64, %c0_65] : memref<8x8x128xf32, #tpu.memory_space<vmem>>, vector<1x8x128xf32>
    %230 = vector.shape_cast %229 : vector<1x8x128xf32> to vector<8x128xf32>
    %231 = vector.shape_cast %227 : vector<8x128xf32> to vector<1x8x128xf32>
    tpu.vector_store %arg20[%228, %c0_64, %c0_65], %231 {strides = array<i32>} : memref<8x8x128xf32, #tpu.memory_space<vmem>>, vector<1x8x128xf32>,
    %c7_i32 = arith.constant 7 : i32
    %232 = arith.index_cast %c7_i32 : i32 to index
    %c0_66 = arith.constant 0 : index
    %c0_67 = arith.constant 0 : index
    %233 = vector.load %arg19[%232, %c0_66, %c0_67] : memref<8x8x512xf32, #tpu.memory_space<vmem>>, vector<1x8x512xf32>
    %234 = vector.shape_cast %233 : vector<1x8x512xf32> to vector<8x512xf32>
    %235 = arith.truncf %227 : vector<8x128xf32> to vector<8x128xbf16>
    %cst_68 = arith.constant dense<0.000000e+00> : vector<8x512xf32>
    %236 = tpu.matmul %235, %1, %cst_68 {dimension_numbers = #tpu.dot_dimension_numbers<[1], [0], [0], [1], [0, 0, 1, 1], [], []>} : vector<8x128xbf16>, vector<128x512xbf16>, vector<8x512xf32> -> vector<8x512xf32>
    %237 = arith.addf %234, %236 : vector<8x512xf32>
    %238 = vector.extract_strided_slice %237 {offsets = [0, 0], sizes = [8, 256], strides = [1, 1]} : vector<8x512xf32> to vector<8x256xf32>
    %239 = arith.negf %238 : vector<8x256xf32>
    %240 = math.exp %239 : vector<8x256xf32>
    %cst_69 = arith.constant 1.000000e+00 : f32
    %241 = vector.broadcast %cst_69 : f32 to vector<8x256xf32>
    %242 = arith.addf %241, %240 : vector<8x256xf32>
    %243 = arith.divf %241, %242 : vector<8x256xf32>
    %244 = vector.extract_strided_slice %243 {offsets = [0, 0], sizes = [8, 128], strides = [1, 1]} : vector<8x256xf32> to vector<8x128xf32>
    %245 = vector.extract_strided_slice %243 {offsets = [0, 128], sizes = [8, 128], strides = [1, 1]} : vector<8x256xf32> to vector<8x128xf32>
    %246 = vector.extract_strided_slice %237 {offsets = [0, 256], sizes = [8, 128], strides = [1, 1]} : vector<8x512xf32> to vector<8x128xf32>
    %247 = math.tanh %246 : vector<8x128xf32>
    %248 = vector.extract_strided_slice %237 {offsets = [0, 384], sizes = [8, 128], strides = [1, 1]} : vector<8x512xf32> to vector<8x128xf32>
    %249 = arith.negf %248 : vector<8x128xf32>
    %250 = math.exp %249 : vector<8x128xf32>
    %cst_70 = arith.constant 1.000000e+00 : f32
    %251 = vector.broadcast %cst_70 : f32 to vector<8x128xf32>
    %252 = arith.addf %251, %250 : vector<8x128xf32>
    %253 = arith.divf %251, %252 : vector<8x128xf32>
    %254 = arith.mulf %245, %225 : vector<8x128xf32>
    %255 = arith.mulf %244, %247 : vector<8x128xf32>
    %256 = arith.addf %254, %255 : vector<8x128xf32>
    %257 = math.tanh %256 : vector<8x128xf32>
    %258 = arith.mulf %253, %257 : vector<8x128xf32>
    %259 = arith.index_cast %c7_i32 : i32 to index
    %c0_71 = arith.constant 0 : index
    %c0_72 = arith.constant 0 : index
    %260 = vector.load %arg20[%259, %c0_71, %c0_72] : memref<8x8x128xf32, #tpu.memory_space<vmem>>, vector<1x8x128xf32>
    %261 = vector.shape_cast %260 : vector<1x8x128xf32> to vector<8x128xf32>
    %262 = vector.shape_cast %258 : vector<8x128xf32> to vector<1x8x128xf32>
    tpu.vector_store %arg20[%259, %c0_71, %c0_72], %262 {strides = array<i32>} : memref<8x8x128xf32, #tpu.memory_space<vmem>>, vector<1x8x128xf32>,
    %c8_i32 = arith.constant 8 : i32
    %c0_73 = arith.constant 0 : index
    %c0_74 = arith.constant 0 : index
    %c0_75 = arith.constant 0 : index
    %263 = vector.load %arg17[%c0_73, %c0_74, %c0_75] : memref<2x8x128xf32, #tpu.memory_space<vmem>>, vector<1x8x128xf32>
    %264 = vector.shape_cast %263 : vector<1x8x128xf32> to vector<8x128xf32>
    %265 = vector.shape_cast %258 : vector<8x128xf32> to vector<1x8x128xf32>
    tpu.vector_store %arg17[%c0_73, %c0_74, %c0_75], %265 {strides = array<i32>} : memref<2x8x128xf32, #tpu.memory_space<vmem>>, vector<1x8x128xf32>,
    %c0_76 = arith.constant 0 : index
    %c0_77 = arith.constant 0 : index
    %c0_78 = arith.constant 0 : index
    %266 = vector.load %arg18[%c0_76, %c0_77, %c0_78] : memref<2x8x128xf32, #tpu.memory_space<vmem>>, vector<1x8x128xf32>
    %267 = vector.shape_cast %266 : vector<1x8x128xf32> to vector<8x128xf32>
    %268 = vector.shape_cast %256 : vector<8x128xf32> to vector<1x8x128xf32>
    tpu.vector_store %arg18[%c0_76, %c0_77, %c0_78], %268 {strides = array<i32>} : memref<2x8x128xf32, #tpu.memory_space<vmem>>, vector<1x8x128xf32>,
    %c0_79 = arith.constant 0 : index
    %c0_80 = arith.constant 0 : index
    %269 = vector.load %arg7[%c0_79, %c0_80] : memref<128x512xbf16, #tpu.memory_space<vmem>>, vector<128x512xbf16>
    %c0_81 = arith.constant 0 : index
    %c0_82 = arith.constant 0 : index
    %270 = vector.load %arg8[%c0_81, %c0_82] : memref<128x512xbf16, #tpu.memory_space<vmem>>, vector<128x512xbf16>
    %c0_83 = arith.constant 0 : index
    %c0_84 = arith.constant 0 : index
    %271 = vector.load %arg9[%c0_83, %c0_84] : memref<1x512xf32, #tpu.memory_space<vmem>>, vector<1x512xf32>
    %c0_85 = arith.constant 0 : index
    %c0_86 = arith.constant 0 : index
    %c0_87 = arith.constant 0 : index
    %272 = vector.load %arg20[%c0_85, %c0_86, %c0_87] : memref<8x8x128xf32, #tpu.memory_space<vmem>>, vector<8x8x128xf32>
    %273 = vector.shape_cast %272 : vector<8x8x128xf32> to vector<64x128xf32>
    %274 = arith.truncf %273 : vector<64x128xf32> to vector<64x128xbf16>
    %cst_88 = arith.constant dense<0.000000e+00> : vector<64x512xf32>
    %275 = tpu.matmul %274, %269, %cst_88 {dimension_numbers = #tpu.dot_dimension_numbers<[1], [0], [0], [1], [0, 0, 1, 1], [], []>} : vector<64x128xbf16>, vector<128x512xbf16>, vector<64x512xf32> -> vector<64x512xf32>
    %276 = vector.broadcast %271 : vector<1x512xf32> to vector<64x512xf32>
    %277 = arith.addf %275, %276 : vector<64x512xf32>
    %278 = vector.shape_cast %277 : vector<64x512xf32> to vector<8x8x512xf32>
    %c0_89 = arith.constant 0 : index
    %c0_90 = arith.constant 0 : index
    %c0_91 = arith.constant 0 : index
    %279 = vector.load %arg19[%c0_89, %c0_90, %c0_91] : memref<8x8x512xf32, #tpu.memory_space<vmem>>, vector<8x8x512xf32>
    tpu.vector_store %arg19[%c0_89, %c0_90, %c0_91], %278 {strides = array<i32>} : memref<8x8x512xf32, #tpu.memory_space<vmem>>, vector<8x8x512xf32>,
    %c1 = arith.constant 1 : index
    %c0_92 = arith.constant 0 : index
    %c0_93 = arith.constant 0 : index
    %280 = vector.load %arg2[%c1, %c0_92, %c0_93] : memref<2x8x128xf32, #tpu.memory_space<vmem>>, vector<1x8x128xf32>
    %281 = vector.shape_cast %280 : vector<1x8x128xf32> to vector<8x128xf32>
    %c1_94 = arith.constant 1 : index
    %c0_95 = arith.constant 0 : index
    %c0_96 = arith.constant 0 : index
    %282 = vector.load %arg3[%c1_94, %c0_95, %c0_96] : memref<2x8x128xf32, #tpu.memory_space<vmem>>, vector<1x8x128xf32>
    %283 = vector.shape_cast %282 : vector<1x8x128xf32> to vector<8x128xf32>
    %c0_i32_97 = arith.constant 0 : i32
    %284 = arith.index_cast %c0_i32_97 : i32 to index
    %c0_98 = arith.constant 0 : index
    %c0_99 = arith.constant 0 : index
    %285 = vector.load %arg19[%284, %c0_98, %c0_99] : memref<8x8x512xf32, #tpu.memory_space<vmem>>, vector<1x8x512xf32>
    %286 = vector.shape_cast %285 : vector<1x8x512xf32> to vector<8x512xf32>
    %287 = arith.truncf %281 : vector<8x128xf32> to vector<8x128xbf16>
    %cst_100 = arith.constant dense<0.000000e+00> : vector<8x512xf32>
    %288 = tpu.matmul %287, %270, %cst_100 {dimension_numbers = #tpu.dot_dimension_numbers<[1], [0], [0], [1], [0, 0, 1, 1], [], []>} : vector<8x128xbf16>, vector<128x512xbf16>, vector<8x512xf32> -> vector<8x512xf32>
    %289 = arith.addf %286, %288 : vector<8x512xf32>
    %290 = vector.extract_strided_slice %289 {offsets = [0, 0], sizes = [8, 256], strides = [1, 1]} : vector<8x512xf32> to vector<8x256xf32>
    %291 = arith.negf %290 : vector<8x256xf32>
    %292 = math.exp %291 : vector<8x256xf32>
    %cst_101 = arith.constant 1.000000e+00 : f32
    %293 = vector.broadcast %cst_101 : f32 to vector<8x256xf32>
    %294 = arith.addf %293, %292 : vector<8x256xf32>
    %295 = arith.divf %293, %294 : vector<8x256xf32>
    %296 = vector.extract_strided_slice %295 {offsets = [0, 0], sizes = [8, 128], strides = [1, 1]} : vector<8x256xf32> to vector<8x128xf32>
    %297 = vector.extract_strided_slice %295 {offsets = [0, 128], sizes = [8, 128], strides = [1, 1]} : vector<8x256xf32> to vector<8x128xf32>
    %298 = vector.extract_strided_slice %289 {offsets = [0, 256], sizes = [8, 128], strides = [1, 1]} : vector<8x512xf32> to vector<8x128xf32>
    %299 = math.tanh %298 : vector<8x128xf32>
    %300 = vector.extract_strided_slice %289 {offsets = [0, 384], sizes = [8, 128], strides = [1, 1]} : vector<8x512xf32> to vector<8x128xf32>
    %301 = arith.negf %300 : vector<8x128xf32>
    %302 = math.exp %301 : vector<8x128xf32>
    %cst_102 = arith.constant 1.000000e+00 : f32
    %303 = vector.broadcast %cst_102 : f32 to vector<8x128xf32>
    %304 = arith.addf %303, %302 : vector<8x128xf32>
    %305 = arith.divf %303, %304 : vector<8x128xf32>
    %306 = arith.mulf %297, %283 : vector<8x128xf32>
    %307 = arith.mulf %296, %299 : vector<8x128xf32>
    %308 = arith.addf %306, %307 : vector<8x128xf32>
    %309 = math.tanh %308 : vector<8x128xf32>
    %310 = arith.mulf %305, %309 : vector<8x128xf32>
    %311 = arith.index_cast %c0_i32_97 : i32 to index
    %c0_103 = arith.constant 0 : index
    %c0_104 = arith.constant 0 : index
    %312 = vector.load %arg20[%311, %c0_103, %c0_104] : memref<8x8x128xf32, #tpu.memory_space<vmem>>, vector<1x8x128xf32>
    %313 = vector.shape_cast %312 : vector<1x8x128xf32> to vector<8x128xf32>
    %314 = vector.shape_cast %310 : vector<8x128xf32> to vector<1x8x128xf32>
    tpu.vector_store %arg20[%311, %c0_103, %c0_104], %314 {strides = array<i32>} : memref<8x8x128xf32, #tpu.memory_space<vmem>>, vector<1x8x128xf32>,
    %c1_i32_105 = arith.constant 1 : i32
    %315 = arith.index_cast %c1_i32_105 : i32 to index
    %c0_106 = arith.constant 0 : index
    %c0_107 = arith.constant 0 : index
    %316 = vector.load %arg19[%315, %c0_106, %c0_107] : memref<8x8x512xf32, #tpu.memory_space<vmem>>, vector<1x8x512xf32>
    %317 = vector.shape_cast %316 : vector<1x8x512xf32> to vector<8x512xf32>
    %318 = arith.truncf %310 : vector<8x128xf32> to vector<8x128xbf16>
    %cst_108 = arith.constant dense<0.000000e+00> : vector<8x512xf32>
    %319 = tpu.matmul %318, %270, %cst_108 {dimension_numbers = #tpu.dot_dimension_numbers<[1], [0], [0], [1], [0, 0, 1, 1], [], []>} : vector<8x128xbf16>, vector<128x512xbf16>, vector<8x512xf32> -> vector<8x512xf32>
    %320 = arith.addf %317, %319 : vector<8x512xf32>
    %321 = vector.extract_strided_slice %320 {offsets = [0, 0], sizes = [8, 256], strides = [1, 1]} : vector<8x512xf32> to vector<8x256xf32>
    %322 = arith.negf %321 : vector<8x256xf32>
    %323 = math.exp %322 : vector<8x256xf32>
    %cst_109 = arith.constant 1.000000e+00 : f32
    %324 = vector.broadcast %cst_109 : f32 to vector<8x256xf32>
    %325 = arith.addf %324, %323 : vector<8x256xf32>
    %326 = arith.divf %324, %325 : vector<8x256xf32>
    %327 = vector.extract_strided_slice %326 {offsets = [0, 0], sizes = [8, 128], strides = [1, 1]} : vector<8x256xf32> to vector<8x128xf32>
    %328 = vector.extract_strided_slice %326 {offsets = [0, 128], sizes = [8, 128], strides = [1, 1]} : vector<8x256xf32> to vector<8x128xf32>
    %329 = vector.extract_strided_slice %320 {offsets = [0, 256], sizes = [8, 128], strides = [1, 1]} : vector<8x512xf32> to vector<8x128xf32>
    %330 = math.tanh %329 : vector<8x128xf32>
    %331 = vector.extract_strided_slice %320 {offsets = [0, 384], sizes = [8, 128], strides = [1, 1]} : vector<8x512xf32> to vector<8x128xf32>
    %332 = arith.negf %331 : vector<8x128xf32>
    %333 = math.exp %332 : vector<8x128xf32>
    %cst_110 = arith.constant 1.000000e+00 : f32
    %334 = vector.broadcast %cst_110 : f32 to vector<8x128xf32>
    %335 = arith.addf %334, %333 : vector<8x128xf32>
    %336 = arith.divf %334, %335 : vector<8x128xf32>
    %337 = arith.mulf %328, %308 : vector<8x128xf32>
    %338 = arith.mulf %327, %330 : vector<8x128xf32>
    %339 = arith.addf %337, %338 : vector<8x128xf32>
    %340 = math.tanh %339 : vector<8x128xf32>
    %341 = arith.mulf %336, %340 : vector<8x128xf32>
    %342 = arith.index_cast %c1_i32_105 : i32 to index
    %c0_111 = arith.constant 0 : index
    %c0_112 = arith.constant 0 : index
    %343 = vector.load %arg20[%342, %c0_111, %c0_112] : memref<8x8x128xf32, #tpu.memory_space<vmem>>, vector<1x8x128xf32>
    %344 = vector.shape_cast %343 : vector<1x8x128xf32> to vector<8x128xf32>
    %345 = vector.shape_cast %341 : vector<8x128xf32> to vector<1x8x128xf32>
    tpu.vector_store %arg20[%342, %c0_111, %c0_112], %345 {strides = array<i32>} : memref<8x8x128xf32, #tpu.memory_space<vmem>>, vector<1x8x128xf32>,
    %c2_i32_113 = arith.constant 2 : i32
    %346 = arith.index_cast %c2_i32_113 : i32 to index
    %c0_114 = arith.constant 0 : index
    %c0_115 = arith.constant 0 : index
    %347 = vector.load %arg19[%346, %c0_114, %c0_115] : memref<8x8x512xf32, #tpu.memory_space<vmem>>, vector<1x8x512xf32>
    %348 = vector.shape_cast %347 : vector<1x8x512xf32> to vector<8x512xf32>
    %349 = arith.truncf %341 : vector<8x128xf32> to vector<8x128xbf16>
    %cst_116 = arith.constant dense<0.000000e+00> : vector<8x512xf32>
    %350 = tpu.matmul %349, %270, %cst_116 {dimension_numbers = #tpu.dot_dimension_numbers<[1], [0], [0], [1], [0, 0, 1, 1], [], []>} : vector<8x128xbf16>, vector<128x512xbf16>, vector<8x512xf32> -> vector<8x512xf32>
    %351 = arith.addf %348, %350 : vector<8x512xf32>
    %352 = vector.extract_strided_slice %351 {offsets = [0, 0], sizes = [8, 256], strides = [1, 1]} : vector<8x512xf32> to vector<8x256xf32>
    %353 = arith.negf %352 : vector<8x256xf32>
    %354 = math.exp %353 : vector<8x256xf32>
    %cst_117 = arith.constant 1.000000e+00 : f32
    %355 = vector.broadcast %cst_117 : f32 to vector<8x256xf32>
    %356 = arith.addf %355, %354 : vector<8x256xf32>
    %357 = arith.divf %355, %356 : vector<8x256xf32>
    %358 = vector.extract_strided_slice %357 {offsets = [0, 0], sizes = [8, 128], strides = [1, 1]} : vector<8x256xf32> to vector<8x128xf32>
    %359 = vector.extract_strided_slice %357 {offsets = [0, 128], sizes = [8, 128], strides = [1, 1]} : vector<8x256xf32> to vector<8x128xf32>
    %360 = vector.extract_strided_slice %351 {offsets = [0, 256], sizes = [8, 128], strides = [1, 1]} : vector<8x512xf32> to vector<8x128xf32>
    %361 = math.tanh %360 : vector<8x128xf32>
    %362 = vector.extract_strided_slice %351 {offsets = [0, 384], sizes = [8, 128], strides = [1, 1]} : vector<8x512xf32> to vector<8x128xf32>
    %363 = arith.negf %362 : vector<8x128xf32>
    %364 = math.exp %363 : vector<8x128xf32>
    %cst_118 = arith.constant 1.000000e+00 : f32
    %365 = vector.broadcast %cst_118 : f32 to vector<8x128xf32>
    %366 = arith.addf %365, %364 : vector<8x128xf32>
    %367 = arith.divf %365, %366 : vector<8x128xf32>
    %368 = arith.mulf %359, %339 : vector<8x128xf32>
    %369 = arith.mulf %358, %361 : vector<8x128xf32>
    %370 = arith.addf %368, %369 : vector<8x128xf32>
    %371 = math.tanh %370 : vector<8x128xf32>
    %372 = arith.mulf %367, %371 : vector<8x128xf32>
    %373 = arith.index_cast %c2_i32_113 : i32 to index
    %c0_119 = arith.constant 0 : index
    %c0_120 = arith.constant 0 : index
    %374 = vector.load %arg20[%373, %c0_119, %c0_120] : memref<8x8x128xf32, #tpu.memory_space<vmem>>, vector<1x8x128xf32>
    %375 = vector.shape_cast %374 : vector<1x8x128xf32> to vector<8x128xf32>
    %376 = vector.shape_cast %372 : vector<8x128xf32> to vector<1x8x128xf32>
    tpu.vector_store %arg20[%373, %c0_119, %c0_120], %376 {strides = array<i32>} : memref<8x8x128xf32, #tpu.memory_space<vmem>>, vector<1x8x128xf32>,
    %c3_i32_121 = arith.constant 3 : i32
    %377 = arith.index_cast %c3_i32_121 : i32 to index
    %c0_122 = arith.constant 0 : index
    %c0_123 = arith.constant 0 : index
    %378 = vector.load %arg19[%377, %c0_122, %c0_123] : memref<8x8x512xf32, #tpu.memory_space<vmem>>, vector<1x8x512xf32>
    %379 = vector.shape_cast %378 : vector<1x8x512xf32> to vector<8x512xf32>
    %380 = arith.truncf %372 : vector<8x128xf32> to vector<8x128xbf16>
    %cst_124 = arith.constant dense<0.000000e+00> : vector<8x512xf32>
    %381 = tpu.matmul %380, %270, %cst_124 {dimension_numbers = #tpu.dot_dimension_numbers<[1], [0], [0], [1], [0, 0, 1, 1], [], []>} : vector<8x128xbf16>, vector<128x512xbf16>, vector<8x512xf32> -> vector<8x512xf32>
    %382 = arith.addf %379, %381 : vector<8x512xf32>
    %383 = vector.extract_strided_slice %382 {offsets = [0, 0], sizes = [8, 256], strides = [1, 1]} : vector<8x512xf32> to vector<8x256xf32>
    %384 = arith.negf %383 : vector<8x256xf32>
    %385 = math.exp %384 : vector<8x256xf32>
    %cst_125 = arith.constant 1.000000e+00 : f32
    %386 = vector.broadcast %cst_125 : f32 to vector<8x256xf32>
    %387 = arith.addf %386, %385 : vector<8x256xf32>
    %388 = arith.divf %386, %387 : vector<8x256xf32>
    %389 = vector.extract_strided_slice %388 {offsets = [0, 0], sizes = [8, 128], strides = [1, 1]} : vector<8x256xf32> to vector<8x128xf32>
    %390 = vector.extract_strided_slice %388 {offsets = [0, 128], sizes = [8, 128], strides = [1, 1]} : vector<8x256xf32> to vector<8x128xf32>
    %391 = vector.extract_strided_slice %382 {offsets = [0, 256], sizes = [8, 128], strides = [1, 1]} : vector<8x512xf32> to vector<8x128xf32>
    %392 = math.tanh %391 : vector<8x128xf32>
    %393 = vector.extract_strided_slice %382 {offsets = [0, 384], sizes = [8, 128], strides = [1, 1]} : vector<8x512xf32> to vector<8x128xf32>
    %394 = arith.negf %393 : vector<8x128xf32>
    %395 = math.exp %394 : vector<8x128xf32>
    %cst_126 = arith.constant 1.000000e+00 : f32
    %396 = vector.broadcast %cst_126 : f32 to vector<8x128xf32>
    %397 = arith.addf %396, %395 : vector<8x128xf32>
    %398 = arith.divf %396, %397 : vector<8x128xf32>
    %399 = arith.mulf %390, %370 : vector<8x128xf32>
    %400 = arith.mulf %389, %392 : vector<8x128xf32>
    %401 = arith.addf %399, %400 : vector<8x128xf32>
    %402 = math.tanh %401 : vector<8x128xf32>
    %403 = arith.mulf %398, %402 : vector<8x128xf32>
    %404 = arith.index_cast %c3_i32_121 : i32 to index
    %c0_127 = arith.constant 0 : index
    %c0_128 = arith.constant 0 : index
    %405 = vector.load %arg20[%404, %c0_127, %c0_128] : memref<8x8x128xf32, #tpu.memory_space<vmem>>, vector<1x8x128xf32>
    %406 = vector.shape_cast %405 : vector<1x8x128xf32> to vector<8x128xf32>
    %407 = vector.shape_cast %403 : vector<8x128xf32> to vector<1x8x128xf32>
    tpu.vector_store %arg20[%404, %c0_127, %c0_128], %407 {strides = array<i32>} : memref<8x8x128xf32, #tpu.memory_space<vmem>>, vector<1x8x128xf32>,
    %c4_i32_129 = arith.constant 4 : i32
    %408 = arith.index_cast %c4_i32_129 : i32 to index
    %c0_130 = arith.constant 0 : index
    %c0_131 = arith.constant 0 : index
    %409 = vector.load %arg19[%408, %c0_130, %c0_131] : memref<8x8x512xf32, #tpu.memory_space<vmem>>, vector<1x8x512xf32>
    %410 = vector.shape_cast %409 : vector<1x8x512xf32> to vector<8x512xf32>
    %411 = arith.truncf %403 : vector<8x128xf32> to vector<8x128xbf16>
    %cst_132 = arith.constant dense<0.000000e+00> : vector<8x512xf32>
    %412 = tpu.matmul %411, %270, %cst_132 {dimension_numbers = #tpu.dot_dimension_numbers<[1], [0], [0], [1], [0, 0, 1, 1], [], []>} : vector<8x128xbf16>, vector<128x512xbf16>, vector<8x512xf32> -> vector<8x512xf32>
    %413 = arith.addf %410, %412 : vector<8x512xf32>
    %414 = vector.extract_strided_slice %413 {offsets = [0, 0], sizes = [8, 256], strides = [1, 1]} : vector<8x512xf32> to vector<8x256xf32>
    %415 = arith.negf %414 : vector<8x256xf32>
    %416 = math.exp %415 : vector<8x256xf32>
    %cst_133 = arith.constant 1.000000e+00 : f32
    %417 = vector.broadcast %cst_133 : f32 to vector<8x256xf32>
    %418 = arith.addf %417, %416 : vector<8x256xf32>
    %419 = arith.divf %417, %418 : vector<8x256xf32>
    %420 = vector.extract_strided_slice %419 {offsets = [0, 0], sizes = [8, 128], strides = [1, 1]} : vector<8x256xf32> to vector<8x128xf32>
    %421 = vector.extract_strided_slice %419 {offsets = [0, 128], sizes = [8, 128], strides = [1, 1]} : vector<8x256xf32> to vector<8x128xf32>
    %422 = vector.extract_strided_slice %413 {offsets = [0, 256], sizes = [8, 128], strides = [1, 1]} : vector<8x512xf32> to vector<8x128xf32>
    %423 = math.tanh %422 : vector<8x128xf32>
    %424 = vector.extract_strided_slice %413 {offsets = [0, 384], sizes = [8, 128], strides = [1, 1]} : vector<8x512xf32> to vector<8x128xf32>
    %425 = arith.negf %424 : vector<8x128xf32>
    %426 = math.exp %425 : vector<8x128xf32>
    %cst_134 = arith.constant 1.000000e+00 : f32
    %427 = vector.broadcast %cst_134 : f32 to vector<8x128xf32>
    %428 = arith.addf %427, %426 : vector<8x128xf32>
    %429 = arith.divf %427, %428 : vector<8x128xf32>
    %430 = arith.mulf %421, %401 : vector<8x128xf32>
    %431 = arith.mulf %420, %423 : vector<8x128xf32>
    %432 = arith.addf %430, %431 : vector<8x128xf32>
    %433 = math.tanh %432 : vector<8x128xf32>
    %434 = arith.mulf %429, %433 : vector<8x128xf32>
    %435 = arith.index_cast %c4_i32_129 : i32 to index
    %c0_135 = arith.constant 0 : index
    %c0_136 = arith.constant 0 : index
    %436 = vector.load %arg20[%435, %c0_135, %c0_136] : memref<8x8x128xf32, #tpu.memory_space<vmem>>, vector<1x8x128xf32>
    %437 = vector.shape_cast %436 : vector<1x8x128xf32> to vector<8x128xf32>
    %438 = vector.shape_cast %434 : vector<8x128xf32> to vector<1x8x128xf32>
    tpu.vector_store %arg20[%435, %c0_135, %c0_136], %438 {strides = array<i32>} : memref<8x8x128xf32, #tpu.memory_space<vmem>>, vector<1x8x128xf32>,
    %c5_i32_137 = arith.constant 5 : i32
    %439 = arith.index_cast %c5_i32_137 : i32 to index
    %c0_138 = arith.constant 0 : index
    %c0_139 = arith.constant 0 : index
    %440 = vector.load %arg19[%439, %c0_138, %c0_139] : memref<8x8x512xf32, #tpu.memory_space<vmem>>, vector<1x8x512xf32>
    %441 = vector.shape_cast %440 : vector<1x8x512xf32> to vector<8x512xf32>
    %442 = arith.truncf %434 : vector<8x128xf32> to vector<8x128xbf16>
    %cst_140 = arith.constant dense<0.000000e+00> : vector<8x512xf32>
    %443 = tpu.matmul %442, %270, %cst_140 {dimension_numbers = #tpu.dot_dimension_numbers<[1], [0], [0], [1], [0, 0, 1, 1], [], []>} : vector<8x128xbf16>, vector<128x512xbf16>, vector<8x512xf32> -> vector<8x512xf32>
    %444 = arith.addf %441, %443 : vector<8x512xf32>
    %445 = vector.extract_strided_slice %444 {offsets = [0, 0], sizes = [8, 256], strides = [1, 1]} : vector<8x512xf32> to vector<8x256xf32>
    %446 = arith.negf %445 : vector<8x256xf32>
    %447 = math.exp %446 : vector<8x256xf32>
    %cst_141 = arith.constant 1.000000e+00 : f32
    %448 = vector.broadcast %cst_141 : f32 to vector<8x256xf32>
    %449 = arith.addf %448, %447 : vector<8x256xf32>
    %450 = arith.divf %448, %449 : vector<8x256xf32>
    %451 = vector.extract_strided_slice %450 {offsets = [0, 0], sizes = [8, 128], strides = [1, 1]} : vector<8x256xf32> to vector<8x128xf32>
    %452 = vector.extract_strided_slice %450 {offsets = [0, 128], sizes = [8, 128], strides = [1, 1]} : vector<8x256xf32> to vector<8x128xf32>
    %453 = vector.extract_strided_slice %444 {offsets = [0, 256], sizes = [8, 128], strides = [1, 1]} : vector<8x512xf32> to vector<8x128xf32>
    %454 = math.tanh %453 : vector<8x128xf32>
    %455 = vector.extract_strided_slice %444 {offsets = [0, 384], sizes = [8, 128], strides = [1, 1]} : vector<8x512xf32> to vector<8x128xf32>
    %456 = arith.negf %455 : vector<8x128xf32>
    %457 = math.exp %456 : vector<8x128xf32>
    %cst_142 = arith.constant 1.000000e+00 : f32
    %458 = vector.broadcast %cst_142 : f32 to vector<8x128xf32>
    %459 = arith.addf %458, %457 : vector<8x128xf32>
    %460 = arith.divf %458, %459 : vector<8x128xf32>
    %461 = arith.mulf %452, %432 : vector<8x128xf32>
    %462 = arith.mulf %451, %454 : vector<8x128xf32>
    %463 = arith.addf %461, %462 : vector<8x128xf32>
    %464 = math.tanh %463 : vector<8x128xf32>
    %465 = arith.mulf %460, %464 : vector<8x128xf32>
    %466 = arith.index_cast %c5_i32_137 : i32 to index
    %c0_143 = arith.constant 0 : index
    %c0_144 = arith.constant 0 : index
    %467 = vector.load %arg20[%466, %c0_143, %c0_144] : memref<8x8x128xf32, #tpu.memory_space<vmem>>, vector<1x8x128xf32>
    %468 = vector.shape_cast %467 : vector<1x8x128xf32> to vector<8x128xf32>
    %469 = vector.shape_cast %465 : vector<8x128xf32> to vector<1x8x128xf32>
    tpu.vector_store %arg20[%466, %c0_143, %c0_144], %469 {strides = array<i32>} : memref<8x8x128xf32, #tpu.memory_space<vmem>>, vector<1x8x128xf32>,
    %c6_i32_145 = arith.constant 6 : i32
    %470 = arith.index_cast %c6_i32_145 : i32 to index
    %c0_146 = arith.constant 0 : index
    %c0_147 = arith.constant 0 : index
    %471 = vector.load %arg19[%470, %c0_146, %c0_147] : memref<8x8x512xf32, #tpu.memory_space<vmem>>, vector<1x8x512xf32>
    %472 = vector.shape_cast %471 : vector<1x8x512xf32> to vector<8x512xf32>
    %473 = arith.truncf %465 : vector<8x128xf32> to vector<8x128xbf16>
    %cst_148 = arith.constant dense<0.000000e+00> : vector<8x512xf32>
    %474 = tpu.matmul %473, %270, %cst_148 {dimension_numbers = #tpu.dot_dimension_numbers<[1], [0], [0], [1], [0, 0, 1, 1], [], []>} : vector<8x128xbf16>, vector<128x512xbf16>, vector<8x512xf32> -> vector<8x512xf32>
    %475 = arith.addf %472, %474 : vector<8x512xf32>
    %476 = vector.extract_strided_slice %475 {offsets = [0, 0], sizes = [8, 256], strides = [1, 1]} : vector<8x512xf32> to vector<8x256xf32>
    %477 = arith.negf %476 : vector<8x256xf32>
    %478 = math.exp %477 : vector<8x256xf32>
    %cst_149 = arith.constant 1.000000e+00 : f32
    %479 = vector.broadcast %cst_149 : f32 to vector<8x256xf32>
    %480 = arith.addf %479, %478 : vector<8x256xf32>
    %481 = arith.divf %479, %480 : vector<8x256xf32>
    %482 = vector.extract_strided_slice %481 {offsets = [0, 0], sizes = [8, 128], strides = [1, 1]} : vector<8x256xf32> to vector<8x128xf32>
    %483 = vector.extract_strided_slice %481 {offsets = [0, 128], sizes = [8, 128], strides = [1, 1]} : vector<8x256xf32> to vector<8x128xf32>
    %484 = vector.extract_strided_slice %475 {offsets = [0, 256], sizes = [8, 128], strides = [1, 1]} : vector<8x512xf32> to vector<8x128xf32>
    %485 = math.tanh %484 : vector<8x128xf32>
    %486 = vector.extract_strided_slice %475 {offsets = [0, 384], sizes = [8, 128], strides = [1, 1]} : vector<8x512xf32> to vector<8x128xf32>
    %487 = arith.negf %486 : vector<8x128xf32>
    %488 = math.exp %487 : vector<8x128xf32>
    %cst_150 = arith.constant 1.000000e+00 : f32
    %489 = vector.broadcast %cst_150 : f32 to vector<8x128xf32>
    %490 = arith.addf %489, %488 : vector<8x128xf32>
    %491 = arith.divf %489, %490 : vector<8x128xf32>
    %492 = arith.mulf %483, %463 : vector<8x128xf32>
    %493 = arith.mulf %482, %485 : vector<8x128xf32>
    %494 = arith.addf %492, %493 : vector<8x128xf32>
    %495 = math.tanh %494 : vector<8x128xf32>
    %496 = arith.mulf %491, %495 : vector<8x128xf32>
    %497 = arith.index_cast %c6_i32_145 : i32 to index
    %c0_151 = arith.constant 0 : index
    %c0_152 = arith.constant 0 : index
    %498 = vector.load %arg20[%497, %c0_151, %c0_152] : memref<8x8x128xf32, #tpu.memory_space<vmem>>, vector<1x8x128xf32>
    %499 = vector.shape_cast %498 : vector<1x8x128xf32> to vector<8x128xf32>
    %500 = vector.shape_cast %496 : vector<8x128xf32> to vector<1x8x128xf32>
    tpu.vector_store %arg20[%497, %c0_151, %c0_152], %500 {strides = array<i32>} : memref<8x8x128xf32, #tpu.memory_space<vmem>>, vector<1x8x128xf32>,
    %c7_i32_153 = arith.constant 7 : i32
    %501 = arith.index_cast %c7_i32_153 : i32 to index
    %c0_154 = arith.constant 0 : index
    %c0_155 = arith.constant 0 : index
    %502 = vector.load %arg19[%501, %c0_154, %c0_155] : memref<8x8x512xf32, #tpu.memory_space<vmem>>, vector<1x8x512xf32>
    %503 = vector.shape_cast %502 : vector<1x8x512xf32> to vector<8x512xf32>
    %504 = arith.truncf %496 : vector<8x128xf32> to vector<8x128xbf16>
    %cst_156 = arith.constant dense<0.000000e+00> : vector<8x512xf32>
    %505 = tpu.matmul %504, %270, %cst_156 {dimension_numbers = #tpu.dot_dimension_numbers<[1], [0], [0], [1], [0, 0, 1, 1], [], []>} : vector<8x128xbf16>, vector<128x512xbf16>, vector<8x512xf32> -> vector<8x512xf32>
    %506 = arith.addf %503, %505 : vector<8x512xf32>
    %507 = vector.extract_strided_slice %506 {offsets = [0, 0], sizes = [8, 256], strides = [1, 1]} : vector<8x512xf32> to vector<8x256xf32>
    %508 = arith.negf %507 : vector<8x256xf32>
    %509 = math.exp %508 : vector<8x256xf32>
    %cst_157 = arith.constant 1.000000e+00 : f32
    %510 = vector.broadcast %cst_157 : f32 to vector<8x256xf32>
    %511 = arith.addf %510, %509 : vector<8x256xf32>
    %512 = arith.divf %510, %511 : vector<8x256xf32>
    %513 = vector.extract_strided_slice %512 {offsets = [0, 0], sizes = [8, 128], strides = [1, 1]} : vector<8x256xf32> to vector<8x128xf32>
    %514 = vector.extract_strided_slice %512 {offsets = [0, 128], sizes = [8, 128], strides = [1, 1]} : vector<8x256xf32> to vector<8x128xf32>
    %515 = vector.extract_strided_slice %506 {offsets = [0, 256], sizes = [8, 128], strides = [1, 1]} : vector<8x512xf32> to vector<8x128xf32>
    %516 = math.tanh %515 : vector<8x128xf32>
    %517 = vector.extract_strided_slice %506 {offsets = [0, 384], sizes = [8, 128], strides = [1, 1]} : vector<8x512xf32> to vector<8x128xf32>
    %518 = arith.negf %517 : vector<8x128xf32>
    %519 = math.exp %518 : vector<8x128xf32>
    %cst_158 = arith.constant 1.000000e+00 : f32
    %520 = vector.broadcast %cst_158 : f32 to vector<8x128xf32>
    %521 = arith.addf %520, %519 : vector<8x128xf32>
    %522 = arith.divf %520, %521 : vector<8x128xf32>
    %523 = arith.mulf %514, %494 : vector<8x128xf32>
    %524 = arith.mulf %513, %516 : vector<8x128xf32>
    %525 = arith.addf %523, %524 : vector<8x128xf32>
    %526 = math.tanh %525 : vector<8x128xf32>
    %527 = arith.mulf %522, %526 : vector<8x128xf32>
    %528 = arith.index_cast %c7_i32_153 : i32 to index
    %c0_159 = arith.constant 0 : index
    %c0_160 = arith.constant 0 : index
    %529 = vector.load %arg20[%528, %c0_159, %c0_160] : memref<8x8x128xf32, #tpu.memory_space<vmem>>, vector<1x8x128xf32>
    %530 = vector.shape_cast %529 : vector<1x8x128xf32> to vector<8x128xf32>
    %531 = vector.shape_cast %527 : vector<8x128xf32> to vector<1x8x128xf32>
    tpu.vector_store %arg20[%528, %c0_159, %c0_160], %531 {strides = array<i32>} : memref<8x8x128xf32, #tpu.memory_space<vmem>>, vector<1x8x128xf32>,
    %c8_i32_161 = arith.constant 8 : i32
    %c1_162 = arith.constant 1 : index
    %c0_163 = arith.constant 0 : index
    %c0_164 = arith.constant 0 : index
    %532 = vector.load %arg17[%c1_162, %c0_163, %c0_164] : memref<2x8x128xf32, #tpu.memory_space<vmem>>, vector<1x8x128xf32>
    %533 = vector.shape_cast %532 : vector<1x8x128xf32> to vector<8x128xf32>
    %534 = vector.shape_cast %527 : vector<8x128xf32> to vector<1x8x128xf32>
    tpu.vector_store %arg17[%c1_162, %c0_163, %c0_164], %534 {strides = array<i32>} : memref<2x8x128xf32, #tpu.memory_space<vmem>>, vector<1x8x128xf32>,
    %c1_165 = arith.constant 1 : index
    %c0_166 = arith.constant 0 : index
    %c0_167 = arith.constant 0 : index
    %535 = vector.load %arg18[%c1_165, %c0_166, %c0_167] : memref<2x8x128xf32, #tpu.memory_space<vmem>>, vector<1x8x128xf32>
    %536 = vector.shape_cast %535 : vector<1x8x128xf32> to vector<8x128xf32>
    %537 = vector.shape_cast %525 : vector<8x128xf32> to vector<1x8x128xf32>
    tpu.vector_store %arg18[%c1_165, %c0_166, %c0_167], %537 {strides = array<i32>} : memref<2x8x128xf32, #tpu.memory_space<vmem>>, vector<1x8x128xf32>,
    %c0_168 = arith.constant 0 : index
    %c0_169 = arith.constant 0 : index
    %c0_170 = arith.constant 0 : index
    %538 = vector.load %arg20[%c0_168, %c0_169, %c0_170] : memref<8x8x128xf32, #tpu.memory_space<vmem>>, vector<8x8x128xf32>
    %539 = vector.shape_cast %538 : vector<8x8x128xf32> to vector<64x128xf32>
    %c0_171 = arith.constant 0 : index
    %c0_172 = arith.constant 0 : index
    %540 = vector.load %arg10[%c0_171, %c0_172] : memref<128x128xbf16, #tpu.memory_space<vmem>>, vector<128x128xbf16>
    %541 = arith.truncf %539 : vector<64x128xf32> to vector<64x128xbf16>
    %cst_173 = arith.constant dense<0.000000e+00> : vector<64x128xf32>
    %542 = tpu.matmul %541, %540, %cst_173 {dimension_numbers = #tpu.dot_dimension_numbers<[1], [0], [0], [1], [0, 0, 1, 1], [], []>} : vector<64x128xbf16>, vector<128x128xbf16>, vector<64x128xf32> -> vector<64x128xf32>
    %c0_174 = arith.constant 0 : index
    %c0_175 = arith.constant 0 : index
    %543 = vector.load %arg11[%c0_174, %c0_175] : memref<1x128xf32, #tpu.memory_space<vmem>>, vector<1x128xf32>
    %544 = vector.broadcast %543 : vector<1x128xf32> to vector<64x128xf32>
    %545 = arith.addf %542, %544 : vector<64x128xf32>
    %c0_176 = arith.constant 0 : index
    %c0_177 = arith.constant 0 : index
    %546 = vector.load %arg12[%c0_176, %c0_177] : memref<128x128xbf16, #tpu.memory_space<vmem>>, vector<128x128xbf16>
    %547 = arith.truncf %545 : vector<64x128xf32> to vector<64x128xbf16>
    %cst_178 = arith.constant dense<0.000000e+00> : vector<64x128xf32>
    %548 = tpu.matmul %547, %546, %cst_178 {dimension_numbers = #tpu.dot_dimension_numbers<[1], [0], [0], [1], [0, 0, 1, 1], [], []>} : vector<64x128xbf16>, vector<128x128xbf16>, vector<64x128xf32> -> vector<64x128xf32>
    %c0_179 = arith.constant 0 : index
    %c0_180 = arith.constant 0 : index
    %549 = vector.load %arg13[%c0_179, %c0_180] : memref<1x128xf32, #tpu.memory_space<vmem>>, vector<1x128xf32>
    %550 = vector.broadcast %549 : vector<1x128xf32> to vector<64x128xf32>
    %551 = arith.addf %548, %550 : vector<64x128xf32>
    %c0_181 = arith.constant 0 : index
    %c0_182 = arith.constant 0 : index
    %552 = vector.load %arg14[%c0_181, %c0_182] : memref<128x128xbf16, #tpu.memory_space<vmem>>, vector<128x128xbf16>
    %553 = arith.truncf %551 : vector<64x128xf32> to vector<64x128xbf16>
    %cst_183 = arith.constant dense<0.000000e+00> : vector<64x128xf32>
    %554 = tpu.matmul %553, %552, %cst_183 {dimension_numbers = #tpu.dot_dimension_numbers<[1], [0], [0], [1], [0, 0, 1, 1], [], []>} : vector<64x128xbf16>, vector<128x128xbf16>, vector<64x128xf32> -> vector<64x128xf32>
    %c0_184 = arith.constant 0 : index
    %c0_185 = arith.constant 0 : index
    %555 = vector.load %arg15[%c0_184, %c0_185] : memref<1x128xf32, #tpu.memory_space<vmem>>, vector<1x128xf32>
    %556 = vector.broadcast %555 : vector<1x128xf32> to vector<64x128xf32>
    %557 = arith.addf %554, %556 : vector<64x128xf32>
    %558 = vector.shape_cast %557 : vector<64x128xf32> to vector<8x8x128xf32>
    %c0_186 = arith.constant 0 : index
    %c0_187 = arith.constant 0 : index
    %c0_188 = arith.constant 0 : index
    %559 = vector.load %arg16[%c0_186, %c0_187, %c0_188] : memref<8x8x128xf32, #tpu.memory_space<vmem>>, vector<8x8x128xf32>
    tpu.vector_store %arg16[%c0_186, %c0_187, %c0_188], %558 {strides = array<i32>} : memref<8x8x128xf32, #tpu.memory_space<vmem>>, vector<8x8x128xf32>,
    return
  }
  func.func @transform_0(%arg0: i32) -> (i32, i32, i32) {
    %c0_i32 = arith.constant 0 : i32
    %c0_i32_0 = arith.constant 0 : i32
    %c0_i32_1 = arith.constant 0 : i32
    return %c0_i32, %arg0, %c0_i32_0 : i32, i32, i32
  }
  func.func @transform_1(%arg0: i32) -> (i32, i32, i32) {
    %c0_i32 = arith.constant 0 : i32
    %c0_i32_0 = arith.constant 0 : i32
    %c0_i32_1 = arith.constant 0 : i32
    return %c0_i32, %arg0, %c0_i32_0 : i32, i32, i32
  }
  func.func @transform_2(%arg0: i32) -> (i32, i32, i32) {
    %c0_i32 = arith.constant 0 : i32
    %c0_i32_0 = arith.constant 0 : i32
    %c0_i32_1 = arith.constant 0 : i32
    return %c0_i32, %arg0, %c0_i32_0 : i32, i32, i32
  }
  func.func @transform_3(%arg0: i32) -> (i32, i32) {
    %c0_i32 = arith.constant 0 : i32
    %c0_i32_0 = arith.constant 0 : i32
    %c0_i32_1 = arith.constant 0 : i32
    return %c0_i32, %c0_i32_0 : i32, i32
  }
  func.func @transform_4(%arg0: i32) -> (i32, i32) {
    %c0_i32 = arith.constant 0 : i32
    %c0_i32_0 = arith.constant 0 : i32
    %c0_i32_1 = arith.constant 0 : i32
    return %c0_i32, %c0_i32_0 : i32, i32
  }
  func.func @transform_5(%arg0: i32) -> (i32, i32) {
    %c0_i32 = arith.constant 0 : i32
    %c0_i32_0 = arith.constant 0 : i32
    %c0_i32_1 = arith.constant 0 : i32
    return %c0_i32, %c0_i32_0 : i32, i32
  }
  func.func @transform_6(%arg0: i32) -> (i32, i32) {
    %c0_i32 = arith.constant 0 : i32
    %c0_i32_0 = arith.constant 0 : i32
    %c0_i32_1 = arith.constant 0 : i32
    return %c0_i32, %c0_i32_0 : i32, i32
  }
  func.func @transform_7(%arg0: i32) -> (i32, i32) {
    %c0_i32 = arith.constant 0 : i32
    %c0_i32_0 = arith.constant 0 : i32
    %c0_i32_1 = arith.constant 0 : i32
    return %c0_i32, %c0_i32_0 : i32, i32
  }
  func.func @transform_8(%arg0: i32) -> (i32, i32) {
    %c0_i32 = arith.constant 0 : i32
    %c0_i32_0 = arith.constant 0 : i32
    %c0_i32_1 = arith.constant 0 : i32
    return %c0_i32, %c0_i32_0 : i32, i32
  }
  func.func @transform_9(%arg0: i32) -> (i32, i32) {
    %c0_i32 = arith.constant 0 : i32
    %c0_i32_0 = arith.constant 0 : i32
    %c0_i32_1 = arith.constant 0 : i32
    return %c0_i32, %c0_i32_0 : i32, i32
  }
  func.func @transform_10(%arg0: i32) -> (i32, i32) {
    %c0_i32 = arith.constant 0 : i32
    %c0_i32_0 = arith.constant 0 : i32
    %c0_i32_1 = arith.constant 0 : i32
    return %c0_i32, %c0_i32_0 : i32, i32
  }
  func.func @transform_11(%arg0: i32) -> (i32, i32) {
    %c0_i32 = arith.constant 0 : i32
    %c0_i32_0 = arith.constant 0 : i32
    %c0_i32_1 = arith.constant 0 : i32
    return %c0_i32, %c0_i32_0 : i32, i32
  }
  func.func @transform_12(%arg0: i32) -> (i32, i32) {
    %c0_i32 = arith.constant 0 : i32
    %c0_i32_0 = arith.constant 0 : i32
    %c0_i32_1 = arith.constant 0 : i32
    return %c0_i32, %c0_i32_0 : i32, i32
  }
  func.func @transform_13(%arg0: i32) -> (i32, i32) {
    %c0_i32 = arith.constant 0 : i32
    %c0_i32_0 = arith.constant 0 : i32
    %c0_i32_1 = arith.constant 0 : i32
    return %c0_i32, %c0_i32_0 : i32, i32
  }
  func.func @transform_14(%arg0: i32) -> (i32, i32) {
    %c0_i32 = arith.constant 0 : i32
    %c0_i32_0 = arith.constant 0 : i32
    %c0_i32_1 = arith.constant 0 : i32
    return %c0_i32, %c0_i32_0 : i32, i32
  }
  func.func @transform_15(%arg0: i32) -> (i32, i32, i32) {
    %c0_i32 = arith.constant 0 : i32
    %c0_i32_0 = arith.constant 0 : i32
    %c0_i32_1 = arith.constant 0 : i32
    return %c0_i32, %arg0, %c0_i32_0 : i32, i32, i32
  }
  func.func @transform_16(%arg0: i32) -> (i32, i32, i32) {
    %c0_i32 = arith.constant 0 : i32
    %c0_i32_0 = arith.constant 0 : i32
    %c0_i32_1 = arith.constant 0 : i32
    return %c0_i32, %arg0, %c0_i32_0 : i32, i32, i32
  }
  func.func @transform_17(%arg0: i32) -> (i32, i32, i32) {
    %c0_i32 = arith.constant 0 : i32
    %c0_i32_0 = arith.constant 0 : i32
    %c0_i32_1 = arith.constant 0 : i32
    return %c0_i32, %arg0, %c0_i32_0 : i32, i32, i32
  }
}

</mosaic_0001>

<bundles_post_ra>
// kernel: char_rnn_forward.1
= control target key start
LH: loop header
LB: loop body
LE: loop exit
PB: predicated region body
PF: predicated region fallthrough
CT: control target
= control target key end

     0   :  { %s6619_s0 = inlined_call_operand.vmem [shape: f32[8,8,128], index: 0, kind: input, shape index: {}]   ;;  %s6620_s1 = inlined_call_operand.vmem [shape: f32[2,8,128], index: 1, kind: input, shape index: {}]   ;;  %s6621_s2 = inlined_call_operand.vmem [shape: f32[2,8,128], index: 2, kind: input, shape index: {}]   ;;  %s6622_s3 = inlined_call_operand.vmem [shape: bf16[128,512], index: 3, kind: input, shape index: {}]   ;;  %s6623_s4 = inlined_call_operand.vmem [shape: bf16[128,512], index: 4, kind: input, shape index: {}]   ;;  %s6624_s5 = inlined_call_operand.vmem [shape: f32[1,512], index: 5, kind: input, shape index: {}]   ;;  %s6625_s6 = inlined_call_operand.vmem [shape: bf16[128,512], index: 6, kind: input, shape index: {}]   ;;  %s6626_s7 = inlined_call_operand.vmem [shape: bf16[128,512], index: 7, kind: input, shape index: {}]   ;;  %s6627_s8 = inlined_call_operand.vmem [shape: f32[1,512], index: 8, kind: input, shape index: {}]   ;;  %s6628_s9 = inlined_call_operand.vmem [shape: bf16[128,128], index: 9, kind: input, shape index: {}]   ;;  %s6629_s10 = inlined_call_operand.vmem [shape: f32[1,128], index: 10, kind: input, shape index: {}]   ;;  %s6630_s11 = inlined_call_operand.vmem [shape: bf16[128,128], index: 11, kind: input, shape index: {}]   ;;  %s6631_s12 = inlined_call_operand.vmem [shape: f32[1,128], index: 12, kind: input, shape index: {}]   ;;  %s6632_s13 = inlined_call_operand.vmem [shape: bf16[128,128], index: 13, kind: input, shape index: {}]   ;;  %s6633_s14 = inlined_call_operand.vmem [shape: f32[1,128], index: 14, kind: input, shape index: {}]   ;;  %s6634_s15 = inlined_call_operand.vmem [shape: f32[8,8,128], index: 15, kind: output, shape index: {0}]   ;;  %s6635_s16 = inlined_call_operand.hbm [shape: f32[2,8,128], index: 16, kind: output, shape index: {1}]   ;;  %s6636_s17 = inlined_call_operand.hbm [shape: f32[2,8,128], index: 17, kind: output, shape index: {2}]  }
   0x1   :  { %6647 = sst [smem:[#allocation33_spill]] %s6619_s0 }
   0x2   :  { %6648 = sst [smem:[#allocation34_spill]] %s6620_s1 }
   0x3   :  { %23 = vsyncpa [#allocation5], 0  ;;  %v3936_v0 = vld [vmem:[%s6622_s3 + $0x4] ss:$16 sps:$4 sm:$0xff]   ;;  %v3938_v1 = vld [vmem:[%s6622_s3 + $0xc] ss:$16 sps:$4 sm:$0xff]  }
   0x4   :  { %v6643_v2 = vmov 0   ;;  %314 = vmatprep.subr.bf16.mxu0 %v3936_v0  ;;  %v3940_v3 = vld [vmem:[%s6622_s3] ss:$16 sps:$4 sm:$0xff]   ;;  %v3941_v4 = vld [vmem:[%s6622_s3 + $0x8] ss:$16 sps:$4 sm:$0xff]   ;;  %387 = vmatprep.subr.bf16.mxu1 %v3938_v1  ;;  %s6649_s0 = sld [smem:[#allocation33_spill]] }
   0x5   :  { %346 = vmatprep.mubr.bf16.mxu0 %v6643_v2  ;;  %419 = vmatprep.mubr.bf16.mxu1 %v6643_v2  ;;  %v3942_v5 = vld [vmem:[%s6622_s3 + $0x24] ss:$16 sps:$4 sm:$0xff]   ;;  %v3944_v6 = vld [vmem:[%s6622_s3 + $0x2c] ss:$16 sps:$4 sm:$0xff]   ;;  %v3946_v7 = vld [vmem:[%s6622_s3 + $0x20] ss:$16 sps:$4 sm:$0xff]  }
   0x6   :  { %315 = vmatpush1.bf16.msra.mxu0 %v3940_v3  ;;  %388 = vmatpush1.bf16.msra.mxu1 %v3941_v4  ;;  %v3947_v8 = vld [vmem:[%s6622_s3 + $0x28] ss:$16 sps:$4 sm:$0xff]   ;;  %v3948_v9 = vld [vmem:[%s6622_s3 + $0x44] ss:$16 sps:$4 sm:$0xff]   ;;  %v3950_v10 = vld [vmem:[%s6622_s3 + $0x4c] ss:$16 sps:$4 sm:$0xff]  }
   0x7   :  { %316 = vmatprep.subr.bf16.mxu0 %v3942_v5  ;;  %389 = vmatprep.subr.bf16.mxu1 %v3944_v6  ;;  %v3952_v11 = vld [vmem:[%s6622_s3 + $0x40] ss:$16 sps:$4 sm:$0xff]   ;;  %v3953_v12 = vld [vmem:[%s6622_s3 + $0x48] ss:$16 sps:$4 sm:$0xff]   ;;  %v3954_v13 = vld [vmem:[%s6622_s3 + $0x64] ss:$16 sps:$4 sm:$0xff]  }
   0x8   :  { %v3956_v14 = vld [vmem:[%s6622_s3 + $0x6c] ss:$16 sps:$4 sm:$0xff]   ;;  %v3958_v15 = vld [vmem:[%s6622_s3 + $0x60] ss:$16 sps:$4 sm:$0xff]   ;;  %v3959_v16 = vld [vmem:[%s6622_s3 + $0x68] ss:$16 sps:$4 sm:$0xff]  }
   0x9   :  { %v3960_v17 = vld [vmem:[%s6622_s3 + $0x84] ss:$16 sps:$4 sm:$0xff]   ;;  %v3962_v18 = vld [vmem:[%s6622_s3 + $0x8c] ss:$16 sps:$4 sm:$0xff]   ;;  %v3964_v19 = vld [vmem:[%s6622_s3 + $0x80] ss:$16 sps:$4 sm:$0xff]  }
   0xa   :  { %317 = vmatpush1.bf16.msra.mxu0 %v3946_v7  ;;  %390 = vmatpush1.bf16.msra.mxu1 %v3947_v8  ;;  %v3965_v20 = vld [vmem:[%s6622_s3 + $0x88] ss:$16 sps:$4 sm:$0xff]   ;;  %v3966_v21 = vld [vmem:[%s6622_s3 + $0xa4] ss:$16 sps:$4 sm:$0xff]   ;;  %v3968_v22 = vld [vmem:[%s6622_s3 + $0xac] ss:$16 sps:$4 sm:$0xff]  }
   0xb   :  { %318 = vmatprep.subr.bf16.mxu0 %v3948_v9  ;;  %391 = vmatprep.subr.bf16.mxu1 %v3950_v10  ;;  %v3970_v23 = vld [vmem:[%s6622_s3 + $0xa0] ss:$16 sps:$4 sm:$0xff]   ;;  %v3971_v24 = vld [vmem:[%s6622_s3 + $0xa8] ss:$16 sps:$4 sm:$0xff]   ;;  %v3972_v25 = vld [vmem:[%s6622_s3 + $0xc4] ss:$16 sps:$4 sm:$0xff]  }
   0xc   :  { %v3974_v26 = vld [vmem:[%s6622_s3 + $0xcc] ss:$16 sps:$4 sm:$0xff]   ;;  %v3976_v27 = vld [vmem:[%s6622_s3 + $0xc0] ss:$16 sps:$4 sm:$0xff]   ;;  %v3977_v28 = vld [vmem:[%s6622_s3 + $0xc8] ss:$16 sps:$4 sm:$0xff]  }
   0xd   :  { %v3978_v29 = vld [vmem:[%s6622_s3 + $0xe4] ss:$16 sps:$4 sm:$0xff]   ;;  %v3980_v30 = vld [vmem:[%s6622_s3 + $0xec] ss:$16 sps:$4 sm:$0xff]   ;;  %v3982_v31 = vld [vmem:[%s6622_s3 + $0xe0] ss:$16 sps:$4 sm:$0xff]  }
   0xe   :  { %319 = vmatpush1.bf16.msra.mxu0 %v3952_v11  ;;  %392 = vmatpush1.bf16.msra.mxu1 %v3953_v12  ;;  %v3983_v32 = vld [vmem:[%s6622_s3 + $0xe8] ss:$16 sps:$4 sm:$0xff]   ;;  %v121_v33 = vld [vmem:[%s6649_s0] sm:$0xff]  ;;  %v4727_v36 = vld [vmem:[%s6623_s4 + $0xc] ss:$16 sps:$4 sm:$0xff]   ;;  %s6650_s20 = sld [smem:[#allocation34_spill]] }
   0xf   :  { %320 = vmatprep.subr.bf16.mxu0 %v3954_v13  ;;  %393 = vmatprep.subr.bf16.mxu1 %v3956_v14  ;;  %v122_v34 = vld [vmem:[%s6649_s0 + $0x8] sm:$0xff]  ;;  %v4722_v35 = vld [vmem:[%s6623_s4 + $0x4] ss:$16 sps:$4 sm:$0xff]   ;;  %v4732_v38 = vld [vmem:[%s6623_s4] ss:$16 sps:$4 sm:$0xff]  }
  0x10   :  { %v129_v37 = vpack.c.bf16 %v122_v34, %v121_v33  ;;  %v4737_v39 = vld [vmem:[%s6623_s4 + $0x8] ss:$16 sps:$4 sm:$0xff]   ;;  %v4744_v40 = vld [vmem:[%s6623_s4 + $0x24] ss:$16 sps:$4 sm:$0xff]   ;;  %v4749_v41 = vld [vmem:[%s6623_s4 + $0x2c] ss:$16 sps:$4 sm:$0xff]  }
  0x11   :  { %v4754_v42 = vld [vmem:[%s6623_s4 + $0x20] ss:$16 sps:$4 sm:$0xff]   ;;  %v4759_v43 = vld [vmem:[%s6623_s4 + $0x28] ss:$16 sps:$4 sm:$0xff]   ;;  %v4772_v46 = vld [vmem:[%s6623_s4 + $0x44] ss:$16 sps:$4 sm:$0xff]  }
  0x12   :  { %321 = vmatpush1.bf16.msra.mxu0 %v3958_v15  ;;  %394 = vmatpush1.bf16.msra.mxu1 %v3959_v16  ;;  %v123_v44 = vld [vmem:[%s6649_s0 + $0x10] sm:$0xff]  ;;  %v124_v45 = vld [vmem:[%s6649_s0 + $0x18] sm:$0xff]  ;;  %v125_v55 = vld [vmem:[%s6649_s0 + $0x20] sm:$0xff] }
  0x13   :  { %322 = vmatprep.subr.bf16.mxu0 %v3960_v17  ;;  %395 = vmatprep.subr.bf16.mxu1 %v3962_v18  ;;  %v4779_v47 = vld [vmem:[%s6623_s4 + $0x4c] ss:$16 sps:$4 sm:$0xff]   ;;  %v130_v48 = vpack.c.bf16 %v124_v45, %v123_v44  ;;  %v4786_v49 = vld [vmem:[%s6623_s4 + $0x40] ss:$16 sps:$4 sm:$0xff]   ;;  %v4791_v50 = vld [vmem:[%s6623_s4 + $0x48] ss:$16 sps:$4 sm:$0xff]  }
  0x14   :  { %v4798_v51 = vld [vmem:[%s6623_s4 + $0x64] ss:$16 sps:$4 sm:$0xff]   ;;  %v4805_v52 = vld [vmem:[%s6623_s4 + $0x6c] ss:$16 sps:$4 sm:$0xff]   ;;  %v4810_v53 = vld [vmem:[%s6623_s4 + $0x60] ss:$16 sps:$4 sm:$0xff]  }
  0x15   :  { %v4815_v54 = vld [vmem:[%s6623_s4 + $0x68] ss:$16 sps:$4 sm:$0xff]   ;;  %v4830_v57 = vld [vmem:[%s6623_s4 + $0x84] ss:$16 sps:$4 sm:$0xff]   ;;  %v4835_v58 = vld [vmem:[%s6623_s4 + $0x8c] ss:$16 sps:$4 sm:$0xff]  }
  0x16   :  { %323 = vmatpush1.bf16.msra.mxu0 %v3964_v19  ;;  %396 = vmatpush1.bf16.msra.mxu1 %v3965_v20  ;;  %v126_v56 = vld [vmem:[%s6649_s0 + $0x28] sm:$0xff]  ;;  %v4842_v59 = vld [vmem:[%s6623_s4 + $0x80] ss:$16 sps:$4 sm:$0xff]   ;;  %v4852_v62 = vld [vmem:[%s6623_s4 + $0xa4] ss:$16 sps:$4 sm:$0xff]  }
  0x17   :  { %324 = vmatprep.subr.bf16.mxu0 %v3966_v21  ;;  %397 = vmatprep.subr.bf16.mxu1 %v3968_v22  ;;  %v4847_v60 = vld [vmem:[%s6623_s4 + $0x88] ss:$16 sps:$4 sm:$0xff]   ;;  %v131_v61 = vpack.c.bf16 %v126_v56, %v125_v55  ;;  %v4857_v63 = vld [vmem:[%s6623_s4 + $0xac] ss:$16 sps:$4 sm:$0xff]   ;;  %v4866_v0 = vld [vmem:[%s6623_s4 + $0xa0] ss:$16 sps:$4 sm:$0xff]  }
  0x18   :  { %v4871_v1 = vld [vmem:[%s6623_s4 + $0xa8] ss:$16 sps:$4 sm:$0xff]   ;;  %v127_v3 = vld [vmem:[%s6649_s0 + $0x30] sm:$0xff]  ;;  %v4887_v6 = vld [vmem:[%s6623_s4 + $0xcc] ss:$16 sps:$4 sm:$0xff]  }
  0x19   :  { %v128_v4 = vld [vmem:[%s6649_s0 + $0x38] sm:$0xff]  ;;  %v4882_v5 = vld [vmem:[%s6623_s4 + $0xc4] ss:$16 sps:$4 sm:$0xff]   ;;  %v4898_v7 = vld [vmem:[%s6623_s4 + $0xc0] ss:$16 sps:$4 sm:$0xff]  }
  0x1a   :  { %325 = vmatpush1.bf16.msra.mxu0 %v3970_v23  ;;  %398 = vmatpush1.bf16.msra.mxu1 %v3971_v24  ;;  %v4903_v8 = vld [vmem:[%s6623_s4 + $0xc8] ss:$16 sps:$4 sm:$0xff]   ;;  %v132_v9 = vpack.c.bf16 %v128_v4, %v127_v3  ;;  %v4908_v10 = vld [vmem:[%s6623_s4 + $0xe4] ss:$16 sps:$4 sm:$0xff]   ;;  %v4913_v11 = vld [vmem:[%s6623_s4 + $0xec] ss:$16 sps:$4 sm:$0xff]  }
  0x1b   :  { %326 = vmatprep.subr.bf16.mxu0 %v3972_v25  ;;  %399 = vmatprep.subr.bf16.mxu1 %v3974_v26  ;;  %v4922_v12 = vld [vmem:[%s6623_s4 + $0xe0] ss:$16 sps:$4 sm:$0xff]   ;;  %v4927_v13 = vld [vmem:[%s6623_s4 + $0xe8] ss:$16 sps:$4 sm:$0xff]  }
  0x1c   :  { %v492_v14 = vld [vmem:[%s6650_s20] sm:$0xff] }
  0x1d   :  { %v498_v15 = vpack.c.bf16 %v492_v14, %v492_v14 }
  0x1e   :  { %327 = vmatpush1.bf16.msra.mxu0 %v3976_v27  ;;  %400 = vmatpush1.bf16.msra.mxu1 %v3977_v28 }
  0x1f   :  { %328 = vmatprep.subr.bf16.mxu0 %v3978_v29  ;;  %401 = vmatprep.subr.bf16.mxu1 %v3980_v30 }
  0x22   :  { %329 = vmatpush1.bf16.msra.mxu0 %v3982_v31  ;;  %402 = vmatpush1.bf16.msra.mxu1 %v3983_v32 }
  0x23   :  { %659 = vmatprep.subr.bf16.mxu0 %v4722_v35  ;;  %700 = vmatprep.subr.bf16.mxu1 %v4727_v36 }
  0x25   :  { %347 = vmatmul.mubr.bf16.vlgmr.msra.gmra.mrb[0].mxu0 %v129_v37  ;;  %420 = vmatmul.mubr.bf16.vlgmr.msra.gmra.mrb[0].mxu1 %v129_v37 }
  0x26   :  { %660 = vmatpush1.bf16.msra.mxu0 %v4732_v38  ;;  %701 = vmatpush1.bf16.msra.mxu1 %v4737_v39 }
  0x27   :  { %661 = vmatprep.subr.bf16.mxu0 %v4744_v40  ;;  %702 = vmatprep.subr.bf16.mxu1 %v4749_v41 }
  0x28   :  { %356 = vmatprep.mubr.bf16.mxu0 %v6643_v2  ;;  %429 = vmatprep.mubr.bf16.mxu1 %v6643_v2 }
  0x2a   :  { %662 = vmatpush1.bf16.msra.mxu0 %v4754_v42  ;;  %703 = vmatpush1.bf16.msra.mxu1 %v4759_v43 }
  0x2b   :  { %663 = vmatprep.subr.bf16.mxu0 %v4772_v46  ;;  %704 = vmatprep.subr.bf16.mxu1 %v4779_v47 }
  0x2d   :  { %357 = vmatmul.mubr.bf16.gmra.mrb[4].mxu0 %v130_v48  ;;  %430 = vmatmul.mubr.bf16.gmra.mrb[4].mxu1 %v130_v48 }
  0x2e   :  { %664 = vmatpush1.bf16.msra.mxu0 %v4786_v49  ;;  %705 = vmatpush1.bf16.msra.mxu1 %v4791_v50 }
  0x2f   :  { %665 = vmatprep.subr.bf16.mxu0 %v4798_v51  ;;  %706 = vmatprep.subr.bf16.mxu1 %v4805_v52 }
  0x30   :  { %366 = vmatprep.mubr.bf16.mxu0 %v6643_v2  ;;  %439 = vmatprep.mubr.bf16.mxu1 %v6643_v2 }
  0x32   :  { %666 = vmatpush1.bf16.msra.mxu0 %v4810_v53  ;;  %707 = vmatpush1.bf16.msra.mxu1 %v4815_v54 }
  0x33   :  { %667 = vmatprep.subr.bf16.mxu0 %v4830_v57  ;;  %708 = vmatprep.subr.bf16.mxu1 %v4835_v58 }
  0x35   :  { %367 = vmatmul.mubr.bf16.gmra.mrb[8].mxu0 %v131_v61  ;;  %440 = vmatmul.mubr.bf16.gmra.mrb[8].mxu1 %v131_v61 }
  0x36   :  { %668 = vmatpush1.bf16.msra.mxu0 %v4842_v59  ;;  %709 = vmatpush1.bf16.msra.mxu1 %v4847_v60 }
  0x37   :  { %669 = vmatprep.subr.bf16.mxu0 %v4852_v62  ;;  %710 = vmatprep.subr.bf16.mxu1 %v4857_v63 }
  0x38   :  { %376 = vmatprep.mubr.bf16.mxu0 %v6643_v2  ;;  %449 = vmatprep.mubr.bf16.mxu1 %v6643_v2 }
  0x3a   :  { %670 = vmatpush1.bf16.msra.mxu0 %v4866_v0  ;;  %711 = vmatpush1.bf16.msra.mxu1 %v4871_v1 }
  0x3b   :  { %671 = vmatprep.subr.bf16.mxu0 %v4882_v5  ;;  %712 = vmatprep.subr.bf16.mxu1 %v4887_v6 }
  0x3d   :  { %377 = vmatmul.mubr.bf16.gmra.mrb[12].mxu0 %v132_v9  ;;  %450 = vmatmul.mubr.bf16.gmra.mrb[12].mxu1 %v132_v9 }
  0x3e   :  { %672 = vmatpush1.bf16.msra.mxu0 %v4898_v7  ;;  %713 = vmatpush1.bf16.msra.mxu1 %v4903_v8 }
  0x3f   :  { %673 = vmatprep.subr.bf16.mxu0 %v4908_v10  ;;  %714 = vmatprep.subr.bf16.mxu1 %v4913_v11 }
  0x40   :  { %691 = vmatprep.mubr.bf16.mxu0 %v6643_v2  ;;  %732 = vmatprep.mubr.bf16.mxu1 %v6643_v2 }
  0x42   :  { %674 = vmatpush1.bf16.msra.mxu0 %v4922_v12  ;;  %715 = vmatpush1.bf16.msra.mxu1 %v4927_v13 }
  0x43   :  { %776 = vmatprep.subr.bf16.mxu0 %v4722_v35  ;;  %817 = vmatprep.subr.bf16.mxu1 %v4727_v36 }
  0x45   :  { %692 = vmatmul.mubr.bf16.vlgmr.msra.gmra.mrb[16].mxu0 %v498_v15  ;;  %733 = vmatmul.mubr.bf16.vlgmr.msra.gmra.mrb[16].mxu1 %v498_v15 }
  0x46   :  { %777 = vmatpush1.bf16.msra.mxu0 %v4732_v38  ;;  %818 = vmatpush1.bf16.msra.mxu1 %v4737_v39 }
  0x47   :  { %778 = vmatprep.subr.bf16.mxu0 %v4744_v40  ;;  %819 = vmatprep.subr.bf16.mxu1 %v4749_v41 }
  0x48   :  { %808 = vmatprep.mubr.bf16.mxu0 %v6643_v2  ;;  %849 = vmatprep.mubr.bf16.mxu1 %v6643_v2 }
  0x4a   :  { %779 = vmatpush1.bf16.msra.mxu0 %v4754_v42  ;;  %820 = vmatpush1.bf16.msra.mxu1 %v4759_v43 }
  0x4b   :  { %780 = vmatprep.subr.bf16.mxu0 %v4772_v46  ;;  %821 = vmatprep.subr.bf16.mxu1 %v4779_v47 }
  0x4e   :  { %781 = vmatpush1.bf16.msra.mxu0 %v4786_v49  ;;  %822 = vmatpush1.bf16.msra.mxu1 %v4791_v50 }
  0x4f   :  { %782 = vmatprep.subr.bf16.mxu0 %v4798_v51  ;;  %823 = vmatprep.subr.bf16.mxu1 %v4805_v52 }
  0x52   :  { %783 = vmatpush1.bf16.msra.mxu0 %v4810_v53  ;;  %824 = vmatpush1.bf16.msra.mxu1 %v4815_v54 }
  0x53   :  { %784 = vmatprep.subr.bf16.mxu0 %v4830_v57  ;;  %825 = vmatprep.subr.bf16.mxu1 %v4835_v58 }
  0x54   :  { %24 = vsyncpa [#allocation7], 0  ;;  %v134_v16 = vlaneseq  ;;  %v120_v21 = vld [vmem:[%s6624_s5] sm:$0xf]  ;;  %s4521_s22 = smov [#allocation4]  }
  0x55   :  { %s3573_s23 = sshll.u32 %s4521_s22, 4  ;;  %s3574_s23 = int_to_ptr.vmem [resolvable:$true] %s3573_s23 }
  0x56   :  { %785 = vmatpush1.bf16.msra.mxu0 %v4842_v59  ;;  %826 = vmatpush1.bf16.msra.mxu1 %v4847_v60  ;;  %v4976_v17 = vshrl.u32 %v134_v16, 7  ;;  %s4472_s25 = scalar_lea.vmem %s3574_s23, 256  ;;  %p4477_p1 = scmp.lt.s32.totalorder %s3574_s23, %s3574_s23 }
  0x57   :  { %786 = vmatprep.subr.bf16.mxu0 %v4852_v62  ;;  %827 = vmatprep.subr.bf16.mxu1 %v4857_v63  ;;  %p4473_p0 = scmp.ne.s32.totalorder %s3574_s23, %s4472_s25  ;;  %p4478_p2 = scmp.lt.s32.totalorder %s4472_s25, %s4472_s25 }
  0x58   :  { %6651 = vst [vmem:[#allocation10_spill] sm:$0xff] %v4976_v17  ;;  %v6641_v18 = vsub.s32 2, %v4976_v17  ;;  %v6639_v19 = vsub.s32 3, %v4976_v17  ;;  %v6642_v20 = vsub.s32 0, %v4976_v17  ;;  %v6640_v22 = vsub.s32 1, %v4976_v17 }
  0x59   :  { %p4479_p3 = por %p4478_p2, %p4477_p1 }
  0x5a   :  { %787 = vmatpush1.bf16.msra.mxu0 %v4866_v0  ;;  %828 = vmatpush1.bf16.msra.mxu1 %v4871_v1  ;;  %v4987_v23 = vrot.slane %v120_v21, %v6641_v18  ;;  %v4995_v26 = vrot.slane %v120_v21, %v6639_v19  ;;  %v137_v27 = vrot.slane %v120_v21, %v6642_v20 }
  0x5b   :  { %788 = vmatprep.subr.bf16.mxu0 %v4882_v5  ;;  %829 = vmatprep.subr.bf16.mxu1 %v4887_v6  ;;  %v141_v30 = vrot.slane %v120_v21, %v6640_v22  ;;  %p4480_p4 = pnand %p4479_p3, %p4473_p0 }
  0x5e   :  { %789 = vmatpush1.bf16.msra.mxu0 %v4898_v7  ;;  %830 = vmatpush1.bf16.msra.mxu1 %v4903_v8 }
  0x5f   :  { %790 = vmatprep.subr.bf16.mxu0 %v4908_v10  ;;  %831 = vmatprep.subr.bf16.mxu1 %v4913_v11 }
  0x62   :  { %791 = vmatpush1.bf16.msra.mxu0 %v4922_v12  ;;  %832 = vmatpush1.bf16.msra.mxu1 %v4927_v13 }
  0x63   :  { %894 = vmatprep.subr.bf16.mxu0 %v4722_v35  ;;  %935 = vmatprep.subr.bf16.mxu1 %v4727_v36 }
  0xf8   :  { %v4989_v24 = vpop.f32.mrb[0].mxu0  ;;  %v4991_v25 = vpop.f32.mrb[0].mxu1 }
  0xf9   :  { %v350_v28 = vpop.f32.mrb[1].mxu0  ;;  %v423_v29 = vpop.f32.mrb[1].mxu1 }
  0xfa   :  { %v352_v31 = vpop.f32.mrb[2].mxu0  ;;  %v425_v32 = vpop.f32.mrb[2].mxu1 }
  0xfb   :  { %v5001_v33 = vadd.f32 %v352_v31, %v137_v27  ;;  %v354_v34 = vpop.f32.mrb[3].mxu0  ;;  %v5004_v37 = vadd.f32 %v425_v32, %v4987_v23  ;;  %v427_v44 = vpop.f32.mrb[3].mxu1 }
  0xfc   :  { %v5006_v45 = vadd.f32 %v354_v34, %v141_v30  ;;  %v5009_v48 = vadd.f32 %v427_v44, %v4995_v26 }
 0x100   :  { %v358_v55 = vpop.f32.mrb[4].mxu0  ;;  %v431_v56 = vpop.f32.mrb[4].mxu1 }
 0x101   :  { %v5011_v61 = vadd.f32 %v358_v55, %v137_v27  ;;  %v360_v3 = vpop.f32.mrb[5].mxu0  ;;  %v5014_v4 = vadd.f32 %v431_v56, %v4987_v23  ;;  %v433_v9 = vpop.f32.mrb[5].mxu1 }
 0x102   :  { %v5016_v14 = vadd.f32 %v360_v3, %v141_v30  ;;  %v362_v15 = vpop.f32.mrb[6].mxu0  ;;  %v5019_v16 = vadd.f32 %v433_v9, %v4995_v26  ;;  %v435_v21 = vpop.f32.mrb[6].mxu1 }
 0x103   :  { %v5021_v31 = vadd.f32 %v362_v15, %v137_v27  ;;  %v364_v32 = vpop.f32.mrb[7].mxu0  ;;  %v5024_v34 = vadd.f32 %v435_v21, %v4987_v23  ;;  %v437_v44 = vpop.f32.mrb[7].mxu1 }
 0x104   :  { %6652 = vst [vmem:[#allocation11_spill] sm:$0xff] %v5019_v16  ;;  %v5026_v55 = vadd.f32 %v364_v32, %v141_v30  ;;  %v5029_v56 = vadd.f32 %v437_v44, %v4995_v26 }
 0x105   :  { %6653 = vst [vmem:[#allocation12_spill] sm:$0xff] %v5021_v31  ;;  %6654 = vst [vmem:[#allocation13_spill] sm:$0xff] %v5024_v34 }
 0x106   :  { %6655 = vst [vmem:[#allocation14_spill] sm:$0xff] %v5026_v55  ;;  %6656 = vst [vmem:[#allocation15_spill] sm:$0xff] %v5029_v56 }
 0x108   :  { %v368_v19 = vpop.f32.mrb[8].mxu0  ;;  %v441_v3 = vpop.f32.mrb[8].mxu1 }
 0x109   :  { %v5031_v22 = vadd.f32 %v368_v19, %v137_v27  ;;  %v370_v18 = vpop.f32.mrb[9].mxu0  ;;  %v5034_v9 = vadd.f32 %v441_v3, %v4987_v23  ;;  %v443_v15 = vpop.f32.mrb[9].mxu1 }
 0x10a   :  { %v5036_v20 = vadd.f32 %v370_v18, %v141_v30  ;;  %v372_v2 = vpop.f32.mrb[10].mxu0  ;;  %v5039_v21 = vadd.f32 %v443_v15, %v4995_v26  ;;  %v445_v32 = vpop.f32.mrb[10].mxu1 }
 0x10b   :  { %6657 = vst [vmem:[#allocation16_spill] sm:$0xff] %v5031_v22  ;;  %6658 = vst [vmem:[#allocation17_spill] sm:$0xff] %v5034_v9  ;;  %v5041_v17 = vadd.f32 %v372_v2, %v137_v27  ;;  %v374_v44 = vpop.f32.mrb[11].mxu0  ;;  %v5044_v56 = vadd.f32 %v445_v32, %v4987_v23  ;;  %v447_v19 = vpop.f32.mrb[11].mxu1 }
 0x10c   :  { %6659 = vst [vmem:[#allocation18_spill] sm:$0xff] %v5036_v20  ;;  %6660 = vst [vmem:[#allocation19_spill] sm:$0xff] %v5039_v21  ;;  %v5046_v22 = vadd.f32 %v374_v44, %v141_v30  ;;  %v5049_v3 = vadd.f32 %v447_v19, %v4995_v26 }
 0x10d   :  { %6661 = vst [vmem:[#allocation20_spill] sm:$0xff] %v5041_v17  ;;  %6662 = vst [vmem:[#allocation21_spill] sm:$0xff] %v5044_v56 }
 0x10e   :  { %6663 = vst [vmem:[#allocation22_spill] sm:$0xff] %v5046_v22  ;;  %6664 = vst [vmem:[#allocation23_spill] sm:$0xff] %v5049_v3 }
 0x110   :  { %v378_v9 = vpop.f32.mrb[12].mxu0  ;;  %v451_v18 = vpop.f32.mrb[12].mxu1 }
 0x111   :  { %v5051_v20 = vadd.f32 %v378_v9, %v137_v27  ;;  %v380_v55 = vpop.f32.mrb[13].mxu0  ;;  %v5054_v15 = vadd.f32 %v451_v18, %v4987_v23  ;;  %v453_v2 = vpop.f32.mrb[13].mxu1 }
 0x112   :  { %v5056_v17 = vadd.f32 %v380_v55, %v141_v30  ;;  %v382_v21 = vpop.f32.mrb[14].mxu0  ;;  %v5059_v32 = vadd.f32 %v453_v2, %v4995_v26  ;;  %v455_v44 = vpop.f32.mrb[14].mxu1  ;;  %v349_v55 = vadd.f32 %v4989_v24, %v137_v27  ;;  %v351_v2 = vadd.f32 %v350_v28, %v141_v30 }
 0x113   :  { %6665 = vst [vmem:[#allocation24_spill] sm:$0xff] %v5051_v20  ;;  %6666 = vst [vmem:[#allocation25_spill] sm:$0xff] %v5054_v15  ;;  %v5061_v22 = vadd.f32 %v382_v21, %v137_v27  ;;  %v384_v19 = vpop.f32.mrb[15].mxu0  ;;  %v5064_v3 = vadd.f32 %v455_v44, %v4987_v23  ;;  %v457_v9 = vpop.f32.mrb[15].mxu1 }
 0x114   :  { %6667 = vst [vmem:[#allocation26_spill] sm:$0xff] %v5056_v17  ;;  %6668 = vst [vmem:[#allocation27_spill] sm:$0xff] %v5059_v32  ;;  %v5066_v20 = vadd.f32 %v384_v19, %v141_v30  ;;  %v5069_v18 = vadd.f32 %v457_v9, %v4995_v26  ;;  %v422_v17 = vadd.f32 %v4991_v25, %v4987_v23 }
 0x115   :  { %6669 = vst [vmem:[#allocation28_spill] sm:$0xff] %v5061_v22  ;;  %6670 = vst [vmem:[#allocation29_spill] sm:$0xff] %v5064_v3  ;;  %v424_v32 = vadd.f32 %v423_v29, %v4995_v26 }
 0x116   :  { %6671 = vst [vmem:[#allocation30_spill] sm:$0xff] %v5066_v20  ;;  %6672 = vst [vmem:[#allocation31_spill] sm:$0xff] %v5069_v18 }
 0x118   :  { %v693_v21 = vpop.f32.mrb[16].mxu0  ;;  %v734_v22 = vpop.f32.mrb[16].mxu1 }
 0x119   :  { %v741_v15 = vadd.f32 %v693_v21, %v349_v55  ;;  %v743_v56 = vadd.f32 %v734_v22, %v422_v17  ;;  %v695_v44 = vpop.f32.mrb[17].mxu0  ;;  %v736_v3 = vpop.f32.mrb[17].mxu1  ;;  %v6673_v55 = vmov 0  }
 0x11a   :  { %v742_v34 = vadd.f32 %v695_v44, %v351_v2  ;;  %v744_v19 = vadd.f32 %v736_v3, %v424_v32  ;;  %v697_v20 = vpop.f32.mrb[18].mxu0  ;;  %v738_v31 = vpop.f32.mrb[18].mxu1 }
 0x11b   :  { %v3666_v9 = vmul.f32 -1.442695, %v741_v15  ;;  %v698_v18 = vpop.f32.mrb[19].mxu0  ;;  %v739_v16 = vpop.f32.mrb[19].mxu1  ;;  %v493_v20 = vld [vmem:[%s6621_s2] sm:$0xff] }
 0x11c   :  { %v3667_v24 = vmul.f32 -1.442695, %v742_v34  ;;  %v3668_v23 = vmul.f32 -1.442695, %v744_v19 }
 0x11d   :  { %4152 = vpow2.f32 %v3666_v9 }
 0x11e   :  { %4154 = vpow2.f32 %v3667_v24 }
 0x11f   :  { %4156 = vpow2.f32 %v3668_v23 }
 0x120   :  { %4158 = vtanh.f32 %v743_v56 }
 0x127   :  { %v4153_v25 = vpop.eup %4152 }
 0x128   :  { %v4155_v27 = vpop.eup %4154  ;;  %v751_v26 = vadd.f32 1.0, %v4153_v25 }
 0x129   :  { %v752_v28 = vadd.f32 1.0, %v4155_v27  ;;  %v4157_v17 = vpop.eup %4156 }
 0x12a   :  { %4160 = vrcp.f32 %v751_v26  ;;  %v4159_v22 = vpop.eup %4158  ;;  %v761_v31 = vadd.f32 1.0, %v4157_v17 }
 0x12b   :  { %4162 = vrcp.f32 %v752_v28 }
 0x12c   :  { %4164 = vrcp.f32 %v761_v31 }
 0x134   :  { %v4161_v29 = vpop.eup %4160 }
 0x135   :  { %v4163_v30 = vpop.eup %4162  ;;  %v765_v16 = vmul.f32 %v4161_v29, %v4159_v22 }
 0x136   :  { %v764_v34 = vmul.f32 %v4163_v30, %v493_v20  ;;  %v4165_v56 = vpop.eup %4164 }
 0x138   :  { %v5078_v3 = vadd.f32 %v765_v16, %v764_v34 }
 0x13a   :  { %4166 = vtanh.f32 %v5078_v3 }
 0x144   :  { %v4167_v15 = vpop.eup %4166 }
 0x145   :  { %v5081_v32 = vmul.f32 %v4167_v15, %v4165_v56 }
 0x147   :  { %v775_v18 = vpack.c.bf16 %v5081_v32, %v5081_v32 }
 0x149   :  { %809 = vmatmul.mubr.bf16.vlgmr.msra.gmra.mrb[20].mxu0 %v775_v18  ;;  %850 = vmatmul.mubr.bf16.vlgmr.msra.gmra.mrb[20].mxu1 %v775_v18 }
 0x14a   :  { %895 = vmatpush1.bf16.msra.mxu0 %v4732_v38  ;;  %936 = vmatpush1.bf16.msra.mxu1 %v4737_v39 }
 0x14b   :  { %896 = vmatprep.subr.bf16.mxu0 %v4744_v40  ;;  %937 = vmatprep.subr.bf16.mxu1 %v4749_v41 }
 0x14c   :  { %926 = vmatprep.mubr.bf16.mxu0 %v6673_v55  ;;  %967 = vmatprep.mubr.bf16.mxu1 %v6673_v55 }
 0x14e   :  { %897 = vmatpush1.bf16.msra.mxu0 %v4754_v42  ;;  %938 = vmatpush1.bf16.msra.mxu1 %v4759_v43 }
 0x14f   :  { %898 = vmatprep.subr.bf16.mxu0 %v4772_v46  ;;  %939 = vmatprep.subr.bf16.mxu1 %v4779_v47 }
 0x152   :  { %899 = vmatpush1.bf16.msra.mxu0 %v4786_v49  ;;  %940 = vmatpush1.bf16.msra.mxu1 %v4791_v50 }
 0x153   :  { %900 = vmatprep.subr.bf16.mxu0 %v4798_v51  ;;  %941 = vmatprep.subr.bf16.mxu1 %v4805_v52 }
 0x156   :  { %901 = vmatpush1.bf16.msra.mxu0 %v4810_v53  ;;  %942 = vmatpush1.bf16.msra.mxu1 %v4815_v54 }
 0x157   :  { %902 = vmatprep.subr.bf16.mxu0 %v4830_v57  ;;  %943 = vmatprep.subr.bf16.mxu1 %v4835_v58 }
 0x15a   :  { %903 = vmatpush1.bf16.msra.mxu0 %v4842_v59  ;;  %944 = vmatpush1.bf16.msra.mxu1 %v4847_v60 }
 0x15b   :  { %904 = vmatprep.subr.bf16.mxu0 %v4852_v62  ;;  %945 = vmatprep.subr.bf16.mxu1 %v4857_v63 }
 0x15e   :  { %905 = vmatpush1.bf16.msra.mxu0 %v4866_v0  ;;  %946 = vmatpush1.bf16.msra.mxu1 %v4871_v1 }
 0x15f   :  { %906 = vmatprep.subr.bf16.mxu0 %v4882_v5  ;;  %947 = vmatprep.subr.bf16.mxu1 %v4887_v6 }
 0x162   :  { %907 = vmatpush1.bf16.msra.mxu0 %v4898_v7  ;;  %948 = vmatpush1.bf16.msra.mxu1 %v4903_v8 }
 0x163   :  { %908 = vmatprep.subr.bf16.mxu0 %v4908_v10  ;;  %949 = vmatprep.subr.bf16.mxu1 %v4913_v11 }
 0x166   :  { %909 = vmatpush1.bf16.msra.mxu0 %v4922_v12  ;;  %950 = vmatpush1.bf16.msra.mxu1 %v4927_v13 }
 0x167   :  { %1012 = vmatprep.subr.bf16.mxu0 %v4722_v35  ;;  %1053 = vmatprep.subr.bf16.mxu1 %v4727_v36 }
 0x21c   :  { %v810_v2 = vpop.f32.mrb[20].mxu0  ;;  %v851_v21 = vpop.f32.mrb[20].mxu1 }
 0x21d   :  { %v858_v44 = vadd.f32 %v810_v2, %v5001_v33  ;;  %v860_v19 = vadd.f32 %v851_v21, %v5004_v37  ;;  %v812_v9 = vpop.f32.mrb[21].mxu0  ;;  %v853_v24 = vpop.f32.mrb[21].mxu1 }
 0x21e   :  { %v859_v23 = vadd.f32 %v812_v9, %v5006_v45  ;;  %v861_v25 = vadd.f32 %v853_v24, %v5009_v48  ;;  %v814_v27 = vpop.f32.mrb[22].mxu0  ;;  %v855_v26 = vpop.f32.mrb[22].mxu1 }
 0x21f   :  { %v3669_v28 = vmul.f32 -1.442695, %v858_v44  ;;  %v815_v17 = vpop.f32.mrb[23].mxu0  ;;  %v856_v22 = vpop.f32.mrb[23].mxu1 }
 0x220   :  { %v3670_v20 = vmul.f32 -1.442695, %v859_v23  ;;  %v3671_v29 = vmul.f32 -1.442695, %v861_v25 }
 0x221   :  { %4168 = vpow2.f32 %v3669_v28 }
 0x222   :  { %4170 = vpow2.f32 %v3670_v20 }
 0x223   :  { %4172 = vpow2.f32 %v3671_v29 }
 0x224   :  { %4174 = vtanh.f32 %v860_v19 }
 0x22b   :  { %v4169_v30 = vpop.eup %4168 }
 0x22c   :  { %v4171_v16 = vpop.eup %4170  ;;  %v868_v33 = vadd.f32 1.0, %v4169_v30 }
 0x22d   :  { %v869_v37 = vadd.f32 1.0, %v4171_v16  ;;  %v4173_v45 = vpop.eup %4172 }
 0x22e   :  { %4176 = vrcp.f32 %v868_v33  ;;  %v4175_v31 = vpop.eup %4174  ;;  %v878_v15 = vadd.f32 1.0, %v4173_v45 }
 0x22f   :  { %4178 = vrcp.f32 %v869_v37 }
 0x230   :  { %4180 = vrcp.f32 %v878_v15  ;;  %v5180_v15 = vld [vmem:[%s6623_s4] ss:$16 sps:$4 sm:$0xff]  }
 0x238   :  { %v4177_v48 = vpop.eup %4176 }
 0x239   :  { %v4179_v34 = vpop.eup %4178  ;;  %v882_v56 = vmul.f32 %v4177_v48, %v4175_v31 }
 0x23a   :  { %v881_v18 = vmul.f32 %v4179_v34, %v5078_v3  ;;  %v4181_v21 = vpop.eup %4180  ;;  %v6674_v3 = vld [vmem:[#allocation11_spill] sm:$0xff] }
 0x23c   :  { %v5124_v2 = vadd.f32 %v882_v56, %v881_v18  ;;  %v5186_v18 = vld [vmem:[%s6623_s4 + $0x8] ss:$16 sps:$4 sm:$0xff]  }
 0x23e   :  { %4182 = vtanh.f32 %v5124_v2 }
 0x248   :  { %v4183_v44 = vpop.eup %4182 }
 0x249   :  { %v5127_v9 = vmul.f32 %v4183_v44, %v4181_v21  ;;  %v5198_v21 = vld [vmem:[%s6623_s4 + $0x2c] ss:$16 sps:$4 sm:$0xff]   ;;  %v5206_v44 = vld [vmem:[%s6623_s4 + $0x20] ss:$16 sps:$4 sm:$0xff]  }
 0x24b   :  { %v893_v19 = vpack.c.bf16 %v5127_v9, %v5127_v9 }
 0x24d   :  { %927 = vmatmul.mubr.bf16.vlgmr.msra.gmra.mrb[24].mxu0 %v893_v19  ;;  %968 = vmatmul.mubr.bf16.vlgmr.msra.gmra.mrb[24].mxu1 %v893_v19  ;;  %v5212_v19 = vld [vmem:[%s6623_s4 + $0x28] ss:$16 sps:$4 sm:$0xff]  }
 0x24e   :  { %1013 = vmatpush1.bf16.msra.mxu0 %v4732_v38  ;;  %1054 = vmatpush1.bf16.msra.mxu1 %v4737_v39 }
 0x24f   :  { %1014 = vmatprep.subr.bf16.mxu0 %v4744_v40  ;;  %1055 = vmatprep.subr.bf16.mxu1 %v4749_v41 }
 0x250   :  { %1044 = vmatprep.mubr.bf16.mxu0 %v6673_v55  ;;  %1085 = vmatprep.mubr.bf16.mxu1 %v6673_v55 }
 0x252   :  { %1015 = vmatpush1.bf16.msra.mxu0 %v4754_v42  ;;  %1056 = vmatpush1.bf16.msra.mxu1 %v4759_v43 }
 0x253   :  { %1016 = vmatprep.subr.bf16.mxu0 %v4772_v46  ;;  %1057 = vmatprep.subr.bf16.mxu1 %v4779_v47 }
 0x256   :  { %1017 = vmatpush1.bf16.msra.mxu0 %v4786_v49  ;;  %1058 = vmatpush1.bf16.msra.mxu1 %v4791_v50 }
 0x257   :  { %1018 = vmatprep.subr.bf16.mxu0 %v4798_v51  ;;  %1059 = vmatprep.subr.bf16.mxu1 %v4805_v52 }
 0x25a   :  { %1019 = vmatpush1.bf16.msra.mxu0 %v4810_v53  ;;  %1060 = vmatpush1.bf16.msra.mxu1 %v4815_v54 }
 0x25b   :  { %1020 = vmatprep.subr.bf16.mxu0 %v4830_v57  ;;  %1061 = vmatprep.subr.bf16.mxu1 %v4835_v58 }
 0x25e   :  { %1021 = vmatpush1.bf16.msra.mxu0 %v4842_v59  ;;  %1062 = vmatpush1.bf16.msra.mxu1 %v4847_v60 }
 0x25f   :  { %1022 = vmatprep.subr.bf16.mxu0 %v4852_v62  ;;  %1063 = vmatprep.subr.bf16.mxu1 %v4857_v63 }
 0x262   :  { %1023 = vmatpush1.bf16.msra.mxu0 %v4866_v0  ;;  %1064 = vmatpush1.bf16.msra.mxu1 %v4871_v1 }
 0x263   :  { %1024 = vmatprep.subr.bf16.mxu0 %v4882_v5  ;;  %1065 = vmatprep.subr.bf16.mxu1 %v4887_v6 }
 0x266   :  { %1025 = vmatpush1.bf16.msra.mxu0 %v4898_v7  ;;  %1066 = vmatpush1.bf16.msra.mxu1 %v4903_v8 }
 0x267   :  { %1026 = vmatprep.subr.bf16.mxu0 %v4908_v10  ;;  %1067 = vmatprep.subr.bf16.mxu1 %v4913_v11 }
 0x26a   :  { %1027 = vmatpush1.bf16.msra.mxu0 %v4922_v12  ;;  %1068 = vmatpush1.bf16.msra.mxu1 %v4927_v13 }
 0x26b   :  { %1130 = vmatprep.subr.bf16.mxu0 %v4722_v35  ;;  %1171 = vmatprep.subr.bf16.mxu1 %v4727_v36 }
 0x320   :  { %v928_v38 = vpop.f32.mrb[24].mxu0  ;;  %v969_v39 = vpop.f32.mrb[24].mxu1 }
 0x321   :  { %v976_v40 = vadd.f32 %v928_v38, %v5011_v61  ;;  %v978_v41 = vadd.f32 %v969_v39, %v5014_v4  ;;  %v930_v42 = vpop.f32.mrb[25].mxu0  ;;  %v971_v43 = vpop.f32.mrb[25].mxu1  ;;  %v5218_v38 = vld [vmem:[%s6623_s4 + $0x44] ss:$16 sps:$4 sm:$0xff]  }
 0x322   :  { %v977_v46 = vadd.f32 %v930_v42, %v5016_v14  ;;  %v979_v24 = vadd.f32 %v971_v43, %v6674_v3  ;;  %v932_v23 = vpop.f32.mrb[26].mxu0  ;;  %v973_v25 = vpop.f32.mrb[26].mxu1 }
 0x323   :  { %v3672_v27 = vmul.f32 -1.442695, %v976_v40  ;;  %v933_v26 = vpop.f32.mrb[27].mxu0  ;;  %v974_v28 = vpop.f32.mrb[27].mxu1 }
 0x324   :  { %v3673_v35 = vmul.f32 -1.442695, %v977_v46  ;;  %v3674_v36 = vmul.f32 -1.442695, %v979_v24 }
 0x325   :  { %4184 = vpow2.f32 %v3672_v27 }
 0x326   :  { %4186 = vpow2.f32 %v3673_v35 }
 0x327   :  { %4188 = vpow2.f32 %v3674_v36 }
 0x328   :  { %4190 = vtanh.f32 %v978_v41 }
 0x32f   :  { %v4185_v17 = vpop.eup %4184 }
 0x330   :  { %v4187_v22 = vpop.eup %4186  ;;  %v986_v61 = vadd.f32 1.0, %v4185_v17 }
 0x331   :  { %v987_v4 = vadd.f32 1.0, %v4187_v22  ;;  %v4189_v14 = vpop.eup %4188  ;;  %v5280_v22 = vld [vmem:[%s6623_s4 + $0x4c] ss:$16 sps:$4 sm:$0xff]  }
 0x332   :  { %4192 = vrcp.f32 %v986_v61  ;;  %v4191_v20 = vpop.eup %4190  ;;  %v996_v33 = vadd.f32 1.0, %v4189_v14  ;;  %v5286_v61 = vld [vmem:[%s6623_s4 + $0x40] ss:$16 sps:$4 sm:$0xff]   ;;  %v5298_v14 = vld [vmem:[%s6623_s4 + $0x64] ss:$16 sps:$4 sm:$0xff]  }
 0x333   :  { %4194 = vrcp.f32 %v987_v4  ;;  %v5292_v4 = vld [vmem:[%s6623_s4 + $0x48] ss:$16 sps:$4 sm:$0xff]  }
 0x334   :  { %4196 = vrcp.f32 %v996_v33  ;;  %v5328_v33 = vld [vmem:[%s6623_s4 + $0x8c] ss:$16 sps:$4 sm:$0xff]  }
 0x33c   :  { %v4193_v29 = vpop.eup %4192 }
 0x33d   :  { %v4195_v30 = vpop.eup %4194  ;;  %v1000_v16 = vmul.f32 %v4193_v29, %v4191_v20  ;;  %v5304_v20 = vld [vmem:[%s6623_s4 + $0x6c] ss:$16 sps:$4 sm:$0xff]   ;;  %v5310_v29 = vld [vmem:[%s6623_s4 + $0x60] ss:$16 sps:$4 sm:$0xff]  }
 0x33e   :  { %v999_v37 = vmul.f32 %v4195_v30, %v5124_v2  ;;  %v4197_v31 = vpop.eup %4196  ;;  %v5192_v2 = vld [vmem:[%s6623_s4 + $0x24] ss:$16 sps:$4 sm:$0xff]   ;;  %v5316_v30 = vld [vmem:[%s6623_s4 + $0x68] ss:$16 sps:$4 sm:$0xff]  }
 0x340   :  { %v5170_v45 = vadd.f32 %v1000_v16, %v999_v37  ;;  %v5322_v16 = vld [vmem:[%s6623_s4 + $0x84] ss:$16 sps:$4 sm:$0xff]   ;;  %v5334_v37 = vld [vmem:[%s6623_s4 + $0x80] ss:$16 sps:$4 sm:$0xff]  }
 0x342   :  { %4198 = vtanh.f32 %v5170_v45 }
 0x34c   :  { %v4199_v48 = vpop.eup %4198 }
 0x34d   :  { %v5173_v34 = vmul.f32 %v4199_v48, %v4197_v31  ;;  %v5346_v31 = vld [vmem:[%s6623_s4 + $0xa4] ss:$16 sps:$4 sm:$0xff]   ;;  %v5352_v48 = vld [vmem:[%s6623_s4 + $0xac] ss:$16 sps:$4 sm:$0xff]  }
 0x34f   :  { %v1011_v56 = vpack.c.bf16 %v5173_v34, %v5173_v34 }
 0x351   :  { %1045 = vmatmul.mubr.bf16.vlgmr.msra.gmra.mrb[28].mxu0 %v1011_v56  ;;  %1086 = vmatmul.mubr.bf16.vlgmr.msra.gmra.mrb[28].mxu1 %v1011_v56  ;;  %v5358_v56 = vld [vmem:[%s6623_s4 + $0xa0] ss:$16 sps:$4 sm:$0xff]  }
 0x352   :  { %1131 = vmatpush1.bf16.msra.mxu0 %v5180_v15  ;;  %1172 = vmatpush1.bf16.msra.mxu1 %v5186_v18 }
 0x353   :  { %1132 = vmatprep.subr.bf16.mxu0 %v5192_v2  ;;  %1173 = vmatprep.subr.bf16.mxu1 %v5198_v21 }
 0x354   :  { %1162 = vmatprep.mubr.bf16.mxu0 %v6673_v55  ;;  %1203 = vmatprep.mubr.bf16.mxu1 %v6673_v55 }
 0x356   :  { %1133 = vmatpush1.bf16.msra.mxu0 %v5206_v44  ;;  %1174 = vmatpush1.bf16.msra.mxu1 %v5212_v19 }
 0x357   :  { %1134 = vmatprep.subr.bf16.mxu0 %v5218_v38  ;;  %1175 = vmatprep.subr.bf16.mxu1 %v4779_v47  ;;  %v5247_v47 = vld [vmem:[%s6623_s4 + $0x4] ss:$16 sps:$4 sm:$0xff]  }
 0x35a   :  { %1135 = vmatpush1.bf16.msra.mxu0 %v4786_v49  ;;  %1176 = vmatpush1.bf16.msra.mxu1 %v4791_v50  ;;  %v5253_v49 = vld [vmem:[%s6623_s4 + $0xc] ss:$16 sps:$4 sm:$0xff]  }
 0x35b   :  { %1136 = vmatprep.subr.bf16.mxu0 %v4798_v51  ;;  %1177 = vmatprep.subr.bf16.mxu1 %v4805_v52  ;;  %v6675_v52 = vld [vmem:[#allocation12_spill] sm:$0xff] }
 0x35e   :  { %1137 = vmatpush1.bf16.msra.mxu0 %v4810_v53  ;;  %1178 = vmatpush1.bf16.msra.mxu1 %v4815_v54  ;;  %v6676_v54 = vld [vmem:[#allocation13_spill] sm:$0xff] }
 0x35f   :  { %1138 = vmatprep.subr.bf16.mxu0 %v4830_v57  ;;  %1179 = vmatprep.subr.bf16.mxu1 %v4835_v58 }
 0x362   :  { %1139 = vmatpush1.bf16.msra.mxu0 %v4842_v59  ;;  %1180 = vmatpush1.bf16.msra.mxu1 %v4847_v60  ;;  %v6677_v60 = vld [vmem:[#allocation14_spill] sm:$0xff] }
 0x363   :  { %1140 = vmatprep.subr.bf16.mxu0 %v4852_v62  ;;  %1181 = vmatprep.subr.bf16.mxu1 %v4857_v63  ;;  %v6678_v63 = vld [vmem:[#allocation15_spill] sm:$0xff] }
 0x366   :  { %1141 = vmatpush1.bf16.msra.mxu0 %v4866_v0  ;;  %1182 = vmatpush1.bf16.msra.mxu1 %v4871_v1 }
 0x367   :  { %1142 = vmatprep.subr.bf16.mxu0 %v4882_v5  ;;  %1183 = vmatprep.subr.bf16.mxu1 %v4887_v6 }
 0x36a   :  { %1143 = vmatpush1.bf16.msra.mxu0 %v4898_v7  ;;  %1184 = vmatpush1.bf16.msra.mxu1 %v4903_v8 }
 0x36b   :  { %1144 = vmatprep.subr.bf16.mxu0 %v4908_v10  ;;  %1185 = vmatprep.subr.bf16.mxu1 %v4913_v11 }
 0x36e   :  { %1145 = vmatpush1.bf16.msra.mxu0 %v4922_v12  ;;  %1186 = vmatpush1.bf16.msra.mxu1 %v4927_v13 }
 0x36f   :  { %1248 = vmatprep.subr.bf16.mxu0 %v5247_v47  ;;  %1289 = vmatprep.subr.bf16.mxu1 %v5253_v49 }
 0x424   :  { %v1046_v50 = vpop.f32.mrb[28].mxu0  ;;  %v1087_v51 = vpop.f32.mrb[28].mxu1 }
 0x425   :  { %v1094_v53 = vadd.f32 %v1046_v50, %v6675_v52  ;;  %v1096_v57 = vadd.f32 %v1087_v51, %v6676_v54  ;;  %v1048_v58 = vpop.f32.mrb[29].mxu0  ;;  %v1089_v59 = vpop.f32.mrb[29].mxu1  ;;  %v5364_v50 = vld [vmem:[%s6623_s4 + $0xa8] ss:$16 sps:$4 sm:$0xff]   ;;  %v5370_v51 = vld [vmem:[%s6623_s4 + $0xc4] ss:$16 sps:$4 sm:$0xff]  }
 0x426   :  { %v1095_v62 = vadd.f32 %v1048_v58, %v6677_v60  ;;  %v1097_v0 = vadd.f32 %v1089_v59, %v6678_v63  ;;  %v1050_v1 = vpop.f32.mrb[30].mxu0  ;;  %v1091_v5 = vpop.f32.mrb[30].mxu1  ;;  %v5376_v52 = vld [vmem:[%s6623_s4 + $0xcc] ss:$16 sps:$4 sm:$0xff]   ;;  %v5388_v54 = vld [vmem:[%s6623_s4 + $0xc8] ss:$16 sps:$4 sm:$0xff]  }
 0x427   :  { %v3675_v6 = vmul.f32 -1.442695, %v1094_v53  ;;  %v1051_v7 = vpop.f32.mrb[31].mxu0  ;;  %v1092_v8 = vpop.f32.mrb[31].mxu1  ;;  %v5382_v53 = vld [vmem:[%s6623_s4 + $0xc0] ss:$16 sps:$4 sm:$0xff]  }
 0x428   :  { %v3676_v10 = vmul.f32 -1.442695, %v1095_v62  ;;  %v3677_v11 = vmul.f32 -1.442695, %v1097_v0  ;;  %v5400_v58 = vld [vmem:[%s6623_s4 + $0xec] ss:$16 sps:$4 sm:$0xff]  }
 0x429   :  { %4200 = vpow2.f32 %v3675_v6  ;;  %v6679_v62 = vld [vmem:[#allocation16_spill] sm:$0xff]  ;;  %v6680_v0 = vld [vmem:[#allocation17_spill] sm:$0xff]  ;;  %v6681_v7 = vld [vmem:[#allocation18_spill] sm:$0xff] }
 0x42a   :  { %4202 = vpow2.f32 %v3676_v10  ;;  %v6682_v10 = vld [vmem:[#allocation19_spill] sm:$0xff] }
 0x42b   :  { %4204 = vpow2.f32 %v3677_v11 }
 0x42c   :  { %4206 = vtanh.f32 %v1096_v57  ;;  %v5394_v57 = vld [vmem:[%s6623_s4 + $0xe4] ss:$16 sps:$4 sm:$0xff]  }
 0x433   :  { %v4201_v39 = vpop.eup %4200 }
 0x434   :  { %v4203_v40 = vpop.eup %4202  ;;  %v1104_v41 = vadd.f32 1.0, %v4201_v39 }
 0x435   :  { %v1105_v42 = vadd.f32 1.0, %v4203_v40  ;;  %v4205_v43 = vpop.eup %4204 }
 0x436   :  { %4208 = vrcp.f32 %v1104_v41  ;;  %v4207_v46 = vpop.eup %4206  ;;  %v1114_v25 = vadd.f32 1.0, %v4205_v43 }
 0x437   :  { %4210 = vrcp.f32 %v1105_v42 }
 0x438   :  { %4212 = vrcp.f32 %v1114_v25 }
 0x440   :  { %v4209_v3 = vpop.eup %4208 }
 0x441   :  { %v4211_v24 = vpop.eup %4210  ;;  %v1118_v23 = vmul.f32 %v4209_v3, %v4207_v46 }
 0x442   :  { %v1117_v27 = vmul.f32 %v4211_v24, %v5170_v45  ;;  %v4213_v28 = vpop.eup %4212  ;;  %v5340_v45 = vld [vmem:[%s6623_s4 + $0x88] ss:$16 sps:$4 sm:$0xff]  }
 0x444   :  { %v5261_v26 = vadd.f32 %v1118_v23, %v1117_v27 }
 0x446   :  { %4214 = vtanh.f32 %v5261_v26 }
 0x450   :  { %v4215_v35 = vpop.eup %4214 }
 0x451   :  { %v5264_v36 = vmul.f32 %v4215_v35, %v4213_v28 }
 0x453   :  { %v1129_v17 = vpack.c.bf16 %v5264_v36, %v5264_v36 }
 0x455   :  { %1163 = vmatmul.mubr.bf16.vlgmr.msra.gmra.mrb[32].mxu0 %v1129_v17  ;;  %1204 = vmatmul.mubr.bf16.vlgmr.msra.gmra.mrb[32].mxu1 %v1129_v17 }
 0x456   :  { %1249 = vmatpush1.bf16.msra.mxu0 %v5180_v15  ;;  %1290 = vmatpush1.bf16.msra.mxu1 %v5186_v18 }
 0x457   :  { %1250 = vmatprep.subr.bf16.mxu0 %v5192_v2  ;;  %1291 = vmatprep.subr.bf16.mxu1 %v5198_v21 }
 0x458   :  { %1280 = vmatprep.mubr.bf16.mxu0 %v6673_v55  ;;  %1321 = vmatprep.mubr.bf16.mxu1 %v6673_v55 }
 0x45a   :  { %1251 = vmatpush1.bf16.msra.mxu0 %v5206_v44  ;;  %1292 = vmatpush1.bf16.msra.mxu1 %v5212_v19 }
 0x45b   :  { %1252 = vmatprep.subr.bf16.mxu0 %v5218_v38  ;;  %1293 = vmatprep.subr.bf16.mxu1 %v5280_v22 }
 0x45e   :  { %1253 = vmatpush1.bf16.msra.mxu0 %v5286_v61  ;;  %1294 = vmatpush1.bf16.msra.mxu1 %v5292_v4 }
 0x45f   :  { %1254 = vmatprep.subr.bf16.mxu0 %v5298_v14  ;;  %1295 = vmatprep.subr.bf16.mxu1 %v5304_v20 }
 0x462   :  { %1255 = vmatpush1.bf16.msra.mxu0 %v5310_v29  ;;  %1296 = vmatpush1.bf16.msra.mxu1 %v5316_v30 }
 0x463   :  { %1256 = vmatprep.subr.bf16.mxu0 %v5322_v16  ;;  %1297 = vmatprep.subr.bf16.mxu1 %v5328_v33 }
 0x466   :  { %1257 = vmatpush1.bf16.msra.mxu0 %v5334_v37  ;;  %1298 = vmatpush1.bf16.msra.mxu1 %v5340_v45 }
 0x467   :  { %1258 = vmatprep.subr.bf16.mxu0 %v5346_v31  ;;  %1299 = vmatprep.subr.bf16.mxu1 %v5352_v48 }
 0x46a   :  { %1259 = vmatpush1.bf16.msra.mxu0 %v5358_v56  ;;  %1300 = vmatpush1.bf16.msra.mxu1 %v5364_v50 }
 0x46b   :  { %1260 = vmatprep.subr.bf16.mxu0 %v5370_v51  ;;  %1301 = vmatprep.subr.bf16.mxu1 %v5376_v52 }
 0x46e   :  { %1261 = vmatpush1.bf16.msra.mxu0 %v5382_v53  ;;  %1302 = vmatpush1.bf16.msra.mxu1 %v5388_v54 }
 0x46f   :  { %1262 = vmatprep.subr.bf16.mxu0 %v5394_v57  ;;  %1303 = vmatprep.subr.bf16.mxu1 %v5400_v58 }
 0x472   :  { %1263 = vmatpush1.bf16.msra.mxu0 %v4922_v12  ;;  %1304 = vmatpush1.bf16.msra.mxu1 %v4927_v13 }
 0x473   :  { %1366 = vmatprep.subr.bf16.mxu0 %v5247_v47  ;;  %1407 = vmatprep.subr.bf16.mxu1 %v5253_v49 }
 0x528   :  { %v1164_v59 = vpop.f32.mrb[32].mxu0  ;;  %v1205_v60 = vpop.f32.mrb[32].mxu1 }
 0x529   :  { %v1212_v63 = vadd.f32 %v1164_v59, %v6679_v62  ;;  %v1214_v1 = vadd.f32 %v1205_v60, %v6680_v0  ;;  %v1166_v5 = vpop.f32.mrb[33].mxu0  ;;  %v1207_v6 = vpop.f32.mrb[33].mxu1 }
 0x52a   :  { %v1213_v8 = vadd.f32 %v1166_v5, %v6681_v7  ;;  %v1215_v11 = vadd.f32 %v1207_v6, %v6682_v10  ;;  %v1168_v39 = vpop.f32.mrb[34].mxu0  ;;  %v1209_v12 = vpop.f32.mrb[34].mxu1  ;;  %v5458_v6 = vld [vmem:[%s6623_s4 + $0xe8] ss:$16 sps:$4 sm:$0xff]   ;;  %v6683_v10 = vld [vmem:[#allocation20_spill] sm:$0xff] }
 0x52b   :  { %v3678_v40 = vmul.f32 -1.442695, %v1212_v63  ;;  %v1169_v13 = vpop.f32.mrb[35].mxu0  ;;  %v1210_v41 = vpop.f32.mrb[35].mxu1  ;;  %v6684_v39 = vld [vmem:[#allocation21_spill] sm:$0xff] }
 0x52c   :  { %v3679_v42 = vmul.f32 -1.442695, %v1213_v8  ;;  %v3680_v43 = vmul.f32 -1.442695, %v1215_v11  ;;  %v6685_v41 = vld [vmem:[#allocation22_spill] sm:$0xff] }
 0x52d   :  { %4216 = vpow2.f32 %v3678_v40 }
 0x52e   :  { %4218 = vpow2.f32 %v3679_v42 }
 0x52f   :  { %4220 = vpow2.f32 %v3680_v43  ;;  %v6686_v43 = vld [vmem:[#allocation23_spill] sm:$0xff] }
 0x530   :  { %4222 = vtanh.f32 %v1214_v1 }
 0x537   :  { %v4217_v46 = vpop.eup %4216 }
 0x538   :  { %v4219_v3 = vpop.eup %4218  ;;  %v1222_v24 = vadd.f32 1.0, %v4217_v46 }
 0x539   :  { %v1223_v23 = vadd.f32 1.0, %v4219_v3  ;;  %v4221_v25 = vpop.eup %4220 }
 0x53a   :  { %4224 = vrcp.f32 %v1222_v24  ;;  %v4223_v27 = vpop.eup %4222  ;;  %v1232_v59 = vadd.f32 1.0, %v4221_v25 }
 0x53b   :  { %4226 = vrcp.f32 %v1223_v23 }
 0x53c   :  { %4228 = vrcp.f32 %v1232_v59 }
 0x544   :  { %v4225_v28 = vpop.eup %4224 }
 0x545   :  { %v4227_v35 = vpop.eup %4226  ;;  %v1236_v17 = vmul.f32 %v4225_v28, %v4223_v27 }
 0x546   :  { %v1235_v60 = vmul.f32 %v4227_v35, %v5261_v26  ;;  %v4229_v63 = vpop.eup %4228  ;;  %v5452_v26 = vld [vmem:[%s6623_s4 + $0xe0] ss:$16 sps:$4 sm:$0xff]  }
 0x548   :  { %v5412_v62 = vadd.f32 %v1236_v17, %v1235_v60 }
 0x54a   :  { %4230 = vtanh.f32 %v5412_v62 }
 0x554   :  { %v4231_v0 = vpop.eup %4230 }
 0x555   :  { %v5415_v5 = vmul.f32 %v4231_v0, %v4229_v63 }
 0x557   :  { %v1247_v1 = vpack.c.bf16 %v5415_v5, %v5415_v5 }
 0x559   :  { %1281 = vmatmul.mubr.bf16.vlgmr.msra.gmra.mrb[36].mxu0 %v1247_v1  ;;  %1322 = vmatmul.mubr.bf16.vlgmr.msra.gmra.mrb[36].mxu1 %v1247_v1 }
 0x55a   :  { %1367 = vmatpush1.bf16.msra.mxu0 %v5180_v15  ;;  %1408 = vmatpush1.bf16.msra.mxu1 %v5186_v18 }
 0x55b   :  { %1368 = vmatprep.subr.bf16.mxu0 %v5192_v2  ;;  %1409 = vmatprep.subr.bf16.mxu1 %v5198_v21 }
 0x55c   :  { %1398 = vmatprep.mubr.bf16.mxu0 %v6673_v55  ;;  %1439 = vmatprep.mubr.bf16.mxu1 %v6673_v55 }
 0x55e   :  { %1369 = vmatpush1.bf16.msra.mxu0 %v5206_v44  ;;  %1410 = vmatpush1.bf16.msra.mxu1 %v5212_v19 }
 0x55f   :  { %1370 = vmatprep.subr.bf16.mxu0 %v5218_v38  ;;  %1411 = vmatprep.subr.bf16.mxu1 %v5280_v22 }
 0x562   :  { %1371 = vmatpush1.bf16.msra.mxu0 %v5286_v61  ;;  %1412 = vmatpush1.bf16.msra.mxu1 %v5292_v4 }
 0x563   :  { %1372 = vmatprep.subr.bf16.mxu0 %v5298_v14  ;;  %1413 = vmatprep.subr.bf16.mxu1 %v5304_v20 }
 0x566   :  { %1373 = vmatpush1.bf16.msra.mxu0 %v5310_v29  ;;  %1414 = vmatpush1.bf16.msra.mxu1 %v5316_v30 }
 0x567   :  { %1374 = vmatprep.subr.bf16.mxu0 %v5322_v16  ;;  %1415 = vmatprep.subr.bf16.mxu1 %v5328_v33 }
 0x56a   :  { %1375 = vmatpush1.bf16.msra.mxu0 %v5334_v37  ;;  %1416 = vmatpush1.bf16.msra.mxu1 %v5340_v45 }
 0x56b   :  { %1376 = vmatprep.subr.bf16.mxu0 %v5346_v31  ;;  %1417 = vmatprep.subr.bf16.mxu1 %v5352_v48 }
 0x56e   :  { %1377 = vmatpush1.bf16.msra.mxu0 %v5358_v56  ;;  %1418 = vmatpush1.bf16.msra.mxu1 %v5364_v50 }
 0x56f   :  { %1378 = vmatprep.subr.bf16.mxu0 %v5370_v51  ;;  %1419 = vmatprep.subr.bf16.mxu1 %v5376_v52 }
 0x572   :  { %1379 = vmatpush1.bf16.msra.mxu0 %v5382_v53  ;;  %1420 = vmatpush1.bf16.msra.mxu1 %v5388_v54 }
 0x573   :  { %1380 = vmatprep.subr.bf16.mxu0 %v5394_v57  ;;  %1421 = vmatprep.subr.bf16.mxu1 %v5400_v58 }
 0x576   :  { %1381 = vmatpush1.bf16.msra.mxu0 %v5452_v26  ;;  %1422 = vmatpush1.bf16.msra.mxu1 %v5458_v6 }
 0x577   :  { %1484 = vmatprep.subr.bf16.mxu0 %v5247_v47  ;;  %1525 = vmatprep.subr.bf16.mxu1 %v5253_v49 }
 0x62c   :  { %v1282_v7 = vpop.f32.mrb[36].mxu0  ;;  %v1323_v8 = vpop.f32.mrb[36].mxu1 }
 0x62d   :  { %v1330_v11 = vadd.f32 %v1282_v7, %v6683_v10  ;;  %v1332_v12 = vadd.f32 %v1323_v8, %v6684_v39  ;;  %v1284_v40 = vpop.f32.mrb[37].mxu0  ;;  %v1325_v13 = vpop.f32.mrb[37].mxu1 }
 0x62e   :  { %v1331_v42 = vadd.f32 %v1284_v40, %v6685_v41  ;;  %v1333_v46 = vadd.f32 %v1325_v13, %v6686_v43  ;;  %v1286_v3 = vpop.f32.mrb[38].mxu0  ;;  %v1327_v24 = vpop.f32.mrb[38].mxu1 }
 0x62f   :  { %v3681_v23 = vmul.f32 -1.442695, %v1330_v11  ;;  %v1287_v25 = vpop.f32.mrb[39].mxu0  ;;  %v1328_v27 = vpop.f32.mrb[39].mxu1  ;;  %v4032_v24 = vld [vmem:[%s6625_s6] ss:$16 sps:$4 sm:$0xff]  }
 0x630   :  { %v3682_v47 = vmul.f32 -1.442695, %v1331_v42  ;;  %v3683_v49 = vmul.f32 -1.442695, %v1333_v46  ;;  %v4040_v27 = vld [vmem:[%s6625_s6 + $0x24] ss:$16 sps:$4 sm:$0xff]  }
 0x631   :  { %4232 = vpow2.f32 %v3681_v23  ;;  %v4035_v23 = vld [vmem:[%s6625_s6 + $0x8] ss:$16 sps:$4 sm:$0xff]  }
 0x632   :  { %4234 = vpow2.f32 %v3682_v47  ;;  %v4043_v47 = vld [vmem:[%s6625_s6 + $0x2c] ss:$16 sps:$4 sm:$0xff]  }
 0x633   :  { %4236 = vpow2.f32 %v3683_v49  ;;  %v4038_v49 = vld [vmem:[%s6625_s6 + $0x20] ss:$16 sps:$4 sm:$0xff]  }
 0x634   :  { %4238 = vtanh.f32 %v1332_v12 }
 0x63b   :  { %v4233_v28 = vpop.eup %4232 }
 0x63c   :  { %v4235_v35 = vpop.eup %4234  ;;  %v1340_v17 = vadd.f32 1.0, %v4233_v28  ;;  %v4041_v28 = vld [vmem:[%s6625_s6 + $0x28] ss:$16 sps:$4 sm:$0xff]  }
 0x63d   :  { %v1341_v59 = vadd.f32 1.0, %v4235_v35  ;;  %v4237_v60 = vpop.eup %4236  ;;  %v4046_v35 = vld [vmem:[%s6625_s6 + $0x44] ss:$16 sps:$4 sm:$0xff]  }
 0x63e   :  { %4240 = vrcp.f32 %v1340_v17  ;;  %v4239_v63 = vpop.eup %4238  ;;  %v1350_v8 = vadd.f32 1.0, %v4237_v60  ;;  %v4049_v17 = vld [vmem:[%s6625_s6 + $0x4c] ss:$16 sps:$4 sm:$0xff]   ;;  %v4047_v60 = vld [vmem:[%s6625_s6 + $0x48] ss:$16 sps:$4 sm:$0xff]  }
 0x63f   :  { %4242 = vrcp.f32 %v1341_v59  ;;  %v4044_v59 = vld [vmem:[%s6625_s6 + $0x40] ss:$16 sps:$4 sm:$0xff]  }
 0x640   :  { %4244 = vrcp.f32 %v1350_v8  ;;  %v4058_v8 = vld [vmem:[%s6625_s6 + $0x84] ss:$16 sps:$4 sm:$0xff]  }
 0x648   :  { %v4241_v0 = vpop.eup %4240 }
 0x649   :  { %v4243_v1 = vpop.eup %4242  ;;  %v1354_v7 = vmul.f32 %v4241_v0, %v4239_v63  ;;  %v4052_v63 = vld [vmem:[%s6625_s6 + $0x64] ss:$16 sps:$4 sm:$0xff]   ;;  %v4055_v0 = vld [vmem:[%s6625_s6 + $0x6c] ss:$16 sps:$4 sm:$0xff]  }
 0x64a   :  { %v1353_v10 = vmul.f32 %v4243_v1, %v5412_v62  ;;  %v4245_v39 = vpop.eup %4244  ;;  %v4050_v1 = vld [vmem:[%s6625_s6 + $0x60] ss:$16 sps:$4 sm:$0xff]  }
 0x64c   :  { %v5468_v11 = vadd.f32 %v1354_v7, %v1353_v10  ;;  %v4053_v7 = vld [vmem:[%s6625_s6 + $0x68] ss:$16 sps:$4 sm:$0xff]   ;;  %v4061_v10 = vld [vmem:[%s6625_s6 + $0x8c] ss:$16 sps:$4 sm:$0xff]  }
 0x64e   :  { %4246 = vtanh.f32 %v5468_v11 }
 0x658   :  { %v4247_v40 = vpop.eup %4246 }
 0x659   :  { %v5471_v13 = vmul.f32 %v4247_v40, %v4245_v39  ;;  %v4059_v39 = vld [vmem:[%s6625_s6 + $0x88] ss:$16 sps:$4 sm:$0xff]   ;;  %v4064_v40 = vld [vmem:[%s6625_s6 + $0xa4] ss:$16 sps:$4 sm:$0xff]  }
 0x65b   :  { %v1365_v12 = vpack.c.bf16 %v5471_v13, %v5471_v13 }
 0x65d   :  { %1399 = vmatmul.mubr.bf16.vlgmr.msra.gmra.mrb[40].mxu0 %v1365_v12  ;;  %1440 = vmatmul.mubr.bf16.vlgmr.msra.gmra.mrb[40].mxu1 %v1365_v12  ;;  %v4067_v12 = vld [vmem:[%s6625_s6 + $0xac] ss:$16 sps:$4 sm:$0xff]  }
 0x65e   :  { %1485 = vmatpush1.bf16.msra.mxu0 %v5180_v15  ;;  %1526 = vmatpush1.bf16.msra.mxu1 %v5186_v18  ;;  %v4034_v15 = vld [vmem:[%s6625_s6 + $0x4] ss:$16 sps:$4 sm:$0xff]   ;;  %v4037_v18 = vld [vmem:[%s6625_s6 + $0xc] ss:$16 sps:$4 sm:$0xff]  }
 0x65f   :  { %1486 = vmatprep.subr.bf16.mxu0 %v5192_v2  ;;  %1527 = vmatprep.subr.bf16.mxu1 %v5198_v21 }
 0x660   :  { %1516 = vmatprep.mubr.bf16.mxu0 %v6673_v55  ;;  %1557 = vmatprep.mubr.bf16.mxu1 %v6673_v55 }
 0x662   :  { %1487 = vmatpush1.bf16.msra.mxu0 %v5206_v44  ;;  %1528 = vmatpush1.bf16.msra.mxu1 %v5212_v19  ;;  %v6687_v44 = vld [vmem:[#allocation24_spill] sm:$0xff] }
 0x663   :  { %1488 = vmatprep.subr.bf16.mxu0 %v5218_v38  ;;  %1529 = vmatprep.subr.bf16.mxu1 %v5280_v22  ;;  %v6688_v38 = vld [vmem:[#allocation25_spill] sm:$0xff] }
 0x666   :  { %1489 = vmatpush1.bf16.msra.mxu0 %v5286_v61  ;;  %1530 = vmatpush1.bf16.msra.mxu1 %v5292_v4 }
 0x667   :  { %1490 = vmatprep.subr.bf16.mxu0 %v5298_v14  ;;  %1531 = vmatprep.subr.bf16.mxu1 %v5304_v20  ;;  %v6689_v14 = vld [vmem:[#allocation26_spill] sm:$0xff] }
 0x66a   :  { %1491 = vmatpush1.bf16.msra.mxu0 %v5310_v29  ;;  %1532 = vmatpush1.bf16.msra.mxu1 %v5316_v30  ;;  %v6690_v29 = vld [vmem:[#allocation27_spill] sm:$0xff] }
 0x66b   :  { %1492 = vmatprep.subr.bf16.mxu0 %v5322_v16  ;;  %1533 = vmatprep.subr.bf16.mxu1 %v5328_v33 }
 0x66e   :  { %1493 = vmatpush1.bf16.msra.mxu0 %v5334_v37  ;;  %1534 = vmatpush1.bf16.msra.mxu1 %v5340_v45 }
 0x66f   :  { %1494 = vmatprep.subr.bf16.mxu0 %v5346_v31  ;;  %1535 = vmatprep.subr.bf16.mxu1 %v5352_v48 }
 0x672   :  { %1495 = vmatpush1.bf16.msra.mxu0 %v5358_v56  ;;  %1536 = vmatpush1.bf16.msra.mxu1 %v5364_v50 }
 0x673   :  { %1496 = vmatprep.subr.bf16.mxu0 %v5370_v51  ;;  %1537 = vmatprep.subr.bf16.mxu1 %v5376_v52 }
 0x676   :  { %1497 = vmatpush1.bf16.msra.mxu0 %v5382_v53  ;;  %1538 = vmatpush1.bf16.msra.mxu1 %v5388_v54 }
 0x677   :  { %1498 = vmatprep.subr.bf16.mxu0 %v5394_v57  ;;  %1539 = vmatprep.subr.bf16.mxu1 %v5400_v58 }
 0x67a   :  { %1499 = vmatpush1.bf16.msra.mxu0 %v5452_v26  ;;  %1540 = vmatpush1.bf16.msra.mxu1 %v5458_v6 }
 0x67b   :  { %1856 = vmatprep.subr.bf16.mxu0 %v4034_v15  ;;  %1929 = vmatprep.subr.bf16.mxu1 %v4037_v18  ;;  %v4062_v15 = vld [vmem:[%s6625_s6 + $0xa0] ss:$16 sps:$4 sm:$0xff]   ;;  %v4065_v18 = vld [vmem:[%s6625_s6 + $0xa8] ss:$16 sps:$4 sm:$0xff]  }
 0x730   :  { %v1400_v2 = vpop.f32.mrb[40].mxu0  ;;  %v1441_v21 = vpop.f32.mrb[40].mxu1 }
 0x731   :  { %v1448_v19 = vadd.f32 %v1400_v2, %v6687_v44  ;;  %v1450_v22 = vadd.f32 %v1441_v21, %v6688_v38  ;;  %v1402_v61 = vpop.f32.mrb[41].mxu0  ;;  %v1443_v4 = vpop.f32.mrb[41].mxu1  ;;  %v4070_v2 = vld [vmem:[%s6625_s6 + $0xc4] ss:$16 sps:$4 sm:$0xff]   ;;  %v4073_v21 = vld [vmem:[%s6625_s6 + $0xcc] ss:$16 sps:$4 sm:$0xff]  }
 0x732   :  { %v1449_v20 = vadd.f32 %v1402_v61, %v6689_v14  ;;  %v1451_v30 = vadd.f32 %v1443_v4, %v6690_v29  ;;  %v1404_v16 = vpop.f32.mrb[42].mxu0  ;;  %v1445_v33 = vpop.f32.mrb[42].mxu1  ;;  %v4068_v44 = vld [vmem:[%s6625_s6 + $0xc0] ss:$16 sps:$4 sm:$0xff]   ;;  %v4076_v38 = vld [vmem:[%s6625_s6 + $0xe4] ss:$16 sps:$4 sm:$0xff]   ;;  %v1671_v14 = vpack.c.bf16 %v5127_v9, %v5081_v32  ;;  %v1673_v29 = vpack.c.bf16 %v5471_v13, %v5415_v5 }
 0x733   :  { %v3684_v37 = vmul.f32 -1.442695, %v1448_v19  ;;  %v1405_v45 = vpop.f32.mrb[43].mxu0  ;;  %v1446_v31 = vpop.f32.mrb[43].mxu1  ;;  %v4071_v19 = vld [vmem:[%s6625_s6 + $0xc8] ss:$16 sps:$4 sm:$0xff]  }
 0x734   :  { %v3685_v48 = vmul.f32 -1.442695, %v1449_v20  ;;  %v3686_v56 = vmul.f32 -1.442695, %v1451_v30  ;;  %v4074_v61 = vld [vmem:[%s6625_s6 + $0xe0] ss:$16 sps:$4 sm:$0xff]   ;;  %v1672_v20 = vpack.c.bf16 %v5264_v36, %v5173_v34 }
 0x735   :  { %4248 = vpow2.f32 %v3684_v37  ;;  %v4077_v4 = vld [vmem:[%s6625_s6 + $0xe8] ss:$16 sps:$4 sm:$0xff]   ;;  %v5632_v32 = vld [vmem:[%s6626_s7 + $0x4] ss:$16 sps:$4 sm:$0xff]   ;;  %v5637_v9 = vld [vmem:[%s6626_s7 + $0xc] ss:$16 sps:$4 sm:$0xff]  }
 0x736   :  { %4250 = vpow2.f32 %v3685_v48  ;;  %v5642_v34 = vld [vmem:[%s6626_s7] ss:$16 sps:$4 sm:$0xff]   ;;  %v5647_v36 = vld [vmem:[%s6626_s7 + $0x8] ss:$16 sps:$4 sm:$0xff]   ;;  %v5656_v5 = vld [vmem:[%s6626_s7 + $0x24] ss:$16 sps:$4 sm:$0xff]  }
 0x737   :  { %4252 = vpow2.f32 %v3686_v56  ;;  %v5661_v13 = vld [vmem:[%s6626_s7 + $0x2c] ss:$16 sps:$4 sm:$0xff]   ;;  %v5666_v30 = vld [vmem:[%s6626_s7 + $0x20] ss:$16 sps:$4 sm:$0xff]   ;;  %v5671_v16 = vld [vmem:[%s6626_s7 + $0x28] ss:$16 sps:$4 sm:$0xff]  }
 0x738   :  { %4254 = vtanh.f32 %v1450_v22  ;;  %v4079_v22 = vld [vmem:[%s6625_s6 + $0xec] ss:$16 sps:$4 sm:$0xff]   ;;  %v5680_v33 = vld [vmem:[%s6626_s7 + $0x44] ss:$16 sps:$4 sm:$0xff]   ;;  %v5690_v45 = vld [vmem:[%s6626_s7 + $0x40] ss:$16 sps:$4 sm:$0xff]  }
 0x739   :  { %v5685_v37 = vld [vmem:[%s6626_s7 + $0x4c] ss:$16 sps:$4 sm:$0xff]   ;;  %v5695_v31 = vld [vmem:[%s6626_s7 + $0x48] ss:$16 sps:$4 sm:$0xff]   ;;  %v5704_v48 = vld [vmem:[%s6626_s7 + $0x64] ss:$16 sps:$4 sm:$0xff]  }
 0x73a   :  { %v5709_v56 = vld [vmem:[%s6626_s7 + $0x6c] ss:$16 sps:$4 sm:$0xff]  }
 0x73f   :  { %v4249_v50 = vpop.eup %4248 }
 0x740   :  { %v4251_v51 = vpop.eup %4250  ;;  %v1458_v52 = vadd.f32 1.0, %v4249_v50  ;;  %v5714_v50 = vld [vmem:[%s6626_s7 + $0x60] ss:$16 sps:$4 sm:$0xff]  }
 0x741   :  { %v1459_v53 = vadd.f32 1.0, %v4251_v51  ;;  %v4253_v54 = vpop.eup %4252  ;;  %v5719_v51 = vld [vmem:[%s6626_s7 + $0x68] ss:$16 sps:$4 sm:$0xff]  }
 0x742   :  { %4256 = vrcp.f32 %v1458_v52  ;;  %v4255_v57 = vpop.eup %4254  ;;  %v1468_v6 = vadd.f32 1.0, %v4253_v54  ;;  %v5728_v52 = vld [vmem:[%s6626_s7 + $0x84] ss:$16 sps:$4 sm:$0xff]   ;;  %v5738_v54 = vld [vmem:[%s6626_s7 + $0x80] ss:$16 sps:$4 sm:$0xff]  }
 0x743   :  { %4258 = vrcp.f32 %v1459_v53  ;;  %v5733_v53 = vld [vmem:[%s6626_s7 + $0x8c] ss:$16 sps:$4 sm:$0xff]  }
 0x744   :  { %4260 = vrcp.f32 %v1468_v6  ;;  %v5767_v6 = vld [vmem:[%s6626_s7 + $0xa8] ss:$16 sps:$4 sm:$0xff]  }
 0x74c   :  { %v4257_v58 = vpop.eup %4256 }
 0x74d   :  { %v4259_v62 = vpop.eup %4258  ;;  %v1472_v26 = vmul.f32 %v4257_v58, %v4255_v57  ;;  %v5743_v57 = vld [vmem:[%s6626_s7 + $0x88] ss:$16 sps:$4 sm:$0xff]   ;;  %v5752_v58 = vld [vmem:[%s6626_s7 + $0xa4] ss:$16 sps:$4 sm:$0xff]  }
 0x74e   :  { %v1471_v41 = vmul.f32 %v4259_v62, %v5468_v11  ;;  %v4261_v43 = vpop.eup %4260  ;;  %v4056_v11 = vld [vmem:[%s6625_s6 + $0x80] ss:$16 sps:$4 sm:$0xff]   ;;  %v5757_v62 = vld [vmem:[%s6626_s7 + $0xac] ss:$16 sps:$4 sm:$0xff]  }
 0x750   :  { %v5518_v42 = vadd.f32 %v1472_v26, %v1471_v41  ;;  %v5762_v26 = vld [vmem:[%s6626_s7 + $0xa0] ss:$16 sps:$4 sm:$0xff]   ;;  %v5776_v41 = vld [vmem:[%s6626_s7 + $0xc4] ss:$16 sps:$4 sm:$0xff]  }
 0x752   :  { %4262 = vtanh.f32 %v5518_v42 }
 0x75c   :  { %v4263_v46 = vpop.eup %4262 }
 0x75d   :  { %v5521_v3 = vmul.f32 %v4263_v46, %v4261_v43  ;;  %v5781_v43 = vld [vmem:[%s6626_s7 + $0xcc] ss:$16 sps:$4 sm:$0xff]   ;;  %v5786_v46 = vld [vmem:[%s6626_s7 + $0xc0] ss:$16 sps:$4 sm:$0xff]  }
 0x75f   :  { %v1483_v25 = vpack.c.bf16 %v5521_v3, %v5521_v3 }
 0x761   :  { %1517 = vmatmul.mubr.bf16.vlgmr.msra.gmra.mrb[44].mxu0 %v1483_v25  ;;  %1558 = vmatmul.mubr.bf16.vlgmr.msra.gmra.mrb[44].mxu1 %v1483_v25  ;;  %v5805_v25 = vld [vmem:[%s6626_s7 + $0xec] ss:$16 sps:$4 sm:$0xff]  }
 0x762   :  { %1857 = vmatpush1.bf16.msra.mxu0 %v4032_v24  ;;  %1930 = vmatpush1.bf16.msra.mxu1 %v4035_v23  ;;  %v5791_v24 = vld [vmem:[%s6626_s7 + $0xc8] ss:$16 sps:$4 sm:$0xff]   ;;  %v5800_v23 = vld [vmem:[%s6626_s7 + $0xe4] ss:$16 sps:$4 sm:$0xff]  }
 0x763   :  { %1858 = vmatprep.subr.bf16.mxu0 %v4040_v27  ;;  %1931 = vmatprep.subr.bf16.mxu1 %v4043_v47  ;;  %v5810_v27 = vld [vmem:[%s6626_s7 + $0xe0] ss:$16 sps:$4 sm:$0xff]   ;;  %v5815_v47 = vld [vmem:[%s6626_s7 + $0xe8] ss:$16 sps:$4 sm:$0xff]  }
 0x764   :  { %1888 = vmatprep.mubr.bf16.mxu0 %v6673_v55  ;;  %1961 = vmatprep.mubr.bf16.mxu1 %v6673_v55 }
 0x766   :  { %1859 = vmatpush1.bf16.msra.mxu0 %v4038_v49  ;;  %1932 = vmatpush1.bf16.msra.mxu1 %v4041_v28 }
 0x767   :  { %1860 = vmatprep.subr.bf16.mxu0 %v4046_v35  ;;  %1933 = vmatprep.subr.bf16.mxu1 %v4049_v17  ;;  %v6691_v35 = vld [vmem:[#allocation28_spill] sm:$0xff] }
 0x76a   :  { %1861 = vmatpush1.bf16.msra.mxu0 %v4044_v59  ;;  %1934 = vmatpush1.bf16.msra.mxu1 %v4047_v60  ;;  %v6692_v59 = vld [vmem:[#allocation29_spill] sm:$0xff] }
 0x76b   :  { %1862 = vmatprep.subr.bf16.mxu0 %v4052_v63  ;;  %1935 = vmatprep.subr.bf16.mxu1 %v4055_v0 }
 0x76e   :  { %1863 = vmatpush1.bf16.msra.mxu0 %v4050_v1  ;;  %1936 = vmatpush1.bf16.msra.mxu1 %v4053_v7  ;;  %v6693_v1 = vld [vmem:[#allocation30_spill] sm:$0xff] }
 0x76f   :  { %1864 = vmatprep.subr.bf16.mxu0 %v4058_v8  ;;  %1937 = vmatprep.subr.bf16.mxu1 %v4061_v10  ;;  %v6694_v8 = vld [vmem:[#allocation31_spill] sm:$0xff] }
 0x772   :  { %1865 = vmatpush1.bf16.msra.mxu0 %v4056_v11  ;;  %1938 = vmatpush1.bf16.msra.mxu1 %v4059_v39 }
 0x773   :  { %1866 = vmatprep.subr.bf16.mxu0 %v4064_v40  ;;  %1939 = vmatprep.subr.bf16.mxu1 %v4067_v12 }
 0x776   :  { %1867 = vmatpush1.bf16.msra.mxu0 %v4062_v15  ;;  %1940 = vmatpush1.bf16.msra.mxu1 %v4065_v18 }
 0x777   :  { %1868 = vmatprep.subr.bf16.mxu0 %v4070_v2  ;;  %1941 = vmatprep.subr.bf16.mxu1 %v4073_v21 }
 0x77a   :  { %1869 = vmatpush1.bf16.msra.mxu0 %v4068_v44  ;;  %1942 = vmatpush1.bf16.msra.mxu1 %v4071_v19 }
 0x77b   :  { %1870 = vmatprep.subr.bf16.mxu0 %v4076_v38  ;;  %1943 = vmatprep.subr.bf16.mxu1 %v4079_v22 }
 0x77e   :  { %1871 = vmatpush1.bf16.msra.mxu0 %v4074_v61  ;;  %1944 = vmatpush1.bf16.msra.mxu1 %v4077_v4 }
 0x77f   :  { %2203 = vmatprep.subr.bf16.mxu0 %v5632_v32  ;;  %2244 = vmatprep.subr.bf16.mxu1 %v5637_v9 }
 0x781   :  { %1889 = vmatmul.mubr.bf16.vlgmr.msra.gmra.mrb[48].mxu0 %v1671_v14  ;;  %1962 = vmatmul.mubr.bf16.vlgmr.msra.gmra.mrb[48].mxu1 %v1671_v14 }
 0x782   :  { %1898 = vmatprep.mubr.bf16.mxu0 %v6673_v55  ;;  %1971 = vmatprep.mubr.bf16.mxu1 %v6673_v55 }
 0x783   :  { %2204 = vmatpush1.bf16.msra.mxu0 %v5642_v34  ;;  %2245 = vmatpush1.bf16.msra.mxu1 %v5647_v36 }
 0x784   :  { %2205 = vmatprep.subr.bf16.mxu0 %v5656_v5  ;;  %2246 = vmatprep.subr.bf16.mxu1 %v5661_v13 }
 0x787   :  { %2206 = vmatpush1.bf16.msra.mxu0 %v5666_v30  ;;  %2247 = vmatpush1.bf16.msra.mxu1 %v5671_v16 }
 0x788   :  { %2207 = vmatprep.subr.bf16.mxu0 %v5680_v33  ;;  %2248 = vmatprep.subr.bf16.mxu1 %v5685_v37 }
 0x789   :  { %1899 = vmatmul.mubr.bf16.gmra.mrb[52].mxu0 %v1672_v20  ;;  %1972 = vmatmul.mubr.bf16.gmra.mrb[52].mxu1 %v1672_v20 }
 0x78a   :  { %1908 = vmatprep.mubr.bf16.mxu0 %v6673_v55  ;;  %1981 = vmatprep.mubr.bf16.mxu1 %v6673_v55 }
 0x78b   :  { %2208 = vmatpush1.bf16.msra.mxu0 %v5690_v45  ;;  %2249 = vmatpush1.bf16.msra.mxu1 %v5695_v31 }
 0x78c   :  { %2209 = vmatprep.subr.bf16.mxu0 %v5704_v48  ;;  %2250 = vmatprep.subr.bf16.mxu1 %v5709_v56 }
 0x78f   :  { %2210 = vmatpush1.bf16.msra.mxu0 %v5714_v50  ;;  %2251 = vmatpush1.bf16.msra.mxu1 %v5719_v51 }
 0x790   :  { %2211 = vmatprep.subr.bf16.mxu0 %v5728_v52  ;;  %2252 = vmatprep.subr.bf16.mxu1 %v5733_v53 }
 0x791   :  { %1909 = vmatmul.mubr.bf16.gmra.mrb[56].mxu0 %v1673_v29  ;;  %1982 = vmatmul.mubr.bf16.gmra.mrb[56].mxu1 %v1673_v29 }
 0x792   :  { %1918 = vmatprep.mubr.bf16.mxu0 %v6673_v55  ;;  %1991 = vmatprep.mubr.bf16.mxu1 %v6673_v55 }
 0x793   :  { %2212 = vmatpush1.bf16.msra.mxu0 %v5738_v54  ;;  %2253 = vmatpush1.bf16.msra.mxu1 %v5743_v57 }
 0x794   :  { %2213 = vmatprep.subr.bf16.mxu0 %v5752_v58  ;;  %2254 = vmatprep.subr.bf16.mxu1 %v5757_v62 }
 0x797   :  { %2214 = vmatpush1.bf16.msra.mxu0 %v5762_v26  ;;  %2255 = vmatpush1.bf16.msra.mxu1 %v5767_v6 }
 0x798   :  { %2215 = vmatprep.subr.bf16.mxu0 %v5776_v41  ;;  %2256 = vmatprep.subr.bf16.mxu1 %v5781_v43 }
 0x79b   :  { %2216 = vmatpush1.bf16.msra.mxu0 %v5786_v46  ;;  %2257 = vmatpush1.bf16.msra.mxu1 %v5791_v24 }
 0x79c   :  { %2217 = vmatprep.subr.bf16.mxu0 %v5800_v23  ;;  %2258 = vmatprep.subr.bf16.mxu1 %v5805_v25 }
 0x79f   :  { %2218 = vmatpush1.bf16.msra.mxu0 %v5810_v27  ;;  %2259 = vmatpush1.bf16.msra.mxu1 %v5815_v47 }
 0x7a0   :  { %2319 = vmatprep.subr.bf16.mxu0 %v5632_v32  ;;  %2360 = vmatprep.subr.bf16.mxu1 %v5637_v9 }
 0x834   :  { %v1518_v49 = vpop.f32.mrb[44].mxu0  ;;  %v1559_v28 = vpop.f32.mrb[44].mxu1 }
 0x835   :  { %v1566_v17 = vadd.f32 %v1518_v49, %v6691_v35  ;;  %v1568_v60 = vadd.f32 %v1559_v28, %v6692_v59  ;;  %v1520_v63 = vpop.f32.mrb[45].mxu0  ;;  %v1561_v0 = vpop.f32.mrb[45].mxu1 }
 0x836   :  { %v1567_v7 = vadd.f32 %v1520_v63, %v6693_v1  ;;  %v1569_v10 = vadd.f32 %v1561_v0, %v6694_v8  ;;  %v1522_v11 = vpop.f32.mrb[46].mxu0  ;;  %v1563_v39 = vpop.f32.mrb[46].mxu1 }
 0x837   :  { %v3687_v40 = vmul.f32 -1.442695, %v1566_v17  ;;  %v1523_v12 = vpop.f32.mrb[47].mxu0  ;;  %v1564_v15 = vpop.f32.mrb[47].mxu1 }
 0x838   :  { %v3688_v18 = vmul.f32 -1.442695, %v1567_v7  ;;  %v3689_v2 = vmul.f32 -1.442695, %v1569_v10 }
 0x839   :  { %4264 = vpow2.f32 %v3687_v40 }
 0x83a   :  { %4266 = vpow2.f32 %v3688_v18 }
 0x83b   :  { %4268 = vpow2.f32 %v3689_v2 }
 0x83c   :  { %4270 = vtanh.f32 %v1568_v60 }
 0x843   :  { %v4265_v21 = vpop.eup %4264 }
 0x844   :  { %v4267_v44 = vpop.eup %4266  ;;  %v1576_v19 = vadd.f32 1.0, %v4265_v21 }
 0x845   :  { %v1577_v38 = vadd.f32 1.0, %v4267_v44  ;;  %v4269_v22 = vpop.eup %4268 }
 0x846   :  { %4272 = vrcp.f32 %v1576_v19  ;;  %v4271_v61 = vpop.eup %4270  ;;  %v1586_v29 = vadd.f32 1.0, %v4269_v22 }
 0x847   :  { %4274 = vrcp.f32 %v1577_v38 }
 0x848   :  { %4276 = vrcp.f32 %v1586_v29 }
 0x850   :  { %v4273_v4 = vpop.eup %4272 }
 0x851   :  { %v4275_v14 = vpop.eup %4274  ;;  %v1590_v20 = vmul.f32 %v4273_v4, %v4271_v61 }
 0x852   :  { %v1589_v49 = vmul.f32 %v4275_v14, %v5518_v42  ;;  %v4277_v12 = vpop.eup %4276 }
 0x854   :  { %v1591_v28 = vadd.f32 %v1590_v20, %v1589_v49  ;;  %v5828_v35 = vpop.f32.mrb[48].mxu0  ;;  %v5830_v17 = vpop.f32.mrb[48].mxu1 }
 0x855   :  { %v5832_v59 = vpop.f32.mrb[49].mxu0  ;;  %v5834_v60 = vpop.f32.mrb[49].mxu1 }
 0x856   :  { %1597 = vst [vmem:[#allocation6] sm:$0xff] %v1591_v28  ;;  %v5836_v63 = vpop.f32.mrb[50].mxu0  ;;  %v5838_v0 = vpop.f32.mrb[50].mxu1  ;;  %4278 = vtanh.f32 %v1591_v28  ;;  %v1662_v28 = vld [vmem:[%s6627_s8] sm:$0xf] }
 0x857   :  { %v5840_v1 = vpop.f32.mrb[51].mxu0  ;;  %v5842_v7 = vpop.f32.mrb[51].mxu1 }
 0x85c   :  { %v5844_v42 = vpop.f32.mrb[52].mxu0  ;;  %v5846_v8 = vpop.f32.mrb[52].mxu1 }
 0x85d   :  { %6695 = vst [vmem:[#allocation11_spill] sm:$0xff] %v5846_v8  ;;  %v5848_v10 = vpop.f32.mrb[53].mxu0  ;;  %v5850_v11 = vpop.f32.mrb[53].mxu1 }
 0x85e   :  { %6696 = vst [vmem:[#allocation12_spill] sm:$0xff] %v5848_v10  ;;  %6697 = vst [vmem:[#allocation13_spill] sm:$0xff] %v5850_v11  ;;  %v5852_v39 = vpop.f32.mrb[54].mxu0  ;;  %v5854_v40 = vpop.f32.mrb[54].mxu1 }
 0x85f   :  { %6698 = vst [vmem:[#allocation14_spill] sm:$0xff] %v5852_v39  ;;  %6699 = vst [vmem:[#allocation15_spill] sm:$0xff] %v5854_v40  ;;  %v5856_v15 = vpop.f32.mrb[55].mxu0  ;;  %v5858_v18 = vpop.f32.mrb[55].mxu1 }
 0x860   :  { %6700 = vst [vmem:[#allocation16_spill] sm:$0xff] %v5856_v15  ;;  %6701 = vst [vmem:[#allocation17_spill] sm:$0xff] %v5858_v18  ;;  %v4279_v2 = vpop.eup %4278 }
 0x861   :  { %v1593_v21 = vmul.f32 %v4279_v2, %v4277_v12 }
 0x863   :  { %v1674_v44 = vpack.c.bf16 %v1593_v21, %v5521_v3  ;;  %1596 = vst [vmem:[#allocation4] sm:$0xff] %v1593_v21  ;;  %v3722_v3 = vld [vmem:[%s6650_s20 + $0x8] sm:$0xff] }
 0x864   :  { %v5861_v19 = vpop.f32.mrb[56].mxu0  ;;  %v5863_v38 = vpop.f32.mrb[56].mxu1  ;;  %v2042_v49 = vpack.c.bf16 %v3722_v3, %v3722_v3 }
 0x865   :  { %6702 = vst [vmem:[#allocation18_spill] sm:$0xff] %v5861_v19  ;;  %6703 = vst [vmem:[#allocation19_spill] sm:$0xff] %v5863_v38  ;;  %v5865_v22 = vpop.f32.mrb[57].mxu0  ;;  %v5867_v61 = vpop.f32.mrb[57].mxu1  ;;  %1919 = vmatmul.mubr.bf16.gmra.mrb[60].mxu0 %v1674_v44  ;;  %1992 = vmatmul.mubr.bf16.gmra.mrb[60].mxu1 %v1674_v44 }
 0x866   :  { %6704 = vst [vmem:[#allocation20_spill] sm:$0xff] %v5865_v22  ;;  %6705 = vst [vmem:[#allocation21_spill] sm:$0xff] %v5867_v61  ;;  %v5869_v4 = vpop.f32.mrb[58].mxu0  ;;  %v5871_v14 = vpop.f32.mrb[58].mxu1  ;;  %2235 = vmatprep.mubr.bf16.mxu0 %v6673_v55  ;;  %2276 = vmatprep.mubr.bf16.mxu1 %v6673_v55 }
 0x867   :  { %6706 = vst [vmem:[#allocation22_spill] sm:$0xff] %v5869_v4  ;;  %6707 = vst [vmem:[#allocation23_spill] sm:$0xff] %v5871_v14  ;;  %v5878_v20 = vpop.f32.mrb[59].mxu0  ;;  %v5880_v29 = vpop.f32.mrb[59].mxu1 }
 0x868   :  { %6708 = vst [vmem:[#allocation24_spill] sm:$0xff] %v5878_v20  ;;  %6709 = vst [vmem:[#allocation25_spill] sm:$0xff] %v5880_v29  ;;  %v6716_v29 = vld [vmem:[#allocation10_spill] sm:$0xff] }
 0x869   :  { %v6717_v20 = vsub.s32 0, %v6716_v29  ;;  %v6718_v4 = vsub.s32 2, %v6716_v29 }
 0x86b   :  { %v5933_v14 = vrot.slane %v1662_v28, %v6717_v20  ;;  %v5937_v61 = vrot.slane %v1662_v28, %v6718_v4 }
 0x86d   :  { %2236 = vmatmul.mubr.bf16.vlgmr.msra.gmra.mrb[64].mxu0 %v2042_v49  ;;  %2277 = vmatmul.mubr.bf16.vlgmr.msra.gmra.mrb[64].mxu1 %v2042_v49  ;;  %v1891_v20 = vadd.f32 %v5828_v35, %v5933_v14 }
 0x86e   :  { %2320 = vmatpush1.bf16.msra.mxu0 %v5642_v34  ;;  %2361 = vmatpush1.bf16.msra.mxu1 %v5647_v36 }
 0x86f   :  { %2321 = vmatprep.subr.bf16.mxu0 %v5656_v5  ;;  %2362 = vmatprep.subr.bf16.mxu1 %v5661_v13 }
 0x870   :  { %2351 = vmatprep.mubr.bf16.mxu0 %v6673_v55  ;;  %2392 = vmatprep.mubr.bf16.mxu1 %v6673_v55 }
 0x872   :  { %2322 = vmatpush1.bf16.msra.mxu0 %v5666_v30  ;;  %2363 = vmatpush1.bf16.msra.mxu1 %v5671_v16 }
 0x873   :  { %2323 = vmatprep.subr.bf16.mxu0 %v5680_v33  ;;  %2364 = vmatprep.subr.bf16.mxu1 %v5685_v37 }
 0x876   :  { %2324 = vmatpush1.bf16.msra.mxu0 %v5690_v45  ;;  %2365 = vmatpush1.bf16.msra.mxu1 %v5695_v31 }
 0x877   :  { %2325 = vmatprep.subr.bf16.mxu0 %v5704_v48  ;;  %2366 = vmatprep.subr.bf16.mxu1 %v5709_v56 }
 0x87a   :  { %2326 = vmatpush1.bf16.msra.mxu0 %v5714_v50  ;;  %2367 = vmatpush1.bf16.msra.mxu1 %v5719_v51 }
 0x87b   :  { %2327 = vmatprep.subr.bf16.mxu0 %v5728_v52  ;;  %2368 = vmatprep.subr.bf16.mxu1 %v5733_v53 }
 0x87e   :  { %2328 = vmatpush1.bf16.msra.mxu0 %v5738_v54  ;;  %2369 = vmatpush1.bf16.msra.mxu1 %v5743_v57 }
 0x87f   :  { %2329 = vmatprep.subr.bf16.mxu0 %v5752_v58  ;;  %2370 = vmatprep.subr.bf16.mxu1 %v5757_v62 }
 0x882   :  { %2330 = vmatpush1.bf16.msra.mxu0 %v5762_v26  ;;  %2371 = vmatpush1.bf16.msra.mxu1 %v5767_v6 }
 0x883   :  { %2331 = vmatprep.subr.bf16.mxu0 %v5776_v41  ;;  %2372 = vmatprep.subr.bf16.mxu1 %v5781_v43 }
 0x886   :  { %2332 = vmatpush1.bf16.msra.mxu0 %v5786_v46  ;;  %2373 = vmatpush1.bf16.msra.mxu1 %v5791_v24 }
 0x887   :  { %2333 = vmatprep.subr.bf16.mxu0 %v5800_v23  ;;  %2374 = vmatprep.subr.bf16.mxu1 %v5805_v25 }
 0x88a   :  { %2334 = vmatpush1.bf16.msra.mxu0 %v5810_v27  ;;  %2375 = vmatpush1.bf16.msra.mxu1 %v5815_v47 }
 0x88b   :  { %2435 = vmatprep.subr.bf16.mxu0 %v5632_v32  ;;  %2476 = vmatprep.subr.bf16.mxu1 %v5637_v9 }
 0x938   :  { %v5919_v12 = vpop.f32.mrb[60].mxu0  ;;  %v5921_v2 = vpop.f32.mrb[60].mxu1 }
 0x939   :  { %6710 = vst [vmem:[#allocation26_spill] sm:$0xff] %v5919_v12  ;;  %6711 = vst [vmem:[#allocation27_spill] sm:$0xff] %v5921_v2  ;;  %v5923_v21 = vpop.f32.mrb[61].mxu0  ;;  %v5925_v44 = vpop.f32.mrb[61].mxu1 }
 0x93a   :  { %6712 = vst [vmem:[#allocation28_spill] sm:$0xff] %v5923_v21  ;;  %6713 = vst [vmem:[#allocation29_spill] sm:$0xff] %v5925_v44  ;;  %v5927_v3 = vpop.f32.mrb[62].mxu0  ;;  %v5929_v49 = vpop.f32.mrb[62].mxu1  ;;  %v6721_v21 = vsub.s32 1, %v6716_v29 }
 0x93b   :  { %6714 = vst [vmem:[#allocation30_spill] sm:$0xff] %v5927_v3  ;;  %6715 = vst [vmem:[#allocation31_spill] sm:$0xff] %v5929_v49  ;;  %v5939_v22 = vpop.f32.mrb[63].mxu0  ;;  %v5941_v12 = vpop.f32.mrb[63].mxu1  ;;  %v6722_v3 = vsub.s32 3, %v6716_v29  ;;  %v1964_v49 = vadd.f32 %v5830_v17, %v5937_v61 }
 0x93c   :  { %6719 = vst [vmem:[#allocation10_spill] sm:$0xff] %v5939_v22  ;;  %6720 = vst [vmem:[#allocation32_spill] sm:$0xff] %v5941_v12  ;;  %v5945_v2 = vrot.slane %v1662_v28, %v6721_v21 }
 0x93d   :  { %v5949_v44 = vrot.slane %v1662_v28, %v6722_v3 }
 0x93e   :  { %v1893_v4 = vadd.f32 %v5832_v59, %v5945_v2 }
 0x93f   :  { %v1966_v12 = vadd.f32 %v5834_v60, %v5949_v44 }
 0x940   :  { %v2237_v22 = vpop.f32.mrb[64].mxu0  ;;  %v2278_v38 = vpop.f32.mrb[64].mxu1 }
 0x941   :  { %v2285_v21 = vadd.f32 %v2237_v22, %v1891_v20  ;;  %v2287_v19 = vadd.f32 %v2278_v38, %v1964_v49  ;;  %v2239_v18 = vpop.f32.mrb[65].mxu0  ;;  %v2280_v29 = vpop.f32.mrb[65].mxu1 }
 0x942   :  { %v2286_v28 = vadd.f32 %v2239_v18, %v1893_v4  ;;  %v2288_v3 = vadd.f32 %v2280_v29, %v1966_v12  ;;  %v2241_v15 = vpop.f32.mrb[66].mxu0  ;;  %v2282_v40 = vpop.f32.mrb[66].mxu1  ;;  %v1968_v29 = vadd.f32 %v5838_v0, %v5937_v61 }
 0x943   :  { %v3756_v35 = vmul.f32 -1.442695, %v2285_v21  ;;  %v2242_v39 = vpop.f32.mrb[67].mxu0  ;;  %v2283_v11 = vpop.f32.mrb[67].mxu1  ;;  %v3723_v40 = vld [vmem:[%s6621_s2 + $0x8] sm:$0xff]  ;;  %v1895_v21 = vadd.f32 %v5836_v63, %v5933_v14 }
 0x944   :  { %v3757_v17 = vmul.f32 -1.442695, %v2286_v28  ;;  %v3758_v59 = vmul.f32 -1.442695, %v2288_v3  ;;  %v1897_v28 = vadd.f32 %v5840_v1, %v5945_v2  ;;  %v1970_v3 = vadd.f32 %v5842_v7, %v5949_v44 }
 0x945   :  { %4280 = vpow2.f32 %v3756_v35 }
 0x946   :  { %4282 = vpow2.f32 %v3757_v17 }
 0x947   :  { %4284 = vpow2.f32 %v3758_v59 }
 0x948   :  { %4286 = vtanh.f32 %v2287_v19 }
 0x94f   :  { %v4281_v10 = vpop.eup %4280 }
 0x950   :  { %v4283_v8 = vpop.eup %4282  ;;  %v2295_v60 = vadd.f32 1.0, %v4281_v10 }
 0x951   :  { %v2296_v22 = vadd.f32 1.0, %v4283_v8  ;;  %v4285_v38 = vpop.eup %4284 }
 0x952   :  { %4288 = vrcp.f32 %v2295_v60  ;;  %v4287_v18 = vpop.eup %4286  ;;  %v2305_v12 = vadd.f32 1.0, %v4285_v38 }
 0x953   :  { %4290 = vrcp.f32 %v2296_v22 }
 0x954   :  { %4292 = vrcp.f32 %v2305_v12 }
 0x95c   :  { %v4289_v39 = vpop.eup %4288 }
 0x95d   :  { %v4291_v11 = vpop.eup %4290  ;;  %v2309_v15 = vmul.f32 %v4289_v39, %v4287_v18 }
 0x95e   :  { %v2308_v49 = vmul.f32 %v4291_v11, %v3723_v40  ;;  %v4293_v10 = vpop.eup %4292 }
 0x960   :  { %v5962_v20 = vadd.f32 %v2309_v15, %v2308_v49 }
 0x962   :  { %4294 = vtanh.f32 %v5962_v20 }
 0x96c   :  { %v4295_v8 = vpop.eup %4294 }
 0x96d   :  { %v5965_v19 = vmul.f32 %v4295_v8, %v4293_v10 }
 0x96f   :  { %v2318_v4 = vpack.c.bf16 %v5965_v19, %v5965_v19 }
 0x971   :  { %2352 = vmatmul.mubr.bf16.vlgmr.msra.gmra.mrb[68].mxu0 %v2318_v4  ;;  %2393 = vmatmul.mubr.bf16.vlgmr.msra.gmra.mrb[68].mxu1 %v2318_v4 }
 0x972   :  { %2436 = vmatpush1.bf16.msra.mxu0 %v5642_v34  ;;  %2477 = vmatpush1.bf16.msra.mxu1 %v5647_v36 }
 0x973   :  { %2437 = vmatprep.subr.bf16.mxu0 %v5656_v5  ;;  %2478 = vmatprep.subr.bf16.mxu1 %v5661_v13 }
 0x974   :  { %2467 = vmatprep.mubr.bf16.mxu0 %v6673_v55  ;;  %2508 = vmatprep.mubr.bf16.mxu1 %v6673_v55 }
 0x976   :  { %2438 = vmatpush1.bf16.msra.mxu0 %v5666_v30  ;;  %2479 = vmatpush1.bf16.msra.mxu1 %v5671_v16 }
 0x977   :  { %2439 = vmatprep.subr.bf16.mxu0 %v5680_v33  ;;  %2480 = vmatprep.subr.bf16.mxu1 %v5685_v37 }
 0x97a   :  { %2440 = vmatpush1.bf16.msra.mxu0 %v5690_v45  ;;  %2481 = vmatpush1.bf16.msra.mxu1 %v5695_v31 }
 0x97b   :  { %2441 = vmatprep.subr.bf16.mxu0 %v5704_v48  ;;  %2482 = vmatprep.subr.bf16.mxu1 %v5709_v56 }
 0x97e   :  { %2442 = vmatpush1.bf16.msra.mxu0 %v5714_v50  ;;  %2483 = vmatpush1.bf16.msra.mxu1 %v5719_v51 }
 0x97f   :  { %2443 = vmatprep.subr.bf16.mxu0 %v5728_v52  ;;  %2484 = vmatprep.subr.bf16.mxu1 %v5733_v53 }
 0x982   :  { %2444 = vmatpush1.bf16.msra.mxu0 %v5738_v54  ;;  %2485 = vmatpush1.bf16.msra.mxu1 %v5743_v57 }
 0x983   :  { %2445 = vmatprep.subr.bf16.mxu0 %v5752_v58  ;;  %2486 = vmatprep.subr.bf16.mxu1 %v5757_v62 }
 0x986   :  { %2446 = vmatpush1.bf16.msra.mxu0 %v5762_v26  ;;  %2487 = vmatpush1.bf16.msra.mxu1 %v5767_v6 }
 0x987   :  { %2447 = vmatprep.subr.bf16.mxu0 %v5776_v41  ;;  %2488 = vmatprep.subr.bf16.mxu1 %v5781_v43 }
 0x98a   :  { %2448 = vmatpush1.bf16.msra.mxu0 %v5786_v46  ;;  %2489 = vmatpush1.bf16.msra.mxu1 %v5791_v24 }
 0x98b   :  { %2449 = vmatprep.subr.bf16.mxu0 %v5800_v23  ;;  %2490 = vmatprep.subr.bf16.mxu1 %v5805_v25 }
 0x98e   :  { %2450 = vmatpush1.bf16.msra.mxu0 %v5810_v27  ;;  %2491 = vmatpush1.bf16.msra.mxu1 %v5815_v47 }
 0x98f   :  { %2551 = vmatprep.subr.bf16.mxu0 %v5632_v32  ;;  %2592 = vmatprep.subr.bf16.mxu1 %v5637_v9 }
 0xa44   :  { %v2353_v35 = vpop.f32.mrb[68].mxu0  ;;  %v2394_v17 = vpop.f32.mrb[68].mxu1 }
 0xa45   :  { %v2401_v59 = vadd.f32 %v2353_v35, %v1895_v21  ;;  %v2403_v60 = vadd.f32 %v2394_v17, %v1968_v29  ;;  %v2355_v22 = vpop.f32.mrb[69].mxu0  ;;  %v2396_v38 = vpop.f32.mrb[69].mxu1 }
 0xa46   :  { %v2402_v18 = vadd.f32 %v2355_v22, %v1897_v28  ;;  %v2404_v40 = vadd.f32 %v2396_v38, %v1970_v3  ;;  %v2357_v39 = vpop.f32.mrb[70].mxu0  ;;  %v2398_v11 = vpop.f32.mrb[70].mxu1 }
 0xa47   :  { %v3759_v63 = vmul.f32 -1.442695, %v2401_v59  ;;  %v2358_v15 = vpop.f32.mrb[71].mxu0  ;;  %v2399_v12 = vpop.f32.mrb[71].mxu1  ;;  %v6724_v11 = vld [vmem:[#allocation12_spill] sm:$0xff] }
 0xa48   :  { %v3760_v0 = vmul.f32 -1.442695, %v2402_v18  ;;  %v3761_v1 = vmul.f32 -1.442695, %v2404_v40  ;;  %v6723_v40 = vld [vmem:[#allocation11_spill] sm:$0xff]  ;;  %v6725_v15 = vld [vmem:[#allocation13_spill] sm:$0xff] }
 0xa49   :  { %4296 = vpow2.f32 %v3759_v63  ;;  %v1974_v39 = vadd.f32 %v6723_v40, %v5937_v61  ;;  %v1903_v63 = vadd.f32 %v6724_v11, %v5945_v2  ;;  %v1976_v12 = vadd.f32 %v6725_v15, %v5949_v44 }
 0xa4a   :  { %4298 = vpow2.f32 %v3760_v0 }
 0xa4b   :  { %4300 = vpow2.f32 %v3761_v1 }
 0xa4c   :  { %4302 = vtanh.f32 %v2403_v60 }
 0xa53   :  { %v4297_v49 = vpop.eup %4296 }
 0xa54   :  { %v4299_v10 = vpop.eup %4298  ;;  %v2411_v7 = vadd.f32 1.0, %v4297_v49 }
 0xa55   :  { %v2412_v8 = vadd.f32 1.0, %v4299_v10  ;;  %v4301_v4 = vpop.eup %4300 }
 0xa56   :  { %4304 = vrcp.f32 %v2411_v7  ;;  %v4303_v21 = vpop.eup %4302  ;;  %v2421_v35 = vadd.f32 1.0, %v4301_v4 }
 0xa57   :  { %4306 = vrcp.f32 %v2412_v8 }
 0xa58   :  { %4308 = vrcp.f32 %v2421_v35 }
 0xa60   :  { %v4305_v29 = vpop.eup %4304 }
 0xa61   :  { %v4307_v28 = vpop.eup %4306  ;;  %v2425_v3 = vmul.f32 %v4305_v29, %v4303_v21 }
 0xa62   :  { %v2424_v17 = vmul.f32 %v4307_v28, %v5962_v20  ;;  %v4309_v22 = vpop.eup %4308  ;;  %v1901_v20 = vadd.f32 %v5844_v42, %v5933_v14 }
 0xa64   :  { %v6012_v59 = vadd.f32 %v2425_v3, %v2424_v17 }
 0xa66   :  { %4310 = vtanh.f32 %v6012_v59 }
 0xa70   :  { %v4311_v38 = vpop.eup %4310 }
 0xa71   :  { %v6015_v18 = vmul.f32 %v4311_v38, %v4309_v22 }
 0xa73   :  { %v2434_v60 = vpack.c.bf16 %v6015_v18, %v6015_v18 }
 0xa75   :  { %2468 = vmatmul.mubr.bf16.vlgmr.msra.gmra.mrb[72].mxu0 %v2434_v60  ;;  %2509 = vmatmul.mubr.bf16.vlgmr.msra.gmra.mrb[72].mxu1 %v2434_v60 }
 0xa76   :  { %2552 = vmatpush1.bf16.msra.mxu0 %v5642_v34  ;;  %2593 = vmatpush1.bf16.msra.mxu1 %v5647_v36 }
 0xa77   :  { %2553 = vmatprep.subr.bf16.mxu0 %v5656_v5  ;;  %2594 = vmatprep.subr.bf16.mxu1 %v5661_v13 }
 0xa78   :  { %2583 = vmatprep.mubr.bf16.mxu0 %v6673_v55  ;;  %2624 = vmatprep.mubr.bf16.mxu1 %v6673_v55 }
 0xa7a   :  { %2554 = vmatpush1.bf16.msra.mxu0 %v5666_v30  ;;  %2595 = vmatpush1.bf16.msra.mxu1 %v5671_v16 }
 0xa7b   :  { %2555 = vmatprep.subr.bf16.mxu0 %v5680_v33  ;;  %2596 = vmatprep.subr.bf16.mxu1 %v5685_v37 }
 0xa7e   :  { %2556 = vmatpush1.bf16.msra.mxu0 %v5690_v45  ;;  %2597 = vmatpush1.bf16.msra.mxu1 %v5695_v31 }
 0xa7f   :  { %2557 = vmatprep.subr.bf16.mxu0 %v5704_v48  ;;  %2598 = vmatprep.subr.bf16.mxu1 %v5709_v56 }
 0xa82   :  { %2558 = vmatpush1.bf16.msra.mxu0 %v5714_v50  ;;  %2599 = vmatpush1.bf16.msra.mxu1 %v5719_v51 }
 0xa83   :  { %2559 = vmatprep.subr.bf16.mxu0 %v5728_v52  ;;  %2600 = vmatprep.subr.bf16.mxu1 %v5733_v53 }
 0xa86   :  { %2560 = vmatpush1.bf16.msra.mxu0 %v5738_v54  ;;  %2601 = vmatpush1.bf16.msra.mxu1 %v5743_v57 }
 0xa87   :  { %2561 = vmatprep.subr.bf16.mxu0 %v5752_v58  ;;  %2602 = vmatprep.subr.bf16.mxu1 %v5757_v62 }
 0xa8a   :  { %2562 = vmatpush1.bf16.msra.mxu0 %v5762_v26  ;;  %2603 = vmatpush1.bf16.msra.mxu1 %v5767_v6 }
 0xa8b   :  { %2563 = vmatprep.subr.bf16.mxu0 %v5776_v41  ;;  %2604 = vmatprep.subr.bf16.mxu1 %v5781_v43 }
 0xa8e   :  { %2564 = vmatpush1.bf16.msra.mxu0 %v5786_v46  ;;  %2605 = vmatpush1.bf16.msra.mxu1 %v5791_v24 }
 0xa8f   :  { %2565 = vmatprep.subr.bf16.mxu0 %v5800_v23  ;;  %2606 = vmatprep.subr.bf16.mxu1 %v5805_v25 }
 0xa92   :  { %2566 = vmatpush1.bf16.msra.mxu0 %v5810_v27  ;;  %2607 = vmatpush1.bf16.msra.mxu1 %v5815_v47 }
 0xa93   :  { %2667 = vmatprep.subr.bf16.mxu0 %v5632_v32  ;;  %2708 = vmatprep.subr.bf16.mxu1 %v5637_v9 }
 0xb48   :  { %v2469_v0 = vpop.f32.mrb[72].mxu0  ;;  %v2510_v1 = vpop.f32.mrb[72].mxu1 }
 0xb49   :  { %v2517_v49 = vadd.f32 %v2469_v0, %v1901_v20  ;;  %v2519_v10 = vadd.f32 %v2510_v1, %v1974_v39  ;;  %v2471_v7 = vpop.f32.mrb[73].mxu0  ;;  %v2512_v8 = vpop.f32.mrb[73].mxu1 }
 0xb4a   :  { %v2518_v4 = vadd.f32 %v2471_v7, %v1903_v63  ;;  %v2520_v21 = vadd.f32 %v2512_v8, %v1976_v12  ;;  %v2473_v29 = vpop.f32.mrb[74].mxu0  ;;  %v2514_v28 = vpop.f32.mrb[74].mxu1 }
 0xb4b   :  { %v3762_v42 = vmul.f32 -1.442695, %v2517_v49  ;;  %v2474_v3 = vpop.f32.mrb[75].mxu0  ;;  %v2515_v35 = vpop.f32.mrb[75].mxu1  ;;  %v6727_v29 = vld [vmem:[#allocation15_spill] sm:$0xff] }
 0xb4c   :  { %v3763_v17 = vmul.f32 -1.442695, %v2518_v4  ;;  %v3764_v22 = vmul.f32 -1.442695, %v2520_v21  ;;  %v1978_v28 = vadd.f32 %v6727_v29, %v5937_v61  ;;  %v6729_v35 = vld [vmem:[#allocation17_spill] sm:$0xff] }
 0xb4d   :  { %4312 = vpow2.f32 %v3762_v42  ;;  %v6728_v42 = vld [vmem:[#allocation16_spill] sm:$0xff] }
 0xb4e   :  { %4314 = vpow2.f32 %v3763_v17  ;;  %v1907_v3 = vadd.f32 %v6728_v42, %v5945_v2  ;;  %v1980_v17 = vadd.f32 %v6729_v35, %v5949_v44 }
 0xb4f   :  { %4316 = vpow2.f32 %v3764_v22 }
 0xb50   :  { %4318 = vtanh.f32 %v2519_v10 }
 0xb57   :  { %v4313_v38 = vpop.eup %4312 }
 0xb58   :  { %v4315_v60 = vpop.eup %4314  ;;  %v2527_v40 = vadd.f32 1.0, %v4313_v38 }
 0xb59   :  { %v2528_v20 = vadd.f32 1.0, %v4315_v60  ;;  %v4317_v39 = vpop.eup %4316 }
 0xb5a   :  { %4320 = vrcp.f32 %v2527_v40  ;;  %v4319_v11 = vpop.eup %4318  ;;  %v2537_v0 = vadd.f32 1.0, %v4317_v39 }
 0xb5b   :  { %4322 = vrcp.f32 %v2528_v20 }
 0xb5c   :  { %4324 = vrcp.f32 %v2537_v0 }
 0xb64   :  { %v4321_v63 = vpop.eup %4320 }
 0xb65   :  { %v4323_v15 = vpop.eup %4322  ;;  %v2541_v12 = vmul.f32 %v4321_v63, %v4319_v11 }
 0xb66   :  { %v2540_v1 = vmul.f32 %v4323_v15, %v6012_v59  ;;  %v4325_v7 = vpop.eup %4324  ;;  %v6726_v59 = vld [vmem:[#allocation14_spill] sm:$0xff] }
 0xb67   :  { %v1905_v21 = vadd.f32 %v6726_v59, %v5933_v14 }
 0xb68   :  { %v6062_v49 = vadd.f32 %v2541_v12, %v2540_v1 }
 0xb6a   :  { %4326 = vtanh.f32 %v6062_v49 }
 0xb74   :  { %v4327_v8 = vpop.eup %4326 }
 0xb75   :  { %v6065_v4 = vmul.f32 %v4327_v8, %v4325_v7 }
 0xb77   :  { %v2550_v10 = vpack.c.bf16 %v6065_v4, %v6065_v4 }
 0xb79   :  { %2584 = vmatmul.mubr.bf16.vlgmr.msra.gmra.mrb[76].mxu0 %v2550_v10  ;;  %2625 = vmatmul.mubr.bf16.vlgmr.msra.gmra.mrb[76].mxu1 %v2550_v10 }
 0xb7a   :  { %2668 = vmatpush1.bf16.msra.mxu0 %v5642_v34  ;;  %2709 = vmatpush1.bf16.msra.mxu1 %v5647_v36 }
 0xb7b   :  { %2669 = vmatprep.subr.bf16.mxu0 %v5656_v5  ;;  %2710 = vmatprep.subr.bf16.mxu1 %v5661_v13 }
 0xb7c   :  { %2699 = vmatprep.mubr.bf16.mxu0 %v6673_v55  ;;  %2740 = vmatprep.mubr.bf16.mxu1 %v6673_v55 }
 0xb7e   :  { %2670 = vmatpush1.bf16.msra.mxu0 %v5666_v30  ;;  %2711 = vmatpush1.bf16.msra.mxu1 %v5671_v16 }
 0xb7f   :  { %2671 = vmatprep.subr.bf16.mxu0 %v5680_v33  ;;  %2712 = vmatprep.subr.bf16.mxu1 %v5685_v37 }
 0xb82   :  { %2672 = vmatpush1.bf16.msra.mxu0 %v5690_v45  ;;  %2713 = vmatpush1.bf16.msra.mxu1 %v5695_v31 }
 0xb83   :  { %2673 = vmatprep.subr.bf16.mxu0 %v5704_v48  ;;  %2714 = vmatprep.subr.bf16.mxu1 %v5709_v56 }
 0xb86   :  { %2674 = vmatpush1.bf16.msra.mxu0 %v5714_v50  ;;  %2715 = vmatpush1.bf16.msra.mxu1 %v5719_v51 }
 0xb87   :  { %2675 = vmatprep.subr.bf16.mxu0 %v5728_v52  ;;  %2716 = vmatprep.subr.bf16.mxu1 %v5733_v53 }
 0xb8a   :  { %2676 = vmatpush1.bf16.msra.mxu0 %v5738_v54  ;;  %2717 = vmatpush1.bf16.msra.mxu1 %v5743_v57 }
 0xb8b   :  { %2677 = vmatprep.subr.bf16.mxu0 %v5752_v58  ;;  %2718 = vmatprep.subr.bf16.mxu1 %v5757_v62 }
 0xb8e   :  { %2678 = vmatpush1.bf16.msra.mxu0 %v5762_v26  ;;  %2719 = vmatpush1.bf16.msra.mxu1 %v5767_v6 }
 0xb8f   :  { %2679 = vmatprep.subr.bf16.mxu0 %v5776_v41  ;;  %2720 = vmatprep.subr.bf16.mxu1 %v5781_v43 }
 0xb92   :  { %2680 = vmatpush1.bf16.msra.mxu0 %v5786_v46  ;;  %2721 = vmatpush1.bf16.msra.mxu1 %v5791_v24 }
 0xb93   :  { %2681 = vmatprep.subr.bf16.mxu0 %v5800_v23  ;;  %2722 = vmatprep.subr.bf16.mxu1 %v5805_v25 }
 0xb96   :  { %2682 = vmatpush1.bf16.msra.mxu0 %v5810_v27  ;;  %2723 = vmatpush1.bf16.msra.mxu1 %v5815_v47 }
 0xb97   :  { %2783 = vmatprep.subr.bf16.mxu0 %v5632_v32  ;;  %2824 = vmatprep.subr.bf16.mxu1 %v5637_v9 }
 0xc4c   :  { %v2585_v22 = vpop.f32.mrb[76].mxu0  ;;  %v2626_v38 = vpop.f32.mrb[76].mxu1 }
 0xc4d   :  { %v2633_v60 = vadd.f32 %v2585_v22, %v1905_v21  ;;  %v2635_v40 = vadd.f32 %v2626_v38, %v1978_v28  ;;  %v2587_v20 = vpop.f32.mrb[77].mxu0  ;;  %v2628_v39 = vpop.f32.mrb[77].mxu1 }
 0xc4e   :  { %v2634_v11 = vadd.f32 %v2587_v20, %v1907_v3  ;;  %v2636_v63 = vadd.f32 %v2628_v39, %v1980_v17  ;;  %v2589_v15 = vpop.f32.mrb[78].mxu0  ;;  %v2630_v12 = vpop.f32.mrb[78].mxu1 }
 0xc4f   :  { %v3765_v0 = vmul.f32 -1.442695, %v2633_v60  ;;  %v2590_v1 = vpop.f32.mrb[79].mxu0  ;;  %v2631_v7 = vpop.f32.mrb[79].mxu1 }
 0xc50   :  { %v3766_v8 = vmul.f32 -1.442695, %v2634_v11  ;;  %v3767_v10 = vmul.f32 -1.442695, %v2636_v63 }
 0xc51   :  { %4328 = vpow2.f32 %v3765_v0 }
 0xc52   :  { %4330 = vpow2.f32 %v3766_v8 }
 0xc53   :  { %4332 = vpow2.f32 %v3767_v10  ;;  %v6172_v10 = vld [vmem:[%s6626_s7] ss:$16 sps:$4 sm:$0xff]  }
 0xc54   :  { %4334 = vtanh.f32 %v2635_v40 }
 0xc5b   :  { %v4329_v59 = vpop.eup %4328 }
 0xc5c   :  { %v4331_v29 = vpop.eup %4330  ;;  %v2643_v42 = vadd.f32 1.0, %v4329_v59  ;;  %v6178_v59 = vld [vmem:[%s6626_s7 + $0x8] ss:$16 sps:$4 sm:$0xff]  }
 0xc5d   :  { %v2644_v21 = vadd.f32 1.0, %v4331_v29  ;;  %v4333_v28 = vpop.eup %4332  ;;  %v6184_v29 = vld [vmem:[%s6626_s7 + $0x24] ss:$16 sps:$4 sm:$0xff]  }
 0xc5e   :  { %4336 = vrcp.f32 %v2643_v42  ;;  %v4335_v3 = vpop.eup %4334  ;;  %v2653_v38 = vadd.f32 1.0, %v4333_v28  ;;  %v6190_v42 = vld [vmem:[%s6626_s7 + $0x2c] ss:$16 sps:$4 sm:$0xff]   ;;  %v6204_v28 = vld [vmem:[%s6626_s7 + $0x28] ss:$16 sps:$4 sm:$0xff]  }
 0xc5f   :  { %4338 = vrcp.f32 %v2644_v21  ;;  %v6198_v21 = vld [vmem:[%s6626_s7 + $0x20] ss:$16 sps:$4 sm:$0xff]  }
 0xc60   :  { %4340 = vrcp.f32 %v2653_v38  ;;  %v6234_v38 = vld [vmem:[%s6626_s7 + $0x64] ss:$16 sps:$4 sm:$0xff]  }
 0xc68   :  { %v4337_v35 = vpop.eup %4336 }
 0xc69   :  { %v4339_v17 = vpop.eup %4338  ;;  %v2657_v22 = vmul.f32 %v4337_v35, %v4335_v3  ;;  %v6210_v3 = vld [vmem:[%s6626_s7 + $0x44] ss:$16 sps:$4 sm:$0xff]   ;;  %v6216_v35 = vld [vmem:[%s6626_s7 + $0x4c] ss:$16 sps:$4 sm:$0xff]  }
 0xc6a   :  { %v2656_v60 = vmul.f32 %v4339_v17, %v6062_v49  ;;  %v4341_v39 = vpop.eup %4340  ;;  %v6222_v17 = vld [vmem:[%s6626_s7 + $0x40] ss:$16 sps:$4 sm:$0xff]  }
 0xc6c   :  { %v6112_v20 = vadd.f32 %v2657_v22, %v2656_v60  ;;  %v6228_v22 = vld [vmem:[%s6626_s7 + $0x48] ss:$16 sps:$4 sm:$0xff]   ;;  %v6240_v60 = vld [vmem:[%s6626_s7 + $0x6c] ss:$16 sps:$4 sm:$0xff]  }
 0xc6e   :  { %4342 = vtanh.f32 %v6112_v20 }
 0xc78   :  { %v4343_v11 = vpop.eup %4342 }
 0xc79   :  { %v6115_v63 = vmul.f32 %v4343_v11, %v4341_v39  ;;  %v6252_v39 = vld [vmem:[%s6626_s7 + $0x68] ss:$16 sps:$4 sm:$0xff]   ;;  %v6258_v11 = vld [vmem:[%s6626_s7 + $0x84] ss:$16 sps:$4 sm:$0xff]  }
 0xc7b   :  { %v2666_v40 = vpack.c.bf16 %v6115_v63, %v6115_v63 }
 0xc7d   :  { %2700 = vmatmul.mubr.bf16.vlgmr.msra.gmra.mrb[80].mxu0 %v2666_v40  ;;  %2741 = vmatmul.mubr.bf16.vlgmr.msra.gmra.mrb[80].mxu1 %v2666_v40  ;;  %v6264_v40 = vld [vmem:[%s6626_s7 + $0x8c] ss:$16 sps:$4 sm:$0xff]  }
 0xc7e   :  { %2784 = vmatpush1.bf16.msra.mxu0 %v5642_v34  ;;  %2825 = vmatpush1.bf16.msra.mxu1 %v5647_v36  ;;  %v6730_v34 = vld [vmem:[#allocation18_spill] sm:$0xff] }
 0xc7f   :  { %2785 = vmatprep.subr.bf16.mxu0 %v5656_v5  ;;  %2826 = vmatprep.subr.bf16.mxu1 %v5661_v13  ;;  %v1911_v36 = vadd.f32 %v6730_v34, %v5933_v14  ;;  %v6731_v5 = vld [vmem:[#allocation19_spill] sm:$0xff]  ;;  %v6270_v34 = vld [vmem:[%s6626_s7 + $0x80] ss:$16 sps:$4 sm:$0xff]  }
 0xc80   :  { %2815 = vmatprep.mubr.bf16.mxu0 %v6673_v55  ;;  %2856 = vmatprep.mubr.bf16.mxu1 %v6673_v55  ;;  %v1984_v13 = vadd.f32 %v6731_v5, %v5937_v61  ;;  %v6282_v5 = vld [vmem:[%s6626_s7 + $0xa4] ss:$16 sps:$4 sm:$0xff]  }
 0xc82   :  { %2786 = vmatpush1.bf16.msra.mxu0 %v5666_v30  ;;  %2827 = vmatpush1.bf16.msra.mxu1 %v5671_v16  ;;  %v6732_v30 = vld [vmem:[#allocation20_spill] sm:$0xff] }
 0xc83   :  { %2787 = vmatprep.subr.bf16.mxu0 %v5680_v33  ;;  %2828 = vmatprep.subr.bf16.mxu1 %v5685_v37  ;;  %v1913_v16 = vadd.f32 %v6732_v30, %v5945_v2  ;;  %v6733_v33 = vld [vmem:[#allocation21_spill] sm:$0xff]  ;;  %v6294_v30 = vld [vmem:[%s6626_s7 + $0xa0] ss:$16 sps:$4 sm:$0xff]  }
 0xc84   :  { %v1986_v37 = vadd.f32 %v6733_v33, %v5949_v44  ;;  %v6306_v33 = vld [vmem:[%s6626_s7 + $0xc4] ss:$16 sps:$4 sm:$0xff]  }
 0xc86   :  { %2788 = vmatpush1.bf16.msra.mxu0 %v5690_v45  ;;  %2829 = vmatpush1.bf16.msra.mxu1 %v5695_v31 }
 0xc87   :  { %2789 = vmatprep.subr.bf16.mxu0 %v5704_v48  ;;  %2830 = vmatprep.subr.bf16.mxu1 %v5709_v56 }
 0xc8a   :  { %2790 = vmatpush1.bf16.msra.mxu0 %v5714_v50  ;;  %2831 = vmatpush1.bf16.msra.mxu1 %v5719_v51 }
 0xc8b   :  { %2791 = vmatprep.subr.bf16.mxu0 %v5728_v52  ;;  %2832 = vmatprep.subr.bf16.mxu1 %v5733_v53 }
 0xc8e   :  { %2792 = vmatpush1.bf16.msra.mxu0 %v5738_v54  ;;  %2833 = vmatpush1.bf16.msra.mxu1 %v5743_v57 }
 0xc8f   :  { %2793 = vmatprep.subr.bf16.mxu0 %v5752_v58  ;;  %2834 = vmatprep.subr.bf16.mxu1 %v5757_v62 }
 0xc92   :  { %2794 = vmatpush1.bf16.msra.mxu0 %v5762_v26  ;;  %2835 = vmatpush1.bf16.msra.mxu1 %v5767_v6 }
 0xc93   :  { %2795 = vmatprep.subr.bf16.mxu0 %v5776_v41  ;;  %2836 = vmatprep.subr.bf16.mxu1 %v5781_v43 }
 0xc96   :  { %2796 = vmatpush1.bf16.msra.mxu0 %v5786_v46  ;;  %2837 = vmatpush1.bf16.msra.mxu1 %v5791_v24 }
 0xc97   :  { %2797 = vmatprep.subr.bf16.mxu0 %v5800_v23  ;;  %2838 = vmatprep.subr.bf16.mxu1 %v5805_v25 }
 0xc9a   :  { %2798 = vmatpush1.bf16.msra.mxu0 %v5810_v27  ;;  %2839 = vmatpush1.bf16.msra.mxu1 %v5815_v47 }
 0xc9b   :  { %2899 = vmatprep.subr.bf16.mxu0 %v5632_v32  ;;  %2940 = vmatprep.subr.bf16.mxu1 %v5637_v9 }
 0xd50   :  { %v2701_v45 = vpop.f32.mrb[80].mxu0  ;;  %v2742_v31 = vpop.f32.mrb[80].mxu1 }
 0xd51   :  { %v2749_v48 = vadd.f32 %v2701_v45, %v1911_v36  ;;  %v2751_v56 = vadd.f32 %v2742_v31, %v1984_v13  ;;  %v2703_v50 = vpop.f32.mrb[81].mxu0  ;;  %v2744_v32 = vpop.f32.mrb[81].mxu1  ;;  %v6276_v36 = vld [vmem:[%s6626_s7 + $0x88] ss:$16 sps:$4 sm:$0xff]   ;;  %v6288_v13 = vld [vmem:[%s6626_s7 + $0xac] ss:$16 sps:$4 sm:$0xff]  }
 0xd52   :  { %v2750_v51 = vadd.f32 %v2703_v50, %v1913_v16  ;;  %v2752_v9 = vadd.f32 %v2744_v32, %v1986_v37  ;;  %v2705_v52 = vpop.f32.mrb[82].mxu0  ;;  %v2746_v53 = vpop.f32.mrb[82].mxu1  ;;  %v6300_v16 = vld [vmem:[%s6626_s7 + $0xa8] ss:$16 sps:$4 sm:$0xff]   ;;  %v6312_v37 = vld [vmem:[%s6626_s7 + $0xcc] ss:$16 sps:$4 sm:$0xff]  }
 0xd53   :  { %v3768_v54 = vmul.f32 -1.442695, %v2749_v48  ;;  %v2706_v57 = vpop.f32.mrb[83].mxu0  ;;  %v2747_v58 = vpop.f32.mrb[83].mxu1  ;;  %v6318_v45 = vld [vmem:[%s6626_s7 + $0xc0] ss:$16 sps:$4 sm:$0xff]  }
 0xd54   :  { %v3769_v62 = vmul.f32 -1.442695, %v2750_v51  ;;  %v3770_v26 = vmul.f32 -1.442695, %v2752_v9  ;;  %v6324_v31 = vld [vmem:[%s6626_s7 + $0xc8] ss:$16 sps:$4 sm:$0xff]  }
 0xd55   :  { %4344 = vpow2.f32 %v3768_v54  ;;  %v6330_v48 = vld [vmem:[%s6626_s7 + $0xe4] ss:$16 sps:$4 sm:$0xff]   ;;  %v6342_v50 = vld [vmem:[%s6626_s7 + $0xe0] ss:$16 sps:$4 sm:$0xff]   ;;  %v6348_v32 = vld [vmem:[%s6626_s7 + $0xe8] ss:$16 sps:$4 sm:$0xff]  }
 0xd56   :  { %4346 = vpow2.f32 %v3769_v62  ;;  %v4470_v51 = vld [vmem:[%s6626_s7 + $0x4] ss:$16 sps:$4 sm:$0xff]   ;;  %v4471_v9 = vld [vmem:[%s6626_s7 + $0xc] ss:$16 sps:$4 sm:$0xff]  }
 0xd57   :  { %4348 = vpow2.f32 %v3770_v26  ;;  %v6734_v52 = vld [vmem:[#allocation22_spill] sm:$0xff]  ;;  %v6735_v54 = vld [vmem:[#allocation23_spill] sm:$0xff]  ;;  %v6736_v58 = vld [vmem:[#allocation24_spill] sm:$0xff] }
 0xd58   :  { %4350 = vtanh.f32 %v2751_v56  ;;  %v6336_v56 = vld [vmem:[%s6626_s7 + $0xec] ss:$16 sps:$4 sm:$0xff]   ;;  %v1915_v53 = vadd.f32 %v6734_v52, %v5933_v14  ;;  %v1988_v57 = vadd.f32 %v6735_v54, %v5937_v61  ;;  %v1917_v62 = vadd.f32 %v6736_v58, %v5945_v2 }
 0xd59   :  { %v6737_v26 = vld [vmem:[#allocation25_spill] sm:$0xff] }
 0xd5f   :  { %v4345_v6 = vpop.eup %4344 }
 0xd60   :  { %v4347_v41 = vpop.eup %4346  ;;  %v2759_v43 = vadd.f32 1.0, %v4345_v6  ;;  %v1990_v6 = vadd.f32 %v6737_v26, %v5949_v44 }
 0xd61   :  { %v2760_v46 = vadd.f32 1.0, %v4347_v41  ;;  %v4349_v24 = vpop.eup %4348 }
 0xd62   :  { %4352 = vrcp.f32 %v2759_v43  ;;  %v4351_v23 = vpop.eup %4350  ;;  %v2769_v49 = vadd.f32 1.0, %v4349_v24 }
 0xd63   :  { %4354 = vrcp.f32 %v2760_v46 }
 0xd64   :  { %4356 = vrcp.f32 %v2769_v49 }
 0xd6c   :  { %v4353_v25 = vpop.eup %4352 }
 0xd6d   :  { %v4355_v27 = vpop.eup %4354  ;;  %v2773_v47 = vmul.f32 %v4353_v25, %v4351_v23 }
 0xd6e   :  { %v2772_v15 = vmul.f32 %v4355_v27, %v6112_v20  ;;  %v4357_v0 = vpop.eup %4356  ;;  %v6246_v20 = vld [vmem:[%s6626_s7 + $0x60] ss:$16 sps:$4 sm:$0xff]  }
 0xd70   :  { %v6162_v12 = vadd.f32 %v2773_v47, %v2772_v15 }
 0xd72   :  { %4358 = vtanh.f32 %v6162_v12 }
 0xd7c   :  { %v4359_v1 = vpop.eup %4358 }
 0xd7d   :  { %v6165_v7 = vmul.f32 %v4359_v1, %v4357_v0 }
 0xd7f   :  { %v2782_v8 = vpack.c.bf16 %v6165_v7, %v6165_v7 }
 0xd81   :  { %2816 = vmatmul.mubr.bf16.vlgmr.msra.gmra.mrb[84].mxu0 %v2782_v8  ;;  %2857 = vmatmul.mubr.bf16.vlgmr.msra.gmra.mrb[84].mxu1 %v2782_v8 }
 0xd82   :  { %2900 = vmatpush1.bf16.msra.mxu0 %v6172_v10  ;;  %2941 = vmatpush1.bf16.msra.mxu1 %v6178_v59 }
 0xd83   :  { %2901 = vmatprep.subr.bf16.mxu0 %v6184_v29  ;;  %2942 = vmatprep.subr.bf16.mxu1 %v6190_v42 }
 0xd84   :  { %2931 = vmatprep.mubr.bf16.mxu0 %v6673_v55  ;;  %2972 = vmatprep.mubr.bf16.mxu1 %v6673_v55 }
 0xd86   :  { %2902 = vmatpush1.bf16.msra.mxu0 %v6198_v21  ;;  %2943 = vmatpush1.bf16.msra.mxu1 %v6204_v28 }
 0xd87   :  { %2903 = vmatprep.subr.bf16.mxu0 %v6210_v3  ;;  %2944 = vmatprep.subr.bf16.mxu1 %v6216_v35 }
 0xd8a   :  { %2904 = vmatpush1.bf16.msra.mxu0 %v6222_v17  ;;  %2945 = vmatpush1.bf16.msra.mxu1 %v6228_v22 }
 0xd8b   :  { %2905 = vmatprep.subr.bf16.mxu0 %v6234_v38  ;;  %2946 = vmatprep.subr.bf16.mxu1 %v6240_v60 }
 0xd8e   :  { %2906 = vmatpush1.bf16.msra.mxu0 %v6246_v20  ;;  %2947 = vmatpush1.bf16.msra.mxu1 %v6252_v39 }
 0xd8f   :  { %2907 = vmatprep.subr.bf16.mxu0 %v6258_v11  ;;  %2948 = vmatprep.subr.bf16.mxu1 %v6264_v40 }
 0xd92   :  { %2908 = vmatpush1.bf16.msra.mxu0 %v6270_v34  ;;  %2949 = vmatpush1.bf16.msra.mxu1 %v6276_v36 }
 0xd93   :  { %2909 = vmatprep.subr.bf16.mxu0 %v6282_v5  ;;  %2950 = vmatprep.subr.bf16.mxu1 %v6288_v13 }
 0xd96   :  { %2910 = vmatpush1.bf16.msra.mxu0 %v6294_v30  ;;  %2951 = vmatpush1.bf16.msra.mxu1 %v6300_v16 }
 0xd97   :  { %2911 = vmatprep.subr.bf16.mxu0 %v6306_v33  ;;  %2952 = vmatprep.subr.bf16.mxu1 %v6312_v37 }
 0xd9a   :  { %2912 = vmatpush1.bf16.msra.mxu0 %v6318_v45  ;;  %2953 = vmatpush1.bf16.msra.mxu1 %v6324_v31 }
 0xd9b   :  { %2913 = vmatprep.subr.bf16.mxu0 %v6330_v48  ;;  %2954 = vmatprep.subr.bf16.mxu1 %v6336_v56 }
 0xd9e   :  { %2914 = vmatpush1.bf16.msra.mxu0 %v6342_v50  ;;  %2955 = vmatpush1.bf16.msra.mxu1 %v6348_v32 }
 0xd9f   :  { %3015 = vmatprep.subr.bf16.mxu0 %v4470_v51  ;;  %3056 = vmatprep.subr.bf16.mxu1 %v4471_v9 }
 0xe54   :  { %v2817_v41 = vpop.f32.mrb[84].mxu0  ;;  %v2858_v43 = vpop.f32.mrb[84].mxu1 }
 0xe55   :  { %v2865_v46 = vadd.f32 %v2817_v41, %v1915_v53  ;;  %v2867_v24 = vadd.f32 %v2858_v43, %v1988_v57  ;;  %v2819_v23 = vpop.f32.mrb[85].mxu0  ;;  %v2860_v25 = vpop.f32.mrb[85].mxu1 }
 0xe56   :  { %v2866_v27 = vadd.f32 %v2819_v23, %v1917_v62  ;;  %v2868_v47 = vadd.f32 %v2860_v25, %v1990_v6  ;;  %v2821_v49 = vpop.f32.mrb[86].mxu0  ;;  %v2862_v15 = vpop.f32.mrb[86].mxu1 }
 0xe57   :  { %v3771_v0 = vmul.f32 -1.442695, %v2865_v46  ;;  %v2822_v1 = vpop.f32.mrb[87].mxu0  ;;  %v2863_v8 = vpop.f32.mrb[87].mxu1 }
 0xe58   :  { %v3772_v51 = vmul.f32 -1.442695, %v2866_v27  ;;  %v3773_v9 = vmul.f32 -1.442695, %v2868_v47 }
 0xe59   :  { %4360 = vpow2.f32 %v3771_v0 }
 0xe5a   :  { %4362 = vpow2.f32 %v3772_v51 }
 0xe5b   :  { %4364 = vpow2.f32 %v3773_v9 }
 0xe5c   :  { %4366 = vtanh.f32 %v2867_v24 }
 0xe63   :  { %v4361_v52 = vpop.eup %4360 }
 0xe64   :  { %v4363_v54 = vpop.eup %4362  ;;  %v2875_v58 = vadd.f32 1.0, %v4361_v52 }
 0xe65   :  { %v2876_v53 = vadd.f32 1.0, %v4363_v54  ;;  %v4365_v57 = vpop.eup %4364  ;;  %v4129_v54 = vld [vmem:[%s6628_s9 + $0x8] sm:$0xff]  }
 0xe66   :  { %4368 = vrcp.f32 %v2875_v58  ;;  %v4367_v62 = vpop.eup %4366  ;;  %v2885_v43 = vadd.f32 1.0, %v4365_v57  ;;  %v3154_v58 = vpack.c.bf16 %v6015_v18, %v5965_v19  ;;  %v4131_v57 = vld [vmem:[%s6628_s9 + $0x18] sm:$0xff]   ;;  %v4132_v19 = vld [vmem:[%s6628_s9 + $0x20] sm:$0xff]   ;;  %v4133_v18 = vld [vmem:[%s6628_s9 + $0x28] sm:$0xff]  }
 0xe67   :  { %4370 = vrcp.f32 %v2876_v53  ;;  %v4130_v53 = vld [vmem:[%s6628_s9 + $0x10] sm:$0xff]  }
 0xe68   :  { %4372 = vrcp.f32 %v2885_v43  ;;  %v4136_v43 = vld [vmem:[%s6630_s11] sm:$0xff]  }
 0xe70   :  { %v4369_v26 = vpop.eup %4368 }
 0xe71   :  { %v4371_v6 = vpop.eup %4370  ;;  %v2889_v41 = vmul.f32 %v4369_v26, %v4367_v62  ;;  %v4134_v62 = vld [vmem:[%s6628_s9 + $0x30] sm:$0xff]   ;;  %v4135_v26 = vld [vmem:[%s6628_s9 + $0x38] sm:$0xff]  }
 0xe72   :  { %v2888_v46 = vmul.f32 %v4371_v6, %v6162_v12  ;;  %v4373_v25 = vpop.eup %4372  ;;  %v6738_v12 = vld [vmem:[#allocation26_spill] sm:$0xff]  ;;  %v3155_v6 = vpack.c.bf16 %v6115_v63, %v6065_v4  ;;  %v4138_v4 = vld [vmem:[%s6630_s11 + $0x10] sm:$0xff]   ;;  %v4139_v63 = vld [vmem:[%s6630_s11 + $0x18] sm:$0xff]  }
 0xe74   :  { %v6366_v23 = vadd.f32 %v2889_v41, %v2888_v46  ;;  %v4137_v46 = vld [vmem:[%s6630_s11 + $0x8] sm:$0xff]  }
 0xe76   :  { %4374 = vtanh.f32 %v6366_v23 }
 0xe80   :  { %v4375_v27 = vpop.eup %4374 }
 0xe81   :  { %v6369_v47 = vmul.f32 %v4375_v27, %v4373_v25  ;;  %v4142_v25 = vld [vmem:[%s6630_s11 + $0x30] sm:$0xff]   ;;  %v4143_v27 = vld [vmem:[%s6630_s11 + $0x38] sm:$0xff]  }
 0xe83   :  { %v2898_v24 = vpack.c.bf16 %v6369_v47, %v6369_v47  ;;  %v3156_v41 = vpack.c.bf16 %v6369_v47, %v6165_v7  ;;  %v4140_v7 = vld [vmem:[%s6630_s11 + $0x20] sm:$0xff]  }
 0xe84   :  { %v6478_v47 = vld [vmem:[%s6632_s13] sm:$0xff]  }
 0xe85   :  { %2932 = vmatmul.mubr.bf16.vlgmr.msra.gmra.mrb[88].mxu0 %v2898_v24  ;;  %2973 = vmatmul.mubr.bf16.vlgmr.msra.gmra.mrb[88].mxu1 %v2898_v24  ;;  %v6483_v24 = vld [vmem:[%s6632_s13 + $0x8] sm:$0xff]  }
 0xe86   :  { %3016 = vmatpush1.bf16.msra.mxu0 %v6172_v10  ;;  %3057 = vmatpush1.bf16.msra.mxu1 %v6178_v59  ;;  %v1921_v10 = vadd.f32 %v6738_v12, %v5933_v14  ;;  %v6739_v59 = vld [vmem:[#allocation27_spill] sm:$0xff]  ;;  %v6499_v12 = vld [vmem:[%s6632_s13 + $0x18] sm:$0xff]  }
 0xe87   :  { %3017 = vmatprep.subr.bf16.mxu0 %v6184_v29  ;;  %3058 = vmatprep.subr.bf16.mxu1 %v6190_v42  ;;  %v1994_v29 = vadd.f32 %v6739_v59, %v5937_v61  ;;  %v6740_v42 = vld [vmem:[#allocation28_spill] sm:$0xff]  ;;  %v6513_v59 = vld [vmem:[%s6632_s13 + $0x28] sm:$0xff]  }
 0xe88   :  { %3047 = vmatprep.mubr.bf16.mxu0 %v6673_v55  ;;  %3088 = vmatprep.mubr.bf16.mxu1 %v6673_v55  ;;  %v4128_v55 = vld [vmem:[%s6628_s9] sm:$0xff]  }
 0xe8a   :  { %3018 = vmatpush1.bf16.msra.mxu0 %v6198_v21  ;;  %3059 = vmatpush1.bf16.msra.mxu1 %v6204_v28  ;;  %v1923_v21 = vadd.f32 %v6740_v42, %v5945_v2  ;;  %v6741_v28 = vld [vmem:[#allocation29_spill] sm:$0xff] }
 0xe8b   :  { %3019 = vmatprep.subr.bf16.mxu0 %v6210_v3  ;;  %3060 = vmatprep.subr.bf16.mxu1 %v6216_v35  ;;  %v1996_v3 = vadd.f32 %v6741_v28, %v5949_v44 }
 0xe8e   :  { %3020 = vmatpush1.bf16.msra.mxu0 %v6222_v17  ;;  %3061 = vmatpush1.bf16.msra.mxu1 %v6228_v22 }
 0xe8f   :  { %3021 = vmatprep.subr.bf16.mxu0 %v6234_v38  ;;  %3062 = vmatprep.subr.bf16.mxu1 %v6240_v60 }
 0xe92   :  { %3022 = vmatpush1.bf16.msra.mxu0 %v6246_v20  ;;  %3063 = vmatpush1.bf16.msra.mxu1 %v6252_v39 }
 0xe93   :  { %3023 = vmatprep.subr.bf16.mxu0 %v6258_v11  ;;  %3064 = vmatprep.subr.bf16.mxu1 %v6264_v40 }
 0xe96   :  { %3024 = vmatpush1.bf16.msra.mxu0 %v6270_v34  ;;  %3065 = vmatpush1.bf16.msra.mxu1 %v6276_v36 }
 0xe97   :  { %3025 = vmatprep.subr.bf16.mxu0 %v6282_v5  ;;  %3066 = vmatprep.subr.bf16.mxu1 %v6288_v13 }
 0xe9a   :  { %3026 = vmatpush1.bf16.msra.mxu0 %v6294_v30  ;;  %3067 = vmatpush1.bf16.msra.mxu1 %v6300_v16 }
 0xe9b   :  { %3027 = vmatprep.subr.bf16.mxu0 %v6306_v33  ;;  %3068 = vmatprep.subr.bf16.mxu1 %v6312_v37 }
 0xe9e   :  { %3028 = vmatpush1.bf16.msra.mxu0 %v6318_v45  ;;  %3069 = vmatpush1.bf16.msra.mxu1 %v6324_v31 }
 0xe9f   :  { %3029 = vmatprep.subr.bf16.mxu0 %v6330_v48  ;;  %3070 = vmatprep.subr.bf16.mxu1 %v6336_v56 }
 0xea2   :  { %3030 = vmatpush1.bf16.msra.mxu0 %v6342_v50  ;;  %3071 = vmatpush1.bf16.msra.mxu1 %v6348_v32 }
 0xea3   :  { %3843 = vmatprep.subr.bf16.mxu0 %v4128_v55  ;;  %3867 = vmatprep.subr.bf16.mxu1 %v4136_v43 }
 0xf58   :  { %v2933_v35 = vpop.f32.mrb[88].mxu0  ;;  %v2974_v17 = vpop.f32.mrb[88].mxu1 }
 0xf59   :  { %v2981_v22 = vadd.f32 %v2933_v35, %v1921_v10  ;;  %v2983_v38 = vadd.f32 %v2974_v17, %v1994_v29  ;;  %v2935_v60 = vpop.f32.mrb[89].mxu0  ;;  %v2976_v20 = vpop.f32.mrb[89].mxu1  ;;  %v6506_v10 = vld [vmem:[%s6632_s13 + $0x20] sm:$0xff]   ;;  %v6745_v17 = vld [vmem:[#allocation32_spill] sm:$0xff] }
 0xf5a   :  { %v2982_v39 = vadd.f32 %v2935_v60, %v1923_v21  ;;  %v2984_v11 = vadd.f32 %v2976_v20, %v1996_v3  ;;  %v2937_v40 = vpop.f32.mrb[90].mxu0  ;;  %v2978_v34 = vpop.f32.mrb[90].mxu1  ;;  %v6742_v29 = vld [vmem:[#allocation30_spill] sm:$0xff]  ;;  %v6743_v21 = vld [vmem:[#allocation31_spill] sm:$0xff] }
 0xf5b   :  { %v3774_v36 = vmul.f32 -1.442695, %v2981_v22  ;;  %v2938_v5 = vpop.f32.mrb[91].mxu0  ;;  %v2979_v13 = vpop.f32.mrb[91].mxu1  ;;  %v1925_v42 = vadd.f32 %v6742_v29, %v5933_v14  ;;  %v1998_v28 = vadd.f32 %v6743_v21, %v5937_v61  ;;  %v6744_v3 = vld [vmem:[#allocation10_spill] sm:$0xff]  ;;  %v2000_v22 = vadd.f32 %v6745_v17, %v5949_v44 }
 0xf5c   :  { %v3775_v30 = vmul.f32 -1.442695, %v2982_v39  ;;  %v3776_v16 = vmul.f32 -1.442695, %v2984_v11  ;;  %v1927_v35 = vadd.f32 %v6744_v3, %v5945_v2 }
 0xf5d   :  { %4376 = vpow2.f32 %v3774_v36 }
 0xf5e   :  { %4378 = vpow2.f32 %v3775_v30 }
 0xf5f   :  { %4380 = vpow2.f32 %v3776_v16 }
 0xf60   :  { %4382 = vtanh.f32 %v2983_v38 }
 0xf67   :  { %v4377_v33 = vpop.eup %4376 }
 0xf68   :  { %v4379_v37 = vpop.eup %4378  ;;  %v2991_v45 = vadd.f32 1.0, %v4377_v33 }
 0xf69   :  { %v2992_v31 = vadd.f32 1.0, %v4379_v37  ;;  %v4381_v48 = vpop.eup %4380 }
 0xf6a   :  { %4384 = vrcp.f32 %v2991_v45  ;;  %v4383_v56 = vpop.eup %4382  ;;  %v3001_v15 = vadd.f32 1.0, %v4381_v48 }
 0xf6b   :  { %4386 = vrcp.f32 %v2992_v31 }
 0xf6c   :  { %4388 = vrcp.f32 %v3001_v15 }
 0xf74   :  { %v4385_v50 = vpop.eup %4384 }
 0xf75   :  { %v4387_v32 = vpop.eup %4386  ;;  %v3005_v49 = vmul.f32 %v4385_v50, %v4383_v56 }
 0xf76   :  { %v3004_v0 = vmul.f32 %v4387_v32, %v6366_v23  ;;  %v4389_v8 = vpop.eup %4388  ;;  %v4141_v23 = vld [vmem:[%s6630_s11 + $0x28] sm:$0xff]   ;;  %s4522_s11 = smov [#allocation6]  }
 0xf77   :  { %s3585_s24 = sshll.u32 %s4522_s11, 4  ;;  %s6572_s24 = int_to_ptr.vmem [resolvable:$true] %s3585_s24 }
 0xf78   :  { %v6417_v1 = vadd.f32 %v3005_v49, %v3004_v0 }
 0xf7a   :  { %4390 = vtanh.f32 %v6417_v1 }
 0xf84   :  { %v4391_v51 = vpop.eup %4390 }
 0xf85   :  { %v6420_v9 = vmul.f32 %v4391_v51, %v4389_v8  ;;  %v3780_v51 = vld [vmem:[%s6629_s10] ss:$0 sm:$0xff] }
 0xf87   :  { %v3014_v52 = vpack.c.bf16 %v6420_v9, %v6420_v9 }
 0xf89   :  { %3048 = vmatmul.mubr.bf16.vlgmr.msra.gmra.mrb[92].mxu0 %v3014_v52  ;;  %3089 = vmatmul.mubr.bf16.vlgmr.msra.gmra.mrb[92].mxu1 %v3014_v52 }
 0xf8a   :  { %3844 = vmatpush3.bf16.msra.mxu0 %v4128_v55  ;;  %3859 = vmatprep.mubr.bf16.mxu0 %v3154_v58  ;;  %v6492_v55 = vld [vmem:[%s6632_s13 + $0x10] sm:$0xff]  }
 0xf8b   :  { %3845 = vmatprep.subr.bf16.mxu0 %v4129_v54  ;;  %3868 = vmatpush3.bf16.msra.mxu1 %v4136_v43 }
 0xf8c   :  { %3869 = vmatprep.subr.bf16.mxu1 %v4137_v46 }
 0xf8e   :  { %3846 = vmatpush3.bf16.msra.mxu0 %v4129_v54 }
 0xf8f   :  { %3847 = vmatprep.subr.bf16.mxu0 %v4130_v53  ;;  %3870 = vmatpush3.bf16.msra.mxu1 %v4137_v46  ;;  %v4151_v46 = vld [vmem:[%s6632_s13 + $0x38] sm:$0xff]  }
 0xf90   :  { %3871 = vmatprep.subr.bf16.mxu1 %v4138_v4 }
 0xf92   :  { %3848 = vmatpush3.bf16.msra.mxu0 %v4130_v53 }
 0xf93   :  { %3849 = vmatprep.subr.bf16.mxu0 %v4131_v57  ;;  %3872 = vmatpush3.bf16.msra.mxu1 %v4138_v4 }
 0xf94   :  { %3873 = vmatprep.subr.bf16.mxu1 %v4139_v63 }
 0xf96   :  { %3850 = vmatpush3.bf16.msra.mxu0 %v4131_v57 }
 0xf97   :  { %3851 = vmatprep.subr.bf16.mxu0 %v4132_v19  ;;  %3874 = vmatpush3.bf16.msra.mxu1 %v4139_v63  ;;  %v3789_v63 = vld [vmem:[%s6631_s12] ss:$0 sm:$0xff] }
 0xf98   :  { %3875 = vmatprep.subr.bf16.mxu1 %v4140_v7 }
 0xf9a   :  { %3852 = vmatpush3.bf16.msra.mxu0 %v4132_v19 }
 0xf9b   :  { %3853 = vmatprep.subr.bf16.mxu0 %v4133_v18  ;;  %3876 = vmatpush3.bf16.msra.mxu1 %v4140_v7 }
 0xf9c   :  { %3877 = vmatprep.subr.bf16.mxu1 %v4141_v23 }
 0xf9e   :  { %3854 = vmatpush3.bf16.msra.mxu0 %v4133_v18 }
 0xf9f   :  { %3855 = vmatprep.subr.bf16.mxu0 %v4134_v62  ;;  %3878 = vmatpush3.bf16.msra.mxu1 %v4141_v23 }
 0xfa0   :  { %3879 = vmatprep.subr.bf16.mxu1 %v4142_v25 }
 0xfa2   :  { %3856 = vmatpush3.bf16.msra.mxu0 %v4134_v62 }
 0xfa3   :  { %3857 = vmatprep.subr.bf16.mxu0 %v4135_v26  ;;  %3880 = vmatpush3.bf16.msra.mxu1 %v4142_v25 }
 0xfa4   :  { %3881 = vmatprep.subr.bf16.mxu1 %v4143_v27 }
 0xfa6   :  { %3858 = vmatpush3.bf16.msra.mxu0 %v4135_v26 }
 0xfa7   :  { %3882 = vmatpush3.bf16.msra.mxu1 %v4143_v27  ;;  %3891 = vmatprep.subr.bf16.mxu0 %v6478_v47 }
 0xfa8   :  { %3915 = vmatprep.subr.bf16.mxu1 %v6478_v47 }
 0xfa9   :  { %3860 = vmatmul.mubr.bf16.vlgmr.msra.gmra.mrb[96].mxu0 %v3155_v6 }
 0xfaa   :  { %3863 = vmatprep.mubr.bf16.mxu0 %v3156_v41  ;;  %3892 = vmatpush3.bf16.msra.mxu0 %v6478_v47 }
 0xfab   :  { %3893 = vmatprep.subr.bf16.mxu0 %v6483_v24 }
 0xfae   :  { %3894 = vmatpush3.bf16.msra.mxu0 %v6483_v24 }
 0xfaf   :  { %3895 = vmatprep.subr.bf16.mxu0 %v6492_v55 }
 0xfb2   :  { %3896 = vmatpush3.bf16.msra.mxu0 %v6492_v55 }
 0xfb3   :  { %3897 = vmatprep.subr.bf16.mxu0 %v6499_v12 }
 0xfb6   :  { %3898 = vmatpush3.bf16.msra.mxu0 %v6499_v12 }
 0xfb7   :  { %3899 = vmatprep.subr.bf16.mxu0 %v6506_v10 }
 0xfba   :  { %3900 = vmatpush3.bf16.msra.mxu0 %v6506_v10 }
 0xfbb   :  { %3901 = vmatprep.subr.bf16.mxu0 %v6513_v59 }
 0xfbe   :  { %3902 = vmatpush3.bf16.msra.mxu0 %v6513_v59 }
0x105c   :  { %v3049_v38 = vpop.f32.mrb[92].mxu0  ;;  %v3090_v60 = vpop.f32.mrb[92].mxu1 }
0x105d   :  { %v3097_v20 = vadd.f32 %v3049_v38, %v1925_v42  ;;  %v3099_v39 = vadd.f32 %v3090_v60, %v1998_v28  ;;  %v3051_v11 = vpop.f32.mrb[93].mxu0  ;;  %v3092_v40 = vpop.f32.mrb[93].mxu1  ;;  %v6554_v60 = vld [vmem:[%s6633_s14] ss:$0 sm:$0xff] }
0x105e   :  { %v3098_v34 = vadd.f32 %v3051_v11, %v1927_v35  ;;  %v3100_v36 = vadd.f32 %v3092_v40, %v2000_v22  ;;  %v3053_v5 = vpop.f32.mrb[94].mxu0  ;;  %v3094_v13 = vpop.f32.mrb[94].mxu1 }
0x105f   :  { %v3777_v14 = vmul.f32 -1.442695, %v3097_v20  ;;  %v3054_v30 = vpop.f32.mrb[95].mxu0  ;;  %v3095_v16 = vpop.f32.mrb[95].mxu1 }
0x1060   :  { %v3778_v61 = vmul.f32 -1.442695, %v3098_v34  ;;  %v3779_v2 = vmul.f32 -1.442695, %v3100_v36 }
0x1061   :  { %4392 = vpow2.f32 %v3777_v14 }
0x1062   :  { %4394 = vpow2.f32 %v3778_v61 }
0x1063   :  { %4396 = vpow2.f32 %v3779_v2 }
0x1064   :  { %4398 = vtanh.f32 %v3099_v39 }
0x106b   :  { %v4393_v33 = vpop.eup %4392 }
0x106c   :  { %v4395_v37 = vpop.eup %4394  ;;  %v3107_v44 = vadd.f32 1.0, %v4393_v33 }
0x106d   :  { %v3108_v45 = vadd.f32 1.0, %v4395_v37  ;;  %v4397_v31 = vpop.eup %4396 }
0x106e   :  { %4400 = vrcp.f32 %v3107_v44  ;;  %v4399_v48 = vpop.eup %4398  ;;  %v3117_v49 = vadd.f32 1.0, %v4397_v31 }
0x106f   :  { %4402 = vrcp.f32 %v3108_v45 }
0x1070   :  { %4404 = vrcp.f32 %v3117_v49 }
0x1078   :  { %v4401_v56 = vpop.eup %4400 }
0x1079   :  { %v4403_v50 = vpop.eup %4402  ;;  %v3121_v32 = vmul.f32 %v4401_v56, %v4399_v48 }
0x107a   :  { %v3120_v15 = vmul.f32 %v4403_v50, %v6417_v1  ;;  %v4405_v1 = vpop.eup %4404 }
0x107c   :  { %v3122_v0 = vadd.f32 %v3121_v32, %v3120_v15  ;;  %v3861_v8 = vpop.f32.mrb[96].mxu0 }
0x107d   :  { %v3247_v52 = vpop.f32.mrb[97].mxu0  ;;  %v3256_v58 = vadd.f32 %v3861_v8, %v3780_v51 }
0x107e   :  { %3129 = vst [vmem:[#allocation6 + $0x8] sm:$0xff] %v3122_v0  ;;  %v3862_v54 = vpop.f32.mrb[98].mxu0  ;;  %4406 = vtanh.f32 %v3122_v0  ;;  %v3248_v19 = vadd.f32 %v3780_v51, %v3247_v52 }
0x107f   :  { %v3259_v53 = vadd.f32 %v3862_v54, %v3780_v51  ;;  %v3250_v57 = vpop.f32.mrb[99].mxu0 }
0x1080   :  { %v3251_v18 = vadd.f32 %v3780_v51, %v3250_v57 }
0x1081   :  { %v3295_v62 = vpack.c.bf16 %v3259_v53, %v3256_v58 }
0x1082   :  { %v3294_v26 = vpack.c.bf16 %v3251_v18, %v3248_v19 }
0x1084   :  { %3883 = vmatprep.mubr.bf16.mxu1 %v3294_v26 }
0x1085   :  { %3884 = vmatmul.mubr.bf16.vlgmr.msra.gmra.mrb[96].mxu1 %v3295_v62 }
0x1086   :  { %3923 = vmatpush3.bf16.msra.mxu1 %v6478_v47 }
0x1087   :  { %3916 = vmatprep.subr.bf16.mxu1 %v6483_v24 }
0x1088   :  { %v4407_v6 = vpop.eup %4406 }
0x1089   :  { %v3124_v41 = vmul.f32 %v4407_v6, %v4405_v1 }
0x108a   :  { %3924 = vmatpush3.bf16.msra.mxu1 %v6483_v24 }
0x108b   :  { %v3157_v43 = vpack.c.bf16 %v3124_v41, %v6420_v9  ;;  %3127 = vst [vmem:[#allocation4 + $0x8] sm:$0xff] %v3124_v41  ;;  %3917 = vmatprep.subr.bf16.mxu1 %v6492_v55  ;;  %v4150_v9 = vld [vmem:[%s6632_s13 + $0x30] sm:$0xff]  }
0x108c   :  { %3903 = vmatprep.subr.bf16.mxu0 %v4150_v9 }
0x108d   :  { %3864 = vmatmul.mubr.bf16.gmra.mrb[100].mxu0 %v3157_v43 }
0x108e   :  { %3925 = vmatpush3.bf16.msra.mxu1 %v6492_v55  ;;  %3904 = vmatpush3.bf16.msra.mxu0 %v4150_v9 }
0x108f   :  { %3918 = vmatprep.subr.bf16.mxu1 %v6499_v12  ;;  %3905 = vmatprep.subr.bf16.mxu0 %v4151_v46 }
0x1092   :  { %3926 = vmatpush3.bf16.msra.mxu1 %v6499_v12  ;;  %3906 = vmatpush3.bf16.msra.mxu0 %v4151_v46 }
0x1093   :  { %3919 = vmatprep.subr.bf16.mxu1 %v6506_v10 }
0x1096   :  { %3927 = vmatpush3.bf16.msra.mxu1 %v6506_v10 }
0x1097   :  { %3920 = vmatprep.subr.bf16.mxu1 %v6513_v59 }
0x109a   :  { %3928 = vmatpush3.bf16.msra.mxu1 %v6513_v59 }
0x109b   :  { %3921 = vmatprep.subr.bf16.mxu1 %v4150_v9 }
0x109e   :  { %3929 = vmatpush3.bf16.msra.mxu1 %v4150_v9 }
0x109f   :  { %3922 = vmatprep.subr.bf16.mxu1 %v4151_v46 }
0x10a2   :  { %3930 = vmatpush3.bf16.msra.mxu1 %v4151_v46 }
0x1158   :  { %v3885_v4 = vpop.f32.mrb[96].mxu1 }
0x1159   :  { %v3387_v7 = vpop.f32.mrb[97].mxu1  ;;  %v3396_v25 = vadd.f32 %v3885_v4, %v3789_v63 }
0x115a   :  { %v3886_v23 = vpop.f32.mrb[98].mxu1  ;;  %v3388_v24 = vadd.f32 %v3789_v63, %v3387_v7 }
0x115b   :  { %v3399_v27 = vadd.f32 %v3886_v23, %v3789_v63  ;;  %v3390_v47 = vpop.f32.mrb[99].mxu1 }
0x115c   :  { %v3391_v55 = vadd.f32 %v3789_v63, %v3390_v47 }
0x115d   :  { %v3435_v12 = vpack.c.bf16 %v3399_v27, %v3396_v25 }
0x115e   :  { %v3434_v10 = vpack.c.bf16 %v3391_v55, %v3388_v24 }
0x1160   :  { %3907 = vmatprep.mubr.bf16.mxu0 %v3434_v10  ;;  %v3865_v59 = vpop.f32.mrb[100].mxu0 }
0x1161   :  { %3908 = vmatmul.mubr.bf16.vlgmr.msra.gmra.mrb[104].mxu0 %v3435_v12  ;;  %v3263_v29 = vpop.f32.mrb[101].mxu0  ;;  %v3272_v21 = vadd.f32 %v3865_v59, %v3780_v51 }
0x1162   :  { %v3866_v42 = vpop.f32.mrb[102].mxu0  ;;  %v3264_v35 = vadd.f32 %v3780_v51, %v3263_v29 }
0x1163   :  { %v3275_v28 = vadd.f32 %v3866_v42, %v3780_v51  ;;  %v3266_v3 = vpop.f32.mrb[103].mxu0 }
0x1164   :  { %v3267_v17 = vadd.f32 %v3780_v51, %v3266_v3 }
0x1165   :  { %v3297_v22 = vpack.c.bf16 %v3275_v28, %v3272_v21 }
0x1166   :  { %v3296_v38 = vpack.c.bf16 %v3267_v17, %v3264_v35 }
0x1168   :  { %3887 = vmatprep.mubr.bf16.mxu1 %v3296_v38 }
0x1169   :  { %3888 = vmatmul.mubr.bf16.gmra.mrb[100].mxu1 %v3297_v22 }
0x1234   :  { %v3909_v20 = vpop.f32.mrb[104].mxu0 }
0x1235   :  { %v3536_v39 = vadd.f32 %v3909_v20, %v6554_v60  ;;  %v3527_v11 = vpop.f32.mrb[105].mxu0 }
0x1236   :  { %v3528_v40 = vadd.f32 %v6554_v60, %v3527_v11  ;;  %v3910_v34 = vpop.f32.mrb[106].mxu0 }
0x1237   :  { %3560 = vst [vmem:[%s6634_s15 + $0x10] sm:$0xff] %v3536_v39  ;;  %v3539_v36 = vadd.f32 %v3910_v34, %v6554_v60  ;;  %v3530_v5 = vpop.f32.mrb[107].mxu0 }
0x1238   :  { %3558 = vst [vmem:[%s6634_s15] sm:$0xff] %v3528_v40  ;;  %v3531_v13 = vadd.f32 %v6554_v60, %v3530_v5 }
0x1239   :  { %3561 = vst [vmem:[%s6634_s15 + $0x18] sm:$0xff] %v3539_v36 }
0x123a   :  { %3559 = vst [vmem:[%s6634_s15 + $0x8] sm:$0xff] %v3531_v13 }
0x123c   :  { %v3889_v14 = vpop.f32.mrb[100].mxu1 }
0x123d   :  { %v3403_v30 = vpop.f32.mrb[101].mxu1  ;;  %v3412_v61 = vadd.f32 %v3889_v14, %v3789_v63 }
0x123e   :  { %v3890_v16 = vpop.f32.mrb[102].mxu1  ;;  %v3404_v37 = vadd.f32 %v3789_v63, %v3403_v30 }
0x123f   :  { %v3415_v2 = vadd.f32 %v3890_v16, %v3789_v63  ;;  %v3406_v33 = vpop.f32.mrb[103].mxu1 }
0x1240   :  { %v3407_v44 = vadd.f32 %v3789_v63, %v3406_v33 }
0x1241   :  { %v3437_v45 = vpack.c.bf16 %v3415_v2, %v3412_v61 }
0x1242   :  { %v3436_v31 = vpack.c.bf16 %v3407_v44, %v3404_v37 }
0x1244   :  { %3911 = vmatprep.mubr.bf16.mxu1 %v3436_v31 }
0x1245   :  { %3912 = vmatmul.mubr.bf16.vlgmr.msra.gmra.mrb[104].mxu1 %v3437_v45 }
0x1246   :  { %4483 = shalt.err (!%p4480_p4)
}
0x1247   :  { %s4484_s20 = scalar_lea.hbm %s6635_s16, 256 }
0x1248   :  { %p4485_p5 = scmp.ne.s32.totalorder %s6635_s16, %s4484_s20  ;;  %p4488_p6 = scmp.lt.u32.totalorder %s4484_s20, %s6635_s16 }
0x124a   :  { %p4490_p7 = pnand %p4488_p6, %p4485_p5 }
0x124c   :  { %4493 = shalt.err (!%p4490_p7)
}
0x124d   :  { %s4523_s10 = smov 128   ;;  %s4524_s2 = smov 8  }
0x124e   :  { %3579 = dma.vmem_to_hbm [thread:$0]  %s3574_s23, 256, %s6635_s16, [#allocation5], %s4523_s10, %s4523_s10, %s4524_s2  }
0x124f   :  { %s4494_s18 = scalar_lea.vmem %s6572_s24, 256  ;;  %p4499_p9 = scmp.lt.s32.totalorder %s6572_s24, %s6572_s24 }
0x1250   :  { %p4495_p8 = scmp.ne.s32.totalorder %s6572_s24, %s4494_s18  ;;  %p4500_p10 = scmp.lt.s32.totalorder %s4494_s18, %s4494_s18 }
0x1252   :  { %p4501_p11 = por %p4500_p10, %p4499_p9 }
0x1254   :  { %p4502_p12 = pnand %p4501_p11, %p4495_p8 }
0x1256   :  { %4505 = shalt.err (!%p4502_p12)
}
0x1257   :  { %s4506_s13 = scalar_lea.hbm %s6636_s17, 256 }
0x1258   :  { %p4507_p13 = scmp.ne.s32.totalorder %s6636_s17, %s4506_s13  ;;  %p4510_p0 = scmp.lt.u32.totalorder %s4506_s13, %s6636_s17 }
0x125a   :  { %p4512_p1 = pnand %p4510_p0, %p4507_p13 }
0x125c   :  { %4515 = shalt.err (!%p4512_p1)
}
0x125d   :  { %3591 = dma.vmem_to_hbm [thread:$0]  %s6572_s24, 256, %s6636_s17, [#allocation7], %s4523_s10, %s4523_s10, %s4524_s2  }
0x1318   :  { %v3913_v48 = vpop.f32.mrb[104].mxu1 }
0x1319   :  { %v3552_v56 = vadd.f32 %v3913_v48, %v6554_v60  ;;  %v3543_v50 = vpop.f32.mrb[105].mxu1 }
0x131a   :  { %v3544_v32 = vadd.f32 %v6554_v60, %v3543_v50  ;;  %v3914_v49 = vpop.f32.mrb[106].mxu1 }
0x131b   :  { %3564 = vst [vmem:[%s6634_s15 + $0x30] sm:$0xff] %v3552_v56  ;;  %v3555_v15 = vadd.f32 %v3914_v49, %v6554_v60  ;;  %v3546_v0 = vpop.f32.mrb[107].mxu1 }
0x131c   :  { %3562 = vst [vmem:[%s6634_s15 + $0x20] sm:$0xff] %v3544_v32  ;;  %v3547_v8 = vadd.f32 %v6554_v60, %v3546_v0 }
0x131d   :  { %3565 = vst [vmem:[%s6634_s15 + $0x38] sm:$0xff] %v3555_v15 }
0x131e   :  { %3563 = vst [vmem:[%s6634_s15 + $0x28] sm:$0xff] %v3547_v8 }
0x131f   :  { %4516 = dma.done.wait [#allocation5], 256  }
0x1320   :  { %4517 = vsyncadd [#allocation5], 4294967040 }
0x1321   :  { %4518 = dma.done.wait [#allocation7], 256  }
0x1322   :  { %4519 = vsyncadd [#allocation7], 4294967040 }
0x1323   :  { %3600 = vsyncpa [#allocation5], 1 }
0x1324   :  { %3601 = vsyncpa [#allocation7], 1 }

</bundles_post_ra>
